<compile_context>
chip_gen: v6e
topology: v6e:2x2x1
jax: 0.10.0
libtpu: 0.0.40
codegen_flags: <defaults>
</compile_context>

<pallas_src>
import functools

import jax
import jax.numpy as jnp
from jax.experimental import pallas as pl
from jax.experimental.pallas import tpu as pltpu

# ---------------------------------------------------------------------------
# Model hyper-parameters (match the nn.Module defaults / small synthetic args)
# ---------------------------------------------------------------------------
D = 8            # number of Linear layers in feature_out
W = 64           # hidden width
D_MODEL = 32     # args.d_model (grid feature width)
HEAD_DIMS = (3, 3, 4, 1, 48)   # mu, scales, rotations, opacity, shs (16*3)
N_HEADS = len(HEAD_DIMS)
HEADS_W = N_HEADS * W          # 320: fused head hidden width
OUT_PAD = 128                  # packed head output width (59 real channels)
# cumulative column offsets of each head inside the packed 128-wide output
COL_OFF = tuple(int(sum(HEAD_DIMS[:h])) for h in range(N_HEADS))   # (0,3,6,10,11)

DEFAULT_TILE_M = 1024          # rows per grid step (clamped to problem size)


def _round_up(x, m):
    return ((x + m - 1) // m) * m


# ---------------------------------------------------------------------------
# Pallas kernel: fused feature_out MLP + packed 5-head readout
# ---------------------------------------------------------------------------
def _mlp_heads_kernel(x_ref, w0_ref, b0_ref, wrest_ref, brest_ref,
                      hw1_ref, hb1_ref, hw2_ref, hb2_ref, out_ref):
    # feature_out: Linear, then (ReLU, Linear) x (D-1).  bf16 matmul inputs,
    # f32 accumulation; bias/ReLU stay f32 on the VPU.
    x = x_ref[...].astype(jnp.bfloat16)                       # (TM, D_MODEL)
    h = (jnp.dot(x, w0_ref[...], preferred_element_type=jnp.float32)
         + b0_ref[...])                                       # (TM, W) f32
    for i in range(D - 1):                                    # static unroll
        a = jax.nn.relu(h).astype(jnp.bfloat16)
        h = (jnp.dot(a, wrest_ref[i], preferred_element_type=jnp.float32)
             + brest_ref[i:i + 1, :])

    # heads: ReLU(feature) computed once; first layers fused into one wide
    # matmul, second layers as one block-diagonal matmul into the packed slab.
    feat = jax.nn.relu(h).astype(jnp.bfloat16)                # (TM, W)
    t = (jnp.dot(feat, hw1_ref[...], preferred_element_type=jnp.float32)
         + hb1_ref[...])                                      # (TM, 5W)
    t = jax.nn.relu(t).astype(jnp.bfloat16)
    o = (jnp.dot(t, hw2_ref[...], preferred_element_type=jnp.float32)
         + hb2_ref[...])                                      # (TM, OUT_PAD)
    out_ref[...] = o


def fused_mlp_heads(feature_flat, params, tile_m=DEFAULT_TILE_M):
    """feature_flat: (M, D_MODEL) f32 -> (M, OUT_PAD) f32 packed head outputs."""
    M = feature_flat.shape[0]
    tile_m = min(tile_m, _round_up(M, 128))
    m_pad = _round_up(M, tile_m)
    if m_pad != M:
        feature_flat = jnp.pad(feature_flat, ((0, m_pad - M), (0, 0)))
    grid = (m_pad // tile_m,)

    # Constant block index -> weights resident in VMEM across all grid steps.
    full = lambda shape: pl.BlockSpec(shape, lambda i, _s=len(shape): (0,) * _s)

    # Rough roofline hint for XLA's scheduler.
    flops_per_row = (2 * D_MODEL * W + 2 * (D - 1) * W * W
                     + 2 * W * HEADS_W + 2 * HEADS_W * OUT_PAD)
    weight_bytes = (2 * (D_MODEL * W + (D - 1) * W * W
                         + W * HEADS_W + HEADS_W * OUT_PAD)
                    + 4 * (W + (D - 1) * W + HEADS_W + OUT_PAD))
    cost = pl.CostEstimate(
        flops=flops_per_row * m_pad,
        transcendentals=0,
        bytes_accessed=m_pad * 4 * (D_MODEL + OUT_PAD) + weight_bytes)

    out = pl.pallas_call(
        _mlp_heads_kernel,
        out_shape=jax.ShapeDtypeStruct((m_pad, OUT_PAD), jnp.float32),
        grid_spec=pltpu.PrefetchScalarGridSpec(
            num_scalar_prefetch=0,
            grid=grid,
            in_specs=[
                pl.BlockSpec((tile_m, D_MODEL), lambda i: (i, 0)),  # x
                full((D_MODEL, W)),                                 # w0   (bf16)
                full((1, W)),                                       # b0   (f32)
                full((D - 1, W, W)),                                # wrest(bf16)
                full((D - 1, W)),                                   # brest(f32)
                full((W, HEADS_W)),                                 # hw1  (bf16)
                full((1, HEADS_W)),                                 # hb1  (f32)
                full((HEADS_W, OUT_PAD)),                           # hw2  (bf16)
                full((1, OUT_PAD)),                                 # hb2  (f32)
            ],
            out_specs=pl.BlockSpec((tile_m, OUT_PAD), lambda i: (i, 0)),
        ),
        compiler_params=pltpu.CompilerParams(
            dimension_semantics=("parallel",),
            vmem_limit_bytes=64 << 20),
        cost_estimate=cost,
    )(feature_flat,
      params["w0"], params["b0"], params["wrest"], params["brest"],
      params["hw1"], params["hb1"], params["hw2"], params["hb2"])
    return out[:M]


# ---------------------------------------------------------------------------
# Tri-plane grid stand-in (plain-JAX glue; HexPlaneField_Conv not provided)
# ---------------------------------------------------------------------------
def triplane_sample(planes, posterior, pts, bounds=1.0):
    """planes: (3, D_MODEL, R, R); pts: (B, N, 3) -> (B, N, D_MODEL)."""
    B, N, _ = pts.shape
    R = planes.shape[-1]
    uv = jnp.clip((pts / bounds + 1.0) * 0.5, 0.0, 1.0) * (R - 1)
    pairs = ((0, 1), (0, 2), (1, 2))  # xy, xz, yz
    feat = jnp.ones((B, N, D_MODEL), jnp.float32)
    for p, (a, b) in enumerate(pairs):
        u, v = uv[..., a], uv[..., b]
        u0 = jnp.clip(jnp.floor(u), 0, R - 2).astype(jnp.int32)
        v0 = jnp.clip(jnp.floor(v), 0, R - 2).astype(jnp.int32)
        fu = (u - u0)[..., None]
        fv = (v - v0)[..., None]
        plane = planes[p]                                     # (D_MODEL, R, R)
        g = lambda vi, ui: jnp.transpose(plane[:, vi, ui], (1, 2, 0))
        pf = (g(v0, u0) * (1 - fu) * (1 - fv)
              + g(v0, u0 + 1) * fu * (1 - fv)
              + g(v0 + 1, u0) * (1 - fu) * fv
              + g(v0 + 1, u0 + 1) * fu * fv)
        feat = feat * pf
    # deterministic per-batch modulation from the posterior latent (stand-in)
    post_scale = 1.0 + 0.1 * jnp.tanh(posterior.mean(axis=(1, 2, 3)))
    return feat * post_scale[:, None, None]


# ---------------------------------------------------------------------------
# Parameter init (deterministic, xavier-uniform style) + weight packing
# ---------------------------------------------------------------------------
def _xavier(key, fan_in, fan_out, gain=1.0):
    limit = gain * jnp.sqrt(6.0 / (fan_in + fan_out))
    return jax.random.uniform(key, (fan_in, fan_out), jnp.float32,
                              minval=-limit, maxval=limit)


def init_params(key, grid_res=16):
    keys = jax.random.split(key, 32)
    ki = iter(range(32))

    planes = 0.1 * jax.random.normal(keys[next(ki)],
                                     (3, D_MODEL, grid_res, grid_res),
                                     jnp.float32) + 1.0

    # feature_out chain
    w0 = _xavier(keys[next(ki)], D_MODEL, W)
    b0 = jnp.zeros((1, W), jnp.float32)
    wrest = jnp.stack([_xavier(keys[next(ki)], W, W) for _ in range(D - 1)])
    brest = jnp.zeros((D - 1, W), jnp.float32)

    # heads: first layers concatenated along the output dim -> (W, 5W)
    hw1 = jnp.concatenate(
        [_xavier(keys[next(ki)], W, W) for _ in range(N_HEADS)], axis=1)
    hb1 = jnp.zeros((1, HEADS_W), jnp.float32)

    # heads: second layers as a block-diagonal (5W, OUT_PAD) matrix; padded
    # columns stay exactly zero (mlp_init_zeros: xavier gain 0.1, zero bias)
    hw2 = jnp.zeros((HEADS_W, OUT_PAD), jnp.float32)
    for h, dim in enumerate(HEAD_DIMS):
        wh = _xavier(keys[next(ki)], W, dim, gain=0.1)
        hw2 = hw2.at[h * W:(h + 1) * W, COL_OFF[h]:COL_OFF[h] + dim].set(wh)
    hb2 = jnp.zeros((1, OUT_PAD), jnp.float32)

    # bf16 weights for the MXU; biases stay f32 for the VPU adds.
    bf16 = lambda a: a.astype(jnp.bfloat16)
    return dict(planes=planes,
                w0=bf16(w0), b0=b0,
                wrest=bf16(wrest), brest=brest,
                hw1=bf16(hw1), hb1=hb1,
                hw2=bf16(hw2), hb2=hb2)


# ---------------------------------------------------------------------------
# Forward (mirrors canonical_tri_plane.forward)
# ---------------------------------------------------------------------------
@functools.partial(jax.jit, static_argnames=("only_feature", "train_tri_plane"))
def canonical_tri_plane_forward(params, posterior, rays_pts_emb,
                                only_feature=False, train_tri_plane=True):
    B, N, _ = rays_pts_emb.shape
    feature_ = triplane_sample(params["planes"], posterior,
                               rays_pts_emb[:, :, :3])          # (B, N, D_MODEL)
    if only_feature:
        feat = feature_
        if not train_tri_plane:
            feat = jax.lax.stop_gradient(feat)
        return feat

    flat = feature_.reshape(B * N, D_MODEL)
    heads = fused_mlp_heads(flat, params)                        # (B*N, OUT_PAD)

    outs = []
    for h, dim in enumerate(HEAD_DIMS):
        outs.append(heads[:, COL_OFF[h]:COL_OFF[h] + dim].reshape(B, N, dim))
    mu, scale, rotation, opacity, sh = outs
    return feature_, mu, scale, rotation, opacity, sh


# ---------------------------------------------------------------------------
if __name__ == "__main__":
    key = jax.random.PRNGKey(0)
    k_param, k_post, k_pts = jax.random.split(key, 3)

    B, N = 2, 128                       # B*N = 256 rows
    posterior = jax.random.normal(k_post, (B, 4, 16, 16), jnp.float32)  # NCHW
    rays_pts_emb = jax.random.uniform(k_pts, (B, N, 6), jnp.float32,
                                      minval=-1.0, maxval=1.0)

    params = init_params(k_param)

    feature_, mu, scale, rotation, opacity, sh = canonical_tri_plane_forward(
        params, posterior, rays_pts_emb)
    jax.block_until_ready((feature_, mu, scale, rotation, opacity, sh))

    assert feature_.shape == (B, N, D_MODEL)
    assert mu.shape == (B, N, 3)
    assert scale.shape == (B, N, 3)
    assert rotation.shape == (B, N, 4)
    assert opacity.shape == (B, N, 1)
    assert sh.shape == (B, N, 48)
    print("KERNEL_OK")
</pallas_src>

<mosaic_0001>
module attributes {stable_mosaic.version = 11 : i64} {
  func.func @_mlp_heads_kernel(%arg0: i32, %arg1: memref<256x32xf32, #tpu.memory_space<vmem>>, %arg2: memref<32x64xbf16, #tpu.memory_space<vmem>>, %arg3: memref<1x64xf32, #tpu.memory_space<vmem>>, %arg4: memref<7x64x64xbf16, #tpu.memory_space<vmem>>, %arg5: memref<7x64xf32, #tpu.memory_space<vmem>>, %arg6: memref<64x320xbf16, #tpu.memory_space<vmem>>, %arg7: memref<1x320xf32, #tpu.memory_space<vmem>>, %arg8: memref<320x128xbf16, #tpu.memory_space<vmem>>, %arg9: memref<1x128xf32, #tpu.memory_space<vmem>>, %arg10: memref<256x128xf32, #tpu.memory_space<vmem>>) attributes {dimension_semantics = [#tpu.dimension_semantics<parallel>], iteration_bounds = array<i64: 1>, scalar_prefetch = 0 : i64, scratch_operands = 0 : i64, tpu.core_type = #tpu.core_type<tc>, window_params = [{transform_indices = @transform_0, window_bounds = array<i64: 256, 32>}, {pipeline_mode = #tpu.pipeline_mode<synchronous>, transform_indices = @transform_1, window_bounds = array<i64: 32, 64>}, {pipeline_mode = #tpu.pipeline_mode<synchronous>, transform_indices = @transform_2, window_bounds = array<i64: 1, 64>}, {pipeline_mode = #tpu.pipeline_mode<synchronous>, transform_indices = @transform_3, window_bounds = array<i64: 7, 64, 64>}, {pipeline_mode = #tpu.pipeline_mode<synchronous>, transform_indices = @transform_4, window_bounds = array<i64: 7, 64>}, {pipeline_mode = #tpu.pipeline_mode<synchronous>, transform_indices = @transform_5, window_bounds = array<i64: 64, 320>}, {pipeline_mode = #tpu.pipeline_mode<synchronous>, transform_indices = @transform_6, window_bounds = array<i64: 1, 320>}, {pipeline_mode = #tpu.pipeline_mode<synchronous>, transform_indices = @transform_7, window_bounds = array<i64: 320, 128>}, {pipeline_mode = #tpu.pipeline_mode<synchronous>, transform_indices = @transform_8, window_bounds = array<i64: 1, 128>}, {transform_indices = @transform_9, window_bounds = array<i64: 256, 128>}]} {
    %c0 = arith.constant 0 : index
    %c0_0 = arith.constant 0 : index
    %0 = vector.load %arg1[%c0, %c0_0] : memref<256x32xf32, #tpu.memory_space<vmem>>, vector<256x32xf32>
    %1 = arith.truncf %0 : vector<256x32xf32> to vector<256x32xbf16>
    %c0_1 = arith.constant 0 : index
    %c0_2 = arith.constant 0 : index
    %2 = vector.load %arg2[%c0_1, %c0_2] : memref<32x64xbf16, #tpu.memory_space<vmem>>, vector<32x64xbf16>
    %cst = arith.constant dense<0.000000e+00> : vector<256x64xf32>
    %3 = tpu.matmul %1, %2, %cst {dimension_numbers = #tpu.dot_dimension_numbers<[1], [0], [0], [1], [0, 0, 1, 1], [], []>} : vector<256x32xbf16>, vector<32x64xbf16>, vector<256x64xf32> -> vector<256x64xf32>
    %c0_3 = arith.constant 0 : index
    %c0_4 = arith.constant 0 : index
    %4 = vector.load %arg3[%c0_3, %c0_4] : memref<1x64xf32, #tpu.memory_space<vmem>>, vector<1x64xf32>
    %5 = vector.broadcast %4 : vector<1x64xf32> to vector<256x64xf32>
    %6 = arith.addf %3, %5 : vector<256x64xf32>
    %cst_5 = arith.constant 0.000000e+00 : f32
    %7 = vector.broadcast %cst_5 : f32 to vector<256x64xf32>
    %8 = arith.maximumf %6, %7 : vector<256x64xf32>
    %9 = arith.truncf %8 : vector<256x64xf32> to vector<256x64xbf16>
    %c0_6 = arith.constant 0 : index
    %c0_7 = arith.constant 0 : index
    %c0_8 = arith.constant 0 : index
    %10 = vector.load %arg4[%c0_6, %c0_7, %c0_8] : memref<7x64x64xbf16, #tpu.memory_space<vmem>>, vector<1x64x64xbf16>
    %11 = vector.shape_cast %10 : vector<1x64x64xbf16> to vector<64x64xbf16>
    %cst_9 = arith.constant dense<0.000000e+00> : vector<256x64xf32>
    %12 = tpu.matmul %9, %11, %cst_9 {dimension_numbers = #tpu.dot_dimension_numbers<[1], [0], [0], [1], [0, 0, 1, 1], [], []>} : vector<256x64xbf16>, vector<64x64xbf16>, vector<256x64xf32> -> vector<256x64xf32>
    %c0_10 = arith.constant 0 : index
    %c0_11 = arith.constant 0 : index
    %13 = vector.load %arg5[%c0_10, %c0_11] : memref<7x64xf32, #tpu.memory_space<vmem>>, vector<1x64xf32>
    %14 = vector.broadcast %13 : vector<1x64xf32> to vector<256x64xf32>
    %15 = arith.addf %12, %14 : vector<256x64xf32>
    %cst_12 = arith.constant 0.000000e+00 : f32
    %16 = vector.broadcast %cst_12 : f32 to vector<256x64xf32>
    %17 = arith.maximumf %15, %16 : vector<256x64xf32>
    %18 = arith.truncf %17 : vector<256x64xf32> to vector<256x64xbf16>
    %c1 = arith.constant 1 : index
    %c0_13 = arith.constant 0 : index
    %c0_14 = arith.constant 0 : index
    %19 = vector.load %arg4[%c1, %c0_13, %c0_14] : memref<7x64x64xbf16, #tpu.memory_space<vmem>>, vector<1x64x64xbf16>
    %20 = vector.shape_cast %19 : vector<1x64x64xbf16> to vector<64x64xbf16>
    %cst_15 = arith.constant dense<0.000000e+00> : vector<256x64xf32>
    %21 = tpu.matmul %18, %20, %cst_15 {dimension_numbers = #tpu.dot_dimension_numbers<[1], [0], [0], [1], [0, 0, 1, 1], [], []>} : vector<256x64xbf16>, vector<64x64xbf16>, vector<256x64xf32> -> vector<256x64xf32>
    %c1_16 = arith.constant 1 : index
    %c0_17 = arith.constant 0 : index
    %22 = vector.load %arg5[%c1_16, %c0_17] : memref<7x64xf32, #tpu.memory_space<vmem>>, vector<1x64xf32>
    %23 = vector.broadcast %22 : vector<1x64xf32> to vector<256x64xf32>
    %24 = arith.addf %21, %23 : vector<256x64xf32>
    %cst_18 = arith.constant 0.000000e+00 : f32
    %25 = vector.broadcast %cst_18 : f32 to vector<256x64xf32>
    %26 = arith.maximumf %24, %25 : vector<256x64xf32>
    %27 = arith.truncf %26 : vector<256x64xf32> to vector<256x64xbf16>
    %c2 = arith.constant 2 : index
    %c0_19 = arith.constant 0 : index
    %c0_20 = arith.constant 0 : index
    %28 = vector.load %arg4[%c2, %c0_19, %c0_20] : memref<7x64x64xbf16, #tpu.memory_space<vmem>>, vector<1x64x64xbf16>
    %29 = vector.shape_cast %28 : vector<1x64x64xbf16> to vector<64x64xbf16>
    %cst_21 = arith.constant dense<0.000000e+00> : vector<256x64xf32>
    %30 = tpu.matmul %27, %29, %cst_21 {dimension_numbers = #tpu.dot_dimension_numbers<[1], [0], [0], [1], [0, 0, 1, 1], [], []>} : vector<256x64xbf16>, vector<64x64xbf16>, vector<256x64xf32> -> vector<256x64xf32>
    %c2_22 = arith.constant 2 : index
    %c0_23 = arith.constant 0 : index
    %31 = vector.load %arg5[%c2_22, %c0_23] : memref<7x64xf32, #tpu.memory_space<vmem>>, vector<1x64xf32>
    %32 = vector.broadcast %31 : vector<1x64xf32> to vector<256x64xf32>
    %33 = arith.addf %30, %32 : vector<256x64xf32>
    %cst_24 = arith.constant 0.000000e+00 : f32
    %34 = vector.broadcast %cst_24 : f32 to vector<256x64xf32>
    %35 = arith.maximumf %33, %34 : vector<256x64xf32>
    %36 = arith.truncf %35 : vector<256x64xf32> to vector<256x64xbf16>
    %c3 = arith.constant 3 : index
    %c0_25 = arith.constant 0 : index
    %c0_26 = arith.constant 0 : index
    %37 = vector.load %arg4[%c3, %c0_25, %c0_26] : memref<7x64x64xbf16, #tpu.memory_space<vmem>>, vector<1x64x64xbf16>
    %38 = vector.shape_cast %37 : vector<1x64x64xbf16> to vector<64x64xbf16>
    %cst_27 = arith.constant dense<0.000000e+00> : vector<256x64xf32>
    %39 = tpu.matmul %36, %38, %cst_27 {dimension_numbers = #tpu.dot_dimension_numbers<[1], [0], [0], [1], [0, 0, 1, 1], [], []>} : vector<256x64xbf16>, vector<64x64xbf16>, vector<256x64xf32> -> vector<256x64xf32>
    %c3_28 = arith.constant 3 : index
    %c0_29 = arith.constant 0 : index
    %40 = vector.load %arg5[%c3_28, %c0_29] : memref<7x64xf32, #tpu.memory_space<vmem>>, vector<1x64xf32>
    %41 = vector.broadcast %40 : vector<1x64xf32> to vector<256x64xf32>
    %42 = arith.addf %39, %41 : vector<256x64xf32>
    %cst_30 = arith.constant 0.000000e+00 : f32
    %43 = vector.broadcast %cst_30 : f32 to vector<256x64xf32>
    %44 = arith.maximumf %42, %43 : vector<256x64xf32>
    %45 = arith.truncf %44 : vector<256x64xf32> to vector<256x64xbf16>
    %c4 = arith.constant 4 : index
    %c0_31 = arith.constant 0 : index
    %c0_32 = arith.constant 0 : index
    %46 = vector.load %arg4[%c4, %c0_31, %c0_32] : memref<7x64x64xbf16, #tpu.memory_space<vmem>>, vector<1x64x64xbf16>
    %47 = vector.shape_cast %46 : vector<1x64x64xbf16> to vector<64x64xbf16>
    %cst_33 = arith.constant dense<0.000000e+00> : vector<256x64xf32>
    %48 = tpu.matmul %45, %47, %cst_33 {dimension_numbers = #tpu.dot_dimension_numbers<[1], [0], [0], [1], [0, 0, 1, 1], [], []>} : vector<256x64xbf16>, vector<64x64xbf16>, vector<256x64xf32> -> vector<256x64xf32>
    %c4_34 = arith.constant 4 : index
    %c0_35 = arith.constant 0 : index
    %49 = vector.load %arg5[%c4_34, %c0_35] : memref<7x64xf32, #tpu.memory_space<vmem>>, vector<1x64xf32>
    %50 = vector.broadcast %49 : vector<1x64xf32> to vector<256x64xf32>
    %51 = arith.addf %48, %50 : vector<256x64xf32>
    %cst_36 = arith.constant 0.000000e+00 : f32
    %52 = vector.broadcast %cst_36 : f32 to vector<256x64xf32>
    %53 = arith.maximumf %51, %52 : vector<256x64xf32>
    %54 = arith.truncf %53 : vector<256x64xf32> to vector<256x64xbf16>
    %c5 = arith.constant 5 : index
    %c0_37 = arith.constant 0 : index
    %c0_38 = arith.constant 0 : index
    %55 = vector.load %arg4[%c5, %c0_37, %c0_38] : memref<7x64x64xbf16, #tpu.memory_space<vmem>>, vector<1x64x64xbf16>
    %56 = vector.shape_cast %55 : vector<1x64x64xbf16> to vector<64x64xbf16>
    %cst_39 = arith.constant dense<0.000000e+00> : vector<256x64xf32>
    %57 = tpu.matmul %54, %56, %cst_39 {dimension_numbers = #tpu.dot_dimension_numbers<[1], [0], [0], [1], [0, 0, 1, 1], [], []>} : vector<256x64xbf16>, vector<64x64xbf16>, vector<256x64xf32> -> vector<256x64xf32>
    %c5_40 = arith.constant 5 : index
    %c0_41 = arith.constant 0 : index
    %58 = vector.load %arg5[%c5_40, %c0_41] : memref<7x64xf32, #tpu.memory_space<vmem>>, vector<1x64xf32>
    %59 = vector.broadcast %58 : vector<1x64xf32> to vector<256x64xf32>
    %60 = arith.addf %57, %59 : vector<256x64xf32>
    %cst_42 = arith.constant 0.000000e+00 : f32
    %61 = vector.broadcast %cst_42 : f32 to vector<256x64xf32>
    %62 = arith.maximumf %60, %61 : vector<256x64xf32>
    %63 = arith.truncf %62 : vector<256x64xf32> to vector<256x64xbf16>
    %c6 = arith.constant 6 : index
    %c0_43 = arith.constant 0 : index
    %c0_44 = arith.constant 0 : index
    %64 = vector.load %arg4[%c6, %c0_43, %c0_44] : memref<7x64x64xbf16, #tpu.memory_space<vmem>>, vector<1x64x64xbf16>
    %65 = vector.shape_cast %64 : vector<1x64x64xbf16> to vector<64x64xbf16>
    %cst_45 = arith.constant dense<0.000000e+00> : vector<256x64xf32>
    %66 = tpu.matmul %63, %65, %cst_45 {dimension_numbers = #tpu.dot_dimension_numbers<[1], [0], [0], [1], [0, 0, 1, 1], [], []>} : vector<256x64xbf16>, vector<64x64xbf16>, vector<256x64xf32> -> vector<256x64xf32>
    %c6_46 = arith.constant 6 : index
    %c0_47 = arith.constant 0 : index
    %67 = vector.load %arg5[%c6_46, %c0_47] : memref<7x64xf32, #tpu.memory_space<vmem>>, vector<1x64xf32>
    %68 = vector.broadcast %67 : vector<1x64xf32> to vector<256x64xf32>
    %69 = arith.addf %66, %68 : vector<256x64xf32>
    %cst_48 = arith.constant 0.000000e+00 : f32
    %70 = vector.broadcast %cst_48 : f32 to vector<256x64xf32>
    %71 = arith.maximumf %69, %70 : vector<256x64xf32>
    %72 = arith.truncf %71 : vector<256x64xf32> to vector<256x64xbf16>
    %c0_49 = arith.constant 0 : index
    %c0_50 = arith.constant 0 : index
    %73 = vector.load %arg6[%c0_49, %c0_50] : memref<64x320xbf16, #tpu.memory_space<vmem>>, vector<64x320xbf16>
    %cst_51 = arith.constant dense<0.000000e+00> : vector<256x320xf32>
    %74 = tpu.matmul %72, %73, %cst_51 {dimension_numbers = #tpu.dot_dimension_numbers<[1], [0], [0], [1], [0, 0, 1, 1], [], []>} : vector<256x64xbf16>, vector<64x320xbf16>, vector<256x320xf32> -> vector<256x320xf32>
    %c0_52 = arith.constant 0 : index
    %c0_53 = arith.constant 0 : index
    %75 = vector.load %arg7[%c0_52, %c0_53] : memref<1x320xf32, #tpu.memory_space<vmem>>, vector<1x320xf32>
    %76 = vector.broadcast %75 : vector<1x320xf32> to vector<256x320xf32>
    %77 = arith.addf %74, %76 : vector<256x320xf32>
    %cst_54 = arith.constant 0.000000e+00 : f32
    %78 = vector.broadcast %cst_54 : f32 to vector<256x320xf32>
    %79 = arith.maximumf %77, %78 : vector<256x320xf32>
    %80 = arith.truncf %79 : vector<256x320xf32> to vector<256x320xbf16>
    %c0_55 = arith.constant 0 : index
    %c0_56 = arith.constant 0 : index
    %81 = vector.load %arg8[%c0_55, %c0_56] : memref<320x128xbf16, #tpu.memory_space<vmem>>, vector<320x128xbf16>
    %cst_57 = arith.constant dense<0.000000e+00> : vector<256x128xf32>
    %82 = tpu.matmul %80, %81, %cst_57 {dimension_numbers = #tpu.dot_dimension_numbers<[1], [0], [0], [1], [0, 0, 1, 1], [], []>} : vector<256x320xbf16>, vector<320x128xbf16>, vector<256x128xf32> -> vector<256x128xf32>
    %c0_58 = arith.constant 0 : index
    %c0_59 = arith.constant 0 : index
    %83 = vector.load %arg9[%c0_58, %c0_59] : memref<1x128xf32, #tpu.memory_space<vmem>>, vector<1x128xf32>
    %84 = vector.broadcast %83 : vector<1x128xf32> to vector<256x128xf32>
    %85 = arith.addf %82, %84 : vector<256x128xf32>
    %c0_60 = arith.constant 0 : index
    %c0_61 = arith.constant 0 : index
    %86 = vector.load %arg10[%c0_60, %c0_61] : memref<256x128xf32, #tpu.memory_space<vmem>>, vector<256x128xf32>
    tpu.vector_store %arg10[%c0_60, %c0_61], %85 {strides = array<i32>} : memref<256x128xf32, #tpu.memory_space<vmem>>, vector<256x128xf32>,
    return
  }
  func.func @transform_0(%arg0: i32) -> (i32, i32) {
    %c0_i32 = arith.constant 0 : i32
    %c0_i32_0 = arith.constant 0 : i32
    return %arg0, %c0_i32 : i32, i32
  }
  func.func @transform_1(%arg0: i32) -> (i32, i32) {
    %c0_i32 = arith.constant 0 : i32
    %c0_i32_0 = arith.constant 0 : i32
    %c0_i32_1 = arith.constant 0 : i32
    return %c0_i32, %c0_i32_0 : i32, i32
  }
  func.func @transform_2(%arg0: i32) -> (i32, i32) {
    %c0_i32 = arith.constant 0 : i32
    %c0_i32_0 = arith.constant 0 : i32
    %c0_i32_1 = arith.constant 0 : i32
    return %c0_i32, %c0_i32_0 : i32, i32
  }
  func.func @transform_3(%arg0: i32) -> (i32, i32, i32) {
    %c0_i32 = arith.constant 0 : i32
    %c0_i32_0 = arith.constant 0 : i32
    %c0_i32_1 = arith.constant 0 : i32
    %c0_i32_2 = arith.constant 0 : i32
    return %c0_i32, %c0_i32_0, %c0_i32_1 : i32, i32, i32
  }
  func.func @transform_4(%arg0: i32) -> (i32, i32) {
    %c0_i32 = arith.constant 0 : i32
    %c0_i32_0 = arith.constant 0 : i32
    %c0_i32_1 = arith.constant 0 : i32
    return %c0_i32, %c0_i32_0 : i32, i32
  }
  func.func @transform_5(%arg0: i32) -> (i32, i32) {
    %c0_i32 = arith.constant 0 : i32
    %c0_i32_0 = arith.constant 0 : i32
    %c0_i32_1 = arith.constant 0 : i32
    return %c0_i32, %c0_i32_0 : i32, i32
  }
  func.func @transform_6(%arg0: i32) -> (i32, i32) {
    %c0_i32 = arith.constant 0 : i32
    %c0_i32_0 = arith.constant 0 : i32
    %c0_i32_1 = arith.constant 0 : i32
    return %c0_i32, %c0_i32_0 : i32, i32
  }
  func.func @transform_7(%arg0: i32) -> (i32, i32) {
    %c0_i32 = arith.constant 0 : i32
    %c0_i32_0 = arith.constant 0 : i32
    %c0_i32_1 = arith.constant 0 : i32
    return %c0_i32, %c0_i32_0 : i32, i32
  }
  func.func @transform_8(%arg0: i32) -> (i32, i32) {
    %c0_i32 = arith.constant 0 : i32
    %c0_i32_0 = arith.constant 0 : i32
    %c0_i32_1 = arith.constant 0 : i32
    return %c0_i32, %c0_i32_0 : i32, i32
  }
  func.func @transform_9(%arg0: i32) -> (i32, i32) {
    %c0_i32 = arith.constant 0 : i32
    %c0_i32_0 = arith.constant 0 : i32
    return %arg0, %c0_i32 : i32, i32
  }
}

</mosaic_0001>

<bundles_post_ra>
// kernel: canonical_tri_plane_forward.1
= control target key start
LH: loop header
LB: loop body
LE: loop exit
PB: predicated region body
PF: predicated region fallthrough
CT: control target
= control target key end

     0   :  { %vm104_vm0 = vcmask 261120   ;;  %vm399_vm1 = vcmask 523264   ;;  %s5782_s1 = inlined_call_operand.vmem [shape: bf16[32,64], index: 1, kind: input, shape index: {}]   ;;  %s5783_s0 = inlined_call_operand.vmem [shape: f32[256,32], index: 0, kind: input, shape index: {}]   ;;  %s5784_s3 = inlined_call_operand.vmem [shape: bf16[7,64,64], index: 3, kind: input, shape index: {}]   ;;  %s5785_s2 = inlined_call_operand.vmem [shape: f32[1,64], index: 2, kind: input, shape index: {}]   ;;  %s5786_s4 = inlined_call_operand.vmem [shape: f32[7,64], index: 4, kind: input, shape index: {}]   ;;  %s5787_s5 = inlined_call_operand.vmem [shape: bf16[64,320], index: 5, kind: input, shape index: {}]   ;;  %s5788_s7 = inlined_call_operand.vmem [shape: bf16[320,128], index: 7, kind: input, shape index: {}]   ;;  %s5789_s6 = inlined_call_operand.vmem [shape: f32[1,320], index: 6, kind: input, shape index: {}]   ;;  %s5790_s8 = inlined_call_operand.vmem [shape: f32[1,128], index: 8, kind: input, shape index: {}]   ;;  %s5791_s9 = inlined_call_operand.vmem [shape: f32[256,128], index: 9, kind: output, shape index: {}]  }
   0x1   :  { %v4645_v0 = vld [vmem:[%s5782_s1 + $0x8] sm:$0xff]   ;;  %v4646_v1 = vld [vmem:[%s5782_s1] sm:$0xff]   ;;  %v35_v5 = vld [vmem:[%s5783_s0 + $0x10] sm:$0xff] }
   0x2   :  { %4248 = vmatprep.subr.bf16.mxu0 %v4645_v0  ;;  %v33_v2 = vld [vmem:[%s5783_s0] sm:$0xff]  ;;  %v34_v3 = vld [vmem:[%s5783_s0 + $0x8] sm:$0xff]  ;;  %v36_v6 = vld [vmem:[%s5783_s0 + $0x18] sm:$0xff] }
   0x3   :  { %4249 = vmatpush3.bf16.msra.mxu0 %v4645_v0  ;;  %v65_v4 = vpack.c.bf16 %v34_v3, %v33_v2  ;;  %v37_v7 = vld [vmem:[%s5783_s0 + $0x20] sm:$0xff]  ;;  %v38_v8 = vld [vmem:[%s5783_s0 + $0x28] sm:$0xff]  ;;  %v66_v9 = vpack.c.bf16 %v36_v6, %v35_v5  ;;  %v39_v11 = vld [vmem:[%s5783_s0 + $0x30] sm:$0xff] }
   0x4   :  { %4250 = vmatprep.subr.bf16.mxu0 %v4646_v1  ;;  %v67_v10 = vpack.c.bf16 %v38_v8, %v37_v7  ;;  %v40_v12 = vld [vmem:[%s5783_s0 + $0x38] sm:$0xff]  ;;  %v41_v13 = vld [vmem:[%s5783_s0 + $0x40] sm:$0xff]  ;;  %v42_v14 = vld [vmem:[%s5783_s0 + $0x48] sm:$0xff] }
   0x5   :  { %4252 = vmatprep.mubr.msk.bf16.mxu0 %vm104_vm0, %v65_v4  ;;  %v4647_v15 = vld [vmem:[%s5784_s3 + $0x18] sm:$0xff]   ;;  %v68_v16 = vpack.c.bf16 %v40_v12, %v39_v11  ;;  %v69_v17 = vpack.c.bf16 %v42_v14, %v41_v13  ;;  %v43_v18 = vld [vmem:[%s5783_s0 + $0x50] sm:$0xff]  ;;  %v45_v20 = vld [vmem:[%s5783_s0 + $0x60] sm:$0xff] }
   0x6   :  { %4284 = vmatprep.subr.bf16.mxu1 %v4647_v15  ;;  %v44_v19 = vld [vmem:[%s5783_s0 + $0x58] sm:$0xff]  ;;  %v46_v21 = vld [vmem:[%s5783_s0 + $0x68] sm:$0xff]  ;;  %v47_v24 = vld [vmem:[%s5783_s0 + $0x70] sm:$0xff] }
   0x7   :  { %4251 = vmatpush3.bf16.msra.mxu0 %v4646_v1  ;;  %4285 = vmatpush3.bf16.msra.mxu1 %v4647_v15  ;;  %v70_v22 = vpack.c.bf16 %v44_v19, %v43_v18  ;;  %v71_v23 = vpack.c.bf16 %v46_v21, %v45_v20  ;;  %v48_v25 = vld [vmem:[%s5783_s0 + $0x78] sm:$0xff]  ;;  %v49_v26 = vld [vmem:[%s5783_s0 + $0x80] sm:$0xff]  ;;  %v50_v27 = vld [vmem:[%s5783_s0 + $0x88] sm:$0xff] }
   0x8   :  { %v72_v28 = vpack.c.bf16 %v48_v25, %v47_v24  ;;  %v73_v29 = vpack.c.bf16 %v50_v27, %v49_v26  ;;  %v51_v30 = vld [vmem:[%s5783_s0 + $0x90] sm:$0xff]  ;;  %v52_v31 = vld [vmem:[%s5783_s0 + $0x98] sm:$0xff]  ;;  %v53_v32 = vld [vmem:[%s5783_s0 + $0xa0] sm:$0xff] }
   0x9   :  { %v54_v33 = vld [vmem:[%s5783_s0 + $0xa8] sm:$0xff]  ;;  %v74_v34 = vpack.c.bf16 %v52_v31, %v51_v30  ;;  %v55_v36 = vld [vmem:[%s5783_s0 + $0xb0] sm:$0xff]  ;;  %v56_v37 = vld [vmem:[%s5783_s0 + $0xb8] sm:$0xff] }
   0xa   :  { %4253 = vmatmul.mubr.msk.bf16.vlgmr.msra.gmra.mxu0 %vm104_vm0, %v66_v9  ;;  %v75_v35 = vpack.c.bf16 %v54_v33, %v53_v32  ;;  %v57_v38 = vld [vmem:[%s5783_s0 + $0xc0] sm:$0xff]  ;;  %v58_v39 = vld [vmem:[%s5783_s0 + $0xc8] sm:$0xff]  ;;  %v76_v40 = vpack.c.bf16 %v56_v37, %v55_v36  ;;  %v59_v42 = vld [vmem:[%s5783_s0 + $0xd0] sm:$0xff] }
   0xb   :  { %4256 = vmatprep.mubr.msk.bf16.mxu0 %vm104_vm0, %v67_v10  ;;  %v77_v41 = vpack.c.bf16 %v58_v39, %v57_v38  ;;  %v60_v43 = vld [vmem:[%s5783_s0 + $0xd8] sm:$0xff]  ;;  %v61_v44 = vld [vmem:[%s5783_s0 + $0xe0] sm:$0xff]  ;;  %v62_v45 = vld [vmem:[%s5783_s0 + $0xe8] sm:$0xff] }
   0xc   :  { %v78_v46 = vpack.c.bf16 %v60_v43, %v59_v42  ;;  %v79_v47 = vpack.c.bf16 %v62_v45, %v61_v44  ;;  %v63_v48 = vld [vmem:[%s5783_s0 + $0xf0] sm:$0xff]  ;;  %v64_v49 = vld [vmem:[%s5783_s0 + $0xf8] sm:$0xff]  ;;  %v4649_v52 = vld [vmem:[%s5784_s3 + $0x8] sm:$0xff]  }
   0xd   :  { %v80_v50 = vpack.c.bf16 %v64_v49, %v63_v48  ;;  %v4648_v51 = vld [vmem:[%s5784_s3 + $0x10] sm:$0xff]   ;;  %v4650_v53 = vld [vmem:[%s5784_s3] sm:$0xff]   ;;  %v4651_v54 = vld [vmem:[%s5784_s3 + $0x38] sm:$0xff]  }
   0xe   :  { %4286 = vmatprep.subr.bf16.mxu1 %v4648_v51  ;;  %v4652_v55 = vld [vmem:[%s5784_s3 + $0x30] sm:$0xff]   ;;  %4324 = vmatprep.subr.bf16.mxu0 %v4651_v54  ;;  %v4653_v56 = vld [vmem:[%s5784_s3 + $0x28] sm:$0xff]   ;;  %v4654_v57 = vld [vmem:[%s5784_s3 + $0x20] sm:$0xff]  }
   0xf   :  { %4287 = vmatpush3.bf16.msra.mxu1 %v4648_v51  ;;  %4325 = vmatpush3.bf16.msra.mxu0 %v4651_v54  ;;  %v4907_v60 = vld [vmem:[%s5785_s2] ss:$0 sm:$0xff] }
  0x10   :  { %4288 = vmatprep.subr.bf16.mxu1 %v4649_v52  ;;  %4326 = vmatprep.subr.bf16.mxu0 %v4652_v55 }
  0x12   :  { %4257 = vmatmul.mubr.msk.bf16.gmra.mxu0 %vm104_vm0, %v68_v16 }
  0x13   :  { %4260 = vmatprep.mubr.msk.bf16.mxu0 %vm104_vm0, %v69_v17  ;;  %4289 = vmatpush3.bf16.msra.mxu1 %v4649_v52 }
  0x14   :  { %4290 = vmatprep.subr.bf16.mxu1 %v4650_v53  ;;  %4327 = vmatpush3.bf16.msra.mxu0 %v4652_v55 }
  0x15   :  { %4328 = vmatprep.subr.bf16.mxu0 %v4653_v56 }
  0x17   :  { %4291 = vmatpush3.bf16.msra.mxu1 %v4650_v53 }
  0x18   :  { %4329 = vmatpush3.bf16.msra.mxu0 %v4653_v56 }
  0x19   :  { %4330 = vmatprep.subr.bf16.mxu0 %v4654_v57 }
  0x1a   :  { %4261 = vmatmul.mubr.msk.bf16.gmra.mxu0 %vm104_vm0, %v70_v22 }
  0x1b   :  { %4264 = vmatprep.mubr.msk.bf16.mxu0 %vm104_vm0, %v71_v23 }
  0x1c   :  { %4331 = vmatpush3.bf16.msra.mxu0 %v4654_v57 }
  0x22   :  { %4265 = vmatmul.mubr.msk.bf16.gmra.mxu0 %vm104_vm0, %v72_v28 }
  0x23   :  { %4268 = vmatprep.mubr.msk.bf16.mxu0 %vm104_vm0, %v73_v29 }
  0x2a   :  { %4269 = vmatmul.mubr.msk.bf16.gmra.mxu0 %vm104_vm0, %v74_v34 }
  0x2b   :  { %4272 = vmatprep.mubr.msk.bf16.mxu0 %vm104_vm0, %v75_v35 }
  0x32   :  { %4273 = vmatmul.mubr.msk.bf16.gmra.mxu0 %vm104_vm0, %v76_v40 }
  0x33   :  { %4276 = vmatprep.mubr.msk.bf16.mxu0 %vm104_vm0, %v77_v41 }
  0x3a   :  { %4277 = vmatmul.mubr.msk.bf16.gmra.mxu0 %vm104_vm0, %v78_v46 }
  0x3b   :  { %4280 = vmatprep.mubr.msk.bf16.mxu0 %vm104_vm0, %v79_v47 }
  0x42   :  { %4281 = vmatmul.mubr.msk.bf16.gmra.mxu0 %vm104_vm0, %v80_v50 }
  0xca   :  { %v4254_v58 = vpop.f32.mrf.mxu0 }
  0xcb   :  { %v196_v0 = vadd.f32 %v4254_v58, %v4907_v60 }
  0xcc   :  { %v187_v59 = vpop.f32.mrf.mxu0 }
  0xcd   :  { %v188_v62 = vadd.f32 %v4907_v60, %v187_v59  ;;  %v316_v7 = vmax.f32 %v196_v0, 0.0 }
  0xce   :  { %v4255_v61 = vpop.f32.mrf.mxu0 }
  0xcf   :  { %v199_v63 = vadd.f32 %v4255_v61, %v4907_v60  ;;  %v314_v5 = vmax.f32 %v188_v62, 0.0 }
  0xd0   :  { %v190_v1 = vpop.f32.mrf.mxu0 }
  0xd1   :  { %v191_v2 = vadd.f32 %v4907_v60, %v190_v1  ;;  %v317_v3 = vmax.f32 %v199_v63, 0.0 }
  0xd2   :  { %v4258_v4 = vpop.f32.mrf.mxu0 }
  0xd3   :  { %v315_v6 = vmax.f32 %v191_v2, 0.0  ;;  %v212_v8 = vadd.f32 %v4258_v4, %v4907_v60  ;;  %v347_v12 = vpack.c.bf16 %v317_v3, %v316_v7 }
  0xd4   :  { %v203_v9 = vpop.f32.mrf.mxu0 }
  0xd5   :  { %v204_v10 = vadd.f32 %v4907_v60, %v203_v9  ;;  %v346_v11 = vpack.c.bf16 %v315_v6, %v314_v5  ;;  %v320_v15 = vmax.f32 %v212_v8, 0.0 }
  0xd6   :  { %v4259_v13 = vpop.f32.mrf.mxu0 }
  0xd7   :  { %v215_v14 = vadd.f32 %v4259_v13, %v4907_v60  ;;  %4292 = vmatprep.mubr.msk.bf16.mxu1 %vm399_vm1, %v346_v11  ;;  %v318_v17 = vmax.f32 %v204_v10, 0.0 }
  0xd8   :  { %v206_v16 = vpop.f32.mrf.mxu0  ;;  %4293 = vmatmul.mubr.msk.bf16.vlgmr.msra.gmra.mxu1 %vm399_vm1, %v347_v12 }
  0xd9   :  { %v321_v18 = vmax.f32 %v215_v14, 0.0  ;;  %v207_v19 = vadd.f32 %v4907_v60, %v206_v16 }
  0xda   :  { %v4262_v20 = vpop.f32.mrf.mxu0 }
  0xdb   :  { %v319_v21 = vmax.f32 %v207_v19, 0.0  ;;  %v349_v22 = vpack.c.bf16 %v321_v18, %v320_v15  ;;  %v228_v23 = vadd.f32 %v4262_v20, %v4907_v60 }
  0xdc   :  { %v219_v24 = vpop.f32.mrf.mxu0 }
  0xdd   :  { %v348_v25 = vpack.c.bf16 %v319_v21, %v318_v17  ;;  %v220_v26 = vadd.f32 %v4907_v60, %v219_v24  ;;  %v324_v29 = vmax.f32 %v228_v23, 0.0 }
  0xde   :  { %v4263_v27 = vpop.f32.mrf.mxu0 }
  0xdf   :  { %v231_v28 = vadd.f32 %v4263_v27, %v4907_v60  ;;  %4296 = vmatprep.mubr.msk.bf16.mxu1 %vm399_vm1, %v348_v25  ;;  %v322_v31 = vmax.f32 %v220_v26, 0.0 }
  0xe0   :  { %v222_v30 = vpop.f32.mrf.mxu0  ;;  %4297 = vmatmul.mubr.msk.bf16.gmra.mxu1 %vm399_vm1, %v349_v22 }
  0xe1   :  { %v325_v32 = vmax.f32 %v231_v28, 0.0  ;;  %v223_v33 = vadd.f32 %v4907_v60, %v222_v30 }
  0xe2   :  { %v4266_v34 = vpop.f32.mrf.mxu0 }
  0xe3   :  { %v323_v35 = vmax.f32 %v223_v33, 0.0  ;;  %v351_v36 = vpack.c.bf16 %v325_v32, %v324_v29  ;;  %v244_v37 = vadd.f32 %v4266_v34, %v4907_v60 }
  0xe4   :  { %v235_v38 = vpop.f32.mrf.mxu0 }
  0xe5   :  { %v350_v39 = vpack.c.bf16 %v323_v35, %v322_v31  ;;  %v236_v40 = vadd.f32 %v4907_v60, %v235_v38  ;;  %v328_v43 = vmax.f32 %v244_v37, 0.0 }
  0xe6   :  { %v4267_v41 = vpop.f32.mrf.mxu0 }
  0xe7   :  { %v247_v42 = vadd.f32 %v4267_v41, %v4907_v60  ;;  %4300 = vmatprep.mubr.msk.bf16.mxu1 %vm399_vm1, %v350_v39  ;;  %v326_v45 = vmax.f32 %v236_v40, 0.0 }
  0xe8   :  { %v238_v44 = vpop.f32.mrf.mxu0  ;;  %4301 = vmatmul.mubr.msk.bf16.gmra.mxu1 %vm399_vm1, %v351_v36 }
  0xe9   :  { %v329_v46 = vmax.f32 %v247_v42, 0.0  ;;  %v239_v47 = vadd.f32 %v4907_v60, %v238_v44  ;;  %v4655_v44 = vld [vmem:[%s5784_s3 + $0x58] sm:$0xff]  }
  0xea   :  { %v4270_v48 = vpop.f32.mrf.mxu0  ;;  %4364 = vmatprep.subr.bf16.mxu1 %v4655_v44 }
  0xeb   :  { %v327_v49 = vmax.f32 %v239_v47, 0.0  ;;  %v353_v50 = vpack.c.bf16 %v329_v46, %v328_v43  ;;  %v260_v51 = vadd.f32 %v4270_v48, %v4907_v60  ;;  %4365 = vmatpush3.bf16.msra.mxu1 %v4655_v44  ;;  %v4658_v46 = vld [vmem:[%s5784_s3 + $0x40] sm:$0xff]  }
  0xec   :  { %v251_v52 = vpop.f32.mrf.mxu0 }
  0xed   :  { %v352_v53 = vpack.c.bf16 %v327_v49, %v326_v45  ;;  %v252_v54 = vadd.f32 %v4907_v60, %v251_v52  ;;  %v332_v57 = vmax.f32 %v260_v51, 0.0  ;;  %v4656_v45 = vld [vmem:[%s5784_s3 + $0x50] sm:$0xff]   ;;  %v4972_v49 = vld [vmem:[%s5786_s4] ss:$0 sm:$0xff] }
  0xee   :  { %v4271_v55 = vpop.f32.mrf.mxu0  ;;  %4366 = vmatprep.subr.bf16.mxu1 %v4656_v45 }
  0xef   :  { %v263_v56 = vadd.f32 %v4271_v55, %v4907_v60  ;;  %4304 = vmatprep.mubr.msk.bf16.mxu1 %vm399_vm1, %v352_v53  ;;  %v330_v59 = vmax.f32 %v252_v54, 0.0  ;;  %4367 = vmatpush3.bf16.msra.mxu1 %v4656_v45 }
  0xf0   :  { %v254_v58 = vpop.f32.mrf.mxu0  ;;  %4305 = vmatmul.mubr.msk.bf16.gmra.mxu1 %vm399_vm1, %v353_v50 }
  0xf1   :  { %v333_v61 = vmax.f32 %v263_v56, 0.0  ;;  %v255_v62 = vadd.f32 %v4907_v60, %v254_v58 }
  0xf2   :  { %v4274_v63 = vpop.f32.mrf.mxu0 }
  0xf3   :  { %v331_v0 = vmax.f32 %v255_v62, 0.0  ;;  %v355_v1 = vpack.c.bf16 %v333_v61, %v332_v57  ;;  %v276_v2 = vadd.f32 %v4274_v63, %v4907_v60 }
  0xf4   :  { %v267_v3 = vpop.f32.mrf.mxu0 }
  0xf5   :  { %v354_v4 = vpack.c.bf16 %v331_v0, %v330_v59  ;;  %v268_v5 = vadd.f32 %v4907_v60, %v267_v3  ;;  %v336_v8 = vmax.f32 %v276_v2, 0.0 }
  0xf6   :  { %v4275_v6 = vpop.f32.mrf.mxu0 }
  0xf7   :  { %v279_v7 = vadd.f32 %v4275_v6, %v4907_v60  ;;  %4308 = vmatprep.mubr.msk.bf16.mxu1 %vm399_vm1, %v354_v4  ;;  %v334_v10 = vmax.f32 %v268_v5, 0.0 }
  0xf8   :  { %v270_v9 = vpop.f32.mrf.mxu0  ;;  %4309 = vmatmul.mubr.msk.bf16.gmra.mxu1 %vm399_vm1, %v355_v1 }
  0xf9   :  { %v337_v11 = vmax.f32 %v279_v7, 0.0  ;;  %v271_v12 = vadd.f32 %v4907_v60, %v270_v9 }
  0xfa   :  { %v4278_v13 = vpop.f32.mrf.mxu0 }
  0xfb   :  { %v335_v14 = vmax.f32 %v271_v12, 0.0  ;;  %v357_v15 = vpack.c.bf16 %v337_v11, %v336_v8  ;;  %v292_v16 = vadd.f32 %v4278_v13, %v4907_v60 }
  0xfc   :  { %v283_v17 = vpop.f32.mrf.mxu0 }
  0xfd   :  { %v356_v18 = vpack.c.bf16 %v335_v14, %v334_v10  ;;  %v284_v19 = vadd.f32 %v4907_v60, %v283_v17  ;;  %v340_v22 = vmax.f32 %v292_v16, 0.0 }
  0xfe   :  { %v4279_v20 = vpop.f32.mrf.mxu0 }
  0xff   :  { %v295_v21 = vadd.f32 %v4279_v20, %v4907_v60  ;;  %4312 = vmatprep.mubr.msk.bf16.mxu1 %vm399_vm1, %v356_v18  ;;  %v338_v24 = vmax.f32 %v284_v19, 0.0 }
 0x100   :  { %v286_v23 = vpop.f32.mrf.mxu0  ;;  %4313 = vmatmul.mubr.msk.bf16.gmra.mxu1 %vm399_vm1, %v357_v15 }
 0x101   :  { %v341_v25 = vmax.f32 %v295_v21, 0.0  ;;  %v287_v26 = vadd.f32 %v4907_v60, %v286_v23 }
 0x102   :  { %v4282_v27 = vpop.f32.mrf.mxu0 }
 0x103   :  { %v339_v28 = vmax.f32 %v287_v26, 0.0  ;;  %v359_v29 = vpack.c.bf16 %v341_v25, %v340_v22  ;;  %v308_v30 = vadd.f32 %v4282_v27, %v4907_v60 }
 0x104   :  { %v299_v31 = vpop.f32.mrf.mxu0 }
 0x105   :  { %v358_v32 = vpack.c.bf16 %v339_v28, %v338_v24  ;;  %v300_v33 = vadd.f32 %v4907_v60, %v299_v31  ;;  %v344_v36 = vmax.f32 %v308_v30, 0.0 }
 0x106   :  { %v4283_v34 = vpop.f32.mrf.mxu0 }
 0x107   :  { %v311_v35 = vadd.f32 %v4283_v34, %v4907_v60  ;;  %4316 = vmatprep.mubr.msk.bf16.mxu1 %vm399_vm1, %v358_v32  ;;  %v342_v38 = vmax.f32 %v300_v33, 0.0 }
 0x108   :  { %v302_v37 = vpop.f32.mrf.mxu0  ;;  %4317 = vmatmul.mubr.msk.bf16.gmra.mxu1 %vm399_vm1, %v359_v29 }
 0x109   :  { %v345_v39 = vmax.f32 %v311_v35, 0.0  ;;  %v303_v40 = vadd.f32 %v4907_v60, %v302_v37  ;;  %v4657_v60 = vld [vmem:[%s5784_s3 + $0x48] sm:$0xff]  }
 0x10a   :  { %4368 = vmatprep.subr.bf16.mxu1 %v4657_v60 }
 0x10b   :  { %v343_v41 = vmax.f32 %v303_v40, 0.0  ;;  %v361_v42 = vpack.c.bf16 %v345_v39, %v344_v36  ;;  %4369 = vmatpush3.bf16.msra.mxu1 %v4657_v60 }
 0x10c   :  { %4370 = vmatprep.subr.bf16.mxu1 %v4658_v46 }
 0x10d   :  { %v360_v43 = vpack.c.bf16 %v343_v41, %v342_v38 }
 0x10f   :  { %4320 = vmatprep.mubr.msk.bf16.mxu1 %vm399_vm1, %v360_v43  ;;  %4371 = vmatpush3.bf16.msra.mxu1 %v4658_v46 }
 0x110   :  { %4321 = vmatmul.mubr.msk.bf16.gmra.mxu1 %vm399_vm1, %v361_v42 }
 0x198   :  { %v4294_v47 = vpop.f32.mrf.mxu1 }
 0x199   :  { %v491_v53 = vadd.f32 %v4294_v47, %v4972_v49 }
 0x19a   :  { %v482_v48 = vpop.f32.mrf.mxu1 }
 0x19b   :  { %v483_v51 = vadd.f32 %v4972_v49, %v482_v48  ;;  %v611_v61 = vmax.f32 %v491_v53, 0.0 }
 0x19c   :  { %v4295_v50 = vpop.f32.mrf.mxu1 }
 0x19d   :  { %v494_v52 = vadd.f32 %v4295_v50, %v4972_v49  ;;  %v609_v58 = vmax.f32 %v483_v51, 0.0 }
 0x19e   :  { %v485_v54 = vpop.f32.mrf.mxu1 }
 0x19f   :  { %v486_v55 = vadd.f32 %v4972_v49, %v485_v54  ;;  %v612_v56 = vmax.f32 %v494_v52, 0.0 }
 0x1a0   :  { %v4298_v57 = vpop.f32.mrf.mxu1 }
 0x1a1   :  { %v610_v59 = vmax.f32 %v486_v55, 0.0  ;;  %v642_v0 = vpack.c.bf16 %v612_v56, %v611_v61  ;;  %v507_v4 = vadd.f32 %v4298_v57, %v4972_v49 }
 0x1a2   :  { %v498_v62 = vpop.f32.mrf.mxu1 }
 0x1a3   :  { %v641_v63 = vpack.c.bf16 %v610_v59, %v609_v58  ;;  %v499_v2 = vadd.f32 %v4972_v49, %v498_v62  ;;  %v615_v11 = vmax.f32 %v507_v4, 0.0 }
 0x1a4   :  { %v4299_v1 = vpop.f32.mrf.mxu1 }
 0x1a5   :  { %v510_v3 = vadd.f32 %v4299_v1, %v4972_v49  ;;  %4332 = vmatprep.mubr.msk.bf16.mxu0 %vm399_vm1, %v641_v63  ;;  %v613_v9 = vmax.f32 %v499_v2, 0.0 }
 0x1a6   :  { %v501_v5 = vpop.f32.mrf.mxu1  ;;  %4333 = vmatmul.mubr.msk.bf16.vlgmr.msra.gmra.mxu0 %vm399_vm1, %v642_v0 }
 0x1a7   :  { %v502_v6 = vadd.f32 %v4972_v49, %v501_v5  ;;  %v616_v7 = vmax.f32 %v510_v3, 0.0 }
 0x1a8   :  { %v4302_v8 = vpop.f32.mrf.mxu1 }
 0x1a9   :  { %v614_v10 = vmax.f32 %v502_v6, 0.0  ;;  %v523_v12 = vadd.f32 %v4302_v8, %v4972_v49  ;;  %v644_v16 = vpack.c.bf16 %v616_v7, %v615_v11 }
 0x1aa   :  { %v514_v13 = vpop.f32.mrf.mxu1 }
 0x1ab   :  { %v643_v14 = vpack.c.bf16 %v614_v10, %v613_v9  ;;  %v515_v15 = vadd.f32 %v4972_v49, %v514_v13  ;;  %v619_v19 = vmax.f32 %v523_v12, 0.0 }
 0x1ac   :  { %v4303_v17 = vpop.f32.mrf.mxu1 }
 0x1ad   :  { %v526_v18 = vadd.f32 %v4303_v17, %v4972_v49  ;;  %4336 = vmatprep.mubr.msk.bf16.mxu0 %vm399_vm1, %v643_v14  ;;  %v617_v21 = vmax.f32 %v515_v15, 0.0 }
 0x1ae   :  { %v517_v20 = vpop.f32.mrf.mxu1  ;;  %4337 = vmatmul.mubr.msk.bf16.gmra.mxu0 %vm399_vm1, %v644_v16 }
 0x1af   :  { %v620_v22 = vmax.f32 %v526_v18, 0.0  ;;  %v518_v23 = vadd.f32 %v4972_v49, %v517_v20 }
 0x1b0   :  { %v4306_v24 = vpop.f32.mrf.mxu1 }
 0x1b1   :  { %v618_v25 = vmax.f32 %v518_v23, 0.0  ;;  %v646_v26 = vpack.c.bf16 %v620_v22, %v619_v19  ;;  %v539_v27 = vadd.f32 %v4306_v24, %v4972_v49 }
 0x1b2   :  { %v530_v28 = vpop.f32.mrf.mxu1 }
 0x1b3   :  { %v645_v29 = vpack.c.bf16 %v618_v25, %v617_v21  ;;  %v531_v30 = vadd.f32 %v4972_v49, %v530_v28  ;;  %v623_v33 = vmax.f32 %v539_v27, 0.0 }
 0x1b4   :  { %v4307_v31 = vpop.f32.mrf.mxu1 }
 0x1b5   :  { %v542_v32 = vadd.f32 %v4307_v31, %v4972_v49  ;;  %4340 = vmatprep.mubr.msk.bf16.mxu0 %vm399_vm1, %v645_v29  ;;  %v621_v35 = vmax.f32 %v531_v30, 0.0 }
 0x1b6   :  { %v533_v34 = vpop.f32.mrf.mxu1  ;;  %4341 = vmatmul.mubr.msk.bf16.gmra.mxu0 %vm399_vm1, %v646_v26 }
 0x1b7   :  { %v624_v36 = vmax.f32 %v542_v32, 0.0  ;;  %v534_v37 = vadd.f32 %v4972_v49, %v533_v34  ;;  %v4659_v34 = vld [vmem:[%s5784_s3 + $0x78] sm:$0xff]  }
 0x1b8   :  { %v4310_v38 = vpop.f32.mrf.mxu1  ;;  %4404 = vmatprep.subr.bf16.mxu0 %v4659_v34 }
 0x1b9   :  { %v622_v39 = vmax.f32 %v534_v37, 0.0  ;;  %v648_v40 = vpack.c.bf16 %v624_v36, %v623_v33  ;;  %v555_v41 = vadd.f32 %v4310_v38, %v4972_v49  ;;  %4405 = vmatpush3.bf16.msra.mxu0 %v4659_v34  ;;  %v4662_v36 = vld [vmem:[%s5784_s3 + $0x60] sm:$0xff]  }
 0x1ba   :  { %v546_v42 = vpop.f32.mrf.mxu1 }
 0x1bb   :  { %v647_v43 = vpack.c.bf16 %v622_v39, %v621_v35  ;;  %v547_v44 = vadd.f32 %v4972_v49, %v546_v42  ;;  %v627_v46 = vmax.f32 %v555_v41, 0.0  ;;  %v4660_v35 = vld [vmem:[%s5784_s3 + $0x70] sm:$0xff]   ;;  %v5037_v39 = vld [vmem:[%s5786_s4 + $0x1] ss:$0 sm:$0xff] }
 0x1bc   :  { %v4311_v45 = vpop.f32.mrf.mxu1  ;;  %4406 = vmatprep.subr.bf16.mxu0 %v4660_v35 }
 0x1bd   :  { %v558_v60 = vadd.f32 %v4311_v45, %v4972_v49  ;;  %4344 = vmatprep.mubr.msk.bf16.mxu0 %vm399_vm1, %v647_v43  ;;  %v625_v48 = vmax.f32 %v547_v44, 0.0  ;;  %4407 = vmatpush3.bf16.msra.mxu0 %v4660_v35 }
 0x1be   :  { %v549_v47 = vpop.f32.mrf.mxu1  ;;  %4345 = vmatmul.mubr.msk.bf16.gmra.mxu0 %vm399_vm1, %v648_v40 }
 0x1bf   :  { %v628_v50 = vmax.f32 %v558_v60, 0.0  ;;  %v550_v51 = vadd.f32 %v4972_v49, %v549_v47 }
 0x1c0   :  { %v4314_v52 = vpop.f32.mrf.mxu1 }
 0x1c1   :  { %v626_v53 = vmax.f32 %v550_v51, 0.0  ;;  %v650_v54 = vpack.c.bf16 %v628_v50, %v627_v46  ;;  %v571_v55 = vadd.f32 %v4314_v52, %v4972_v49 }
 0x1c2   :  { %v562_v56 = vpop.f32.mrf.mxu1 }
 0x1c3   :  { %v649_v57 = vpack.c.bf16 %v626_v53, %v625_v48  ;;  %v563_v58 = vadd.f32 %v4972_v49, %v562_v56  ;;  %v631_v62 = vmax.f32 %v571_v55, 0.0 }
 0x1c4   :  { %v4315_v59 = vpop.f32.mrf.mxu1 }
 0x1c5   :  { %v574_v61 = vadd.f32 %v4315_v59, %v4972_v49  ;;  %4348 = vmatprep.mubr.msk.bf16.mxu0 %vm399_vm1, %v649_v57  ;;  %v629_v0 = vmax.f32 %v563_v58, 0.0 }
 0x1c6   :  { %v565_v63 = vpop.f32.mrf.mxu1  ;;  %4349 = vmatmul.mubr.msk.bf16.gmra.mxu0 %vm399_vm1, %v650_v54 }
 0x1c7   :  { %v632_v1 = vmax.f32 %v574_v61, 0.0  ;;  %v566_v2 = vadd.f32 %v4972_v49, %v565_v63 }
 0x1c8   :  { %v4318_v3 = vpop.f32.mrf.mxu1 }
 0x1c9   :  { %v630_v4 = vmax.f32 %v566_v2, 0.0  ;;  %v652_v5 = vpack.c.bf16 %v632_v1, %v631_v62  ;;  %v587_v6 = vadd.f32 %v4318_v3, %v4972_v49 }
 0x1ca   :  { %v578_v7 = vpop.f32.mrf.mxu1 }
 0x1cb   :  { %v651_v8 = vpack.c.bf16 %v630_v4, %v629_v0  ;;  %v579_v9 = vadd.f32 %v4972_v49, %v578_v7  ;;  %v635_v12 = vmax.f32 %v587_v6, 0.0 }
 0x1cc   :  { %v4319_v10 = vpop.f32.mrf.mxu1 }
 0x1cd   :  { %v590_v11 = vadd.f32 %v4319_v10, %v4972_v49  ;;  %4352 = vmatprep.mubr.msk.bf16.mxu0 %vm399_vm1, %v651_v8  ;;  %v633_v14 = vmax.f32 %v579_v9, 0.0 }
 0x1ce   :  { %v581_v13 = vpop.f32.mrf.mxu1  ;;  %4353 = vmatmul.mubr.msk.bf16.gmra.mxu0 %vm399_vm1, %v652_v5 }
 0x1cf   :  { %v636_v15 = vmax.f32 %v590_v11, 0.0  ;;  %v582_v16 = vadd.f32 %v4972_v49, %v581_v13 }
 0x1d0   :  { %v4322_v17 = vpop.f32.mrf.mxu1 }
 0x1d1   :  { %v634_v18 = vmax.f32 %v582_v16, 0.0  ;;  %v654_v19 = vpack.c.bf16 %v636_v15, %v635_v12  ;;  %v603_v20 = vadd.f32 %v4322_v17, %v4972_v49 }
 0x1d2   :  { %v594_v21 = vpop.f32.mrf.mxu1 }
 0x1d3   :  { %v653_v22 = vpack.c.bf16 %v634_v18, %v633_v14  ;;  %v595_v23 = vadd.f32 %v4972_v49, %v594_v21  ;;  %v639_v26 = vmax.f32 %v603_v20, 0.0 }
 0x1d4   :  { %v4323_v24 = vpop.f32.mrf.mxu1 }
 0x1d5   :  { %v606_v25 = vadd.f32 %v4323_v24, %v4972_v49  ;;  %4356 = vmatprep.mubr.msk.bf16.mxu0 %vm399_vm1, %v653_v22  ;;  %v637_v28 = vmax.f32 %v595_v23, 0.0 }
 0x1d6   :  { %v597_v27 = vpop.f32.mrf.mxu1  ;;  %4357 = vmatmul.mubr.msk.bf16.gmra.mxu0 %vm399_vm1, %v654_v19 }
 0x1d7   :  { %v640_v29 = vmax.f32 %v606_v25, 0.0  ;;  %v598_v30 = vadd.f32 %v4972_v49, %v597_v27  ;;  %v4661_v49 = vld [vmem:[%s5784_s3 + $0x68] sm:$0xff]  }
 0x1d8   :  { %4408 = vmatprep.subr.bf16.mxu0 %v4661_v49 }
 0x1d9   :  { %v638_v31 = vmax.f32 %v598_v30, 0.0  ;;  %v656_v32 = vpack.c.bf16 %v640_v29, %v639_v26  ;;  %4409 = vmatpush3.bf16.msra.mxu0 %v4661_v49 }
 0x1da   :  { %4410 = vmatprep.subr.bf16.mxu0 %v4662_v36 }
 0x1db   :  { %v655_v33 = vpack.c.bf16 %v638_v31, %v637_v28 }
 0x1dd   :  { %4360 = vmatprep.mubr.msk.bf16.mxu0 %vm399_vm1, %v655_v33  ;;  %4411 = vmatpush3.bf16.msra.mxu0 %v4662_v36 }
 0x1de   :  { %4361 = vmatmul.mubr.msk.bf16.gmra.mxu0 %vm399_vm1, %v656_v32 }
 0x266   :  { %v4334_v37 = vpop.f32.mrf.mxu0 }
 0x267   :  { %v786_v43 = vadd.f32 %v4334_v37, %v5037_v39 }
 0x268   :  { %v777_v38 = vpop.f32.mrf.mxu0 }
 0x269   :  { %v778_v41 = vadd.f32 %v5037_v39, %v777_v38  ;;  %v906_v50 = vmax.f32 %v786_v43, 0.0 }
 0x26a   :  { %v4335_v40 = vpop.f32.mrf.mxu0 }
 0x26b   :  { %v789_v42 = vadd.f32 %v4335_v40, %v5037_v39  ;;  %v904_v47 = vmax.f32 %v778_v41, 0.0 }
 0x26c   :  { %v780_v44 = vpop.f32.mrf.mxu0 }
 0x26d   :  { %v781_v45 = vadd.f32 %v5037_v39, %v780_v44  ;;  %v907_v60 = vmax.f32 %v789_v42, 0.0 }
 0x26e   :  { %v4338_v46 = vpop.f32.mrf.mxu0 }
 0x26f   :  { %v905_v48 = vmax.f32 %v781_v45, 0.0  ;;  %v937_v53 = vpack.c.bf16 %v907_v60, %v906_v50  ;;  %v802_v57 = vadd.f32 %v4338_v46, %v5037_v39 }
 0x270   :  { %v793_v51 = vpop.f32.mrf.mxu0 }
 0x271   :  { %v936_v52 = vpack.c.bf16 %v905_v48, %v904_v47  ;;  %v794_v55 = vadd.f32 %v5037_v39, %v793_v51  ;;  %v910_v1 = vmax.f32 %v802_v57, 0.0 }
 0x272   :  { %v4339_v54 = vpop.f32.mrf.mxu0 }
 0x273   :  { %v805_v56 = vadd.f32 %v4339_v54, %v5037_v39  ;;  %4372 = vmatprep.mubr.msk.bf16.mxu1 %vm399_vm1, %v936_v52  ;;  %v908_v63 = vmax.f32 %v794_v55, 0.0 }
 0x274   :  { %v796_v58 = vpop.f32.mrf.mxu0  ;;  %4373 = vmatmul.mubr.msk.bf16.vlgmr.msra.gmra.mxu1 %vm399_vm1, %v937_v53 }
 0x275   :  { %v797_v59 = vadd.f32 %v5037_v39, %v796_v58  ;;  %v911_v61 = vmax.f32 %v805_v56, 0.0 }
 0x276   :  { %v4342_v62 = vpop.f32.mrf.mxu0 }
 0x277   :  { %v909_v0 = vmax.f32 %v797_v59, 0.0  ;;  %v939_v4 = vpack.c.bf16 %v911_v61, %v910_v1  ;;  %v818_v8 = vadd.f32 %v4342_v62, %v5037_v39 }
 0x278   :  { %v809_v2 = vpop.f32.mrf.mxu0 }
 0x279   :  { %v938_v3 = vpack.c.bf16 %v909_v0, %v908_v63  ;;  %v810_v6 = vadd.f32 %v5037_v39, %v809_v2  ;;  %v914_v15 = vmax.f32 %v818_v8, 0.0 }
 0x27a   :  { %v4343_v5 = vpop.f32.mrf.mxu0 }
 0x27b   :  { %v821_v7 = vadd.f32 %v4343_v5, %v5037_v39  ;;  %4376 = vmatprep.mubr.msk.bf16.mxu1 %vm399_vm1, %v938_v3  ;;  %v912_v13 = vmax.f32 %v810_v6, 0.0 }
 0x27c   :  { %v812_v9 = vpop.f32.mrf.mxu0  ;;  %4377 = vmatmul.mubr.msk.bf16.gmra.mxu1 %vm399_vm1, %v939_v4 }
 0x27d   :  { %v813_v10 = vadd.f32 %v5037_v39, %v812_v9  ;;  %v915_v11 = vmax.f32 %v821_v7, 0.0 }
 0x27e   :  { %v4346_v12 = vpop.f32.mrf.mxu0 }
 0x27f   :  { %v913_v14 = vmax.f32 %v813_v10, 0.0  ;;  %v834_v16 = vadd.f32 %v4346_v12, %v5037_v39  ;;  %v941_v20 = vpack.c.bf16 %v915_v11, %v914_v15 }
 0x280   :  { %v825_v17 = vpop.f32.mrf.mxu0 }
 0x281   :  { %v940_v18 = vpack.c.bf16 %v913_v14, %v912_v13  ;;  %v826_v19 = vadd.f32 %v5037_v39, %v825_v17  ;;  %v918_v23 = vmax.f32 %v834_v16, 0.0 }
 0x282   :  { %v4347_v21 = vpop.f32.mrf.mxu0 }
 0x283   :  { %v837_v22 = vadd.f32 %v4347_v21, %v5037_v39  ;;  %4380 = vmatprep.mubr.msk.bf16.mxu1 %vm399_vm1, %v940_v18  ;;  %v916_v25 = vmax.f32 %v826_v19, 0.0 }
 0x284   :  { %v828_v24 = vpop.f32.mrf.mxu0  ;;  %4381 = vmatmul.mubr.msk.bf16.gmra.mxu1 %vm399_vm1, %v941_v20 }
 0x285   :  { %v919_v26 = vmax.f32 %v837_v22, 0.0  ;;  %v829_v27 = vadd.f32 %v5037_v39, %v828_v24  ;;  %v4663_v24 = vld [vmem:[%s5784_s3 + $0x98] sm:$0xff]  }
 0x286   :  { %v4350_v28 = vpop.f32.mrf.mxu0  ;;  %4444 = vmatprep.subr.bf16.mxu1 %v4663_v24 }
 0x287   :  { %v917_v29 = vmax.f32 %v829_v27, 0.0  ;;  %v943_v30 = vpack.c.bf16 %v919_v26, %v918_v23  ;;  %v850_v31 = vadd.f32 %v4350_v28, %v5037_v39  ;;  %4445 = vmatpush3.bf16.msra.mxu1 %v4663_v24  ;;  %v4666_v26 = vld [vmem:[%s5784_s3 + $0x80] sm:$0xff]  }
 0x288   :  { %v841_v32 = vpop.f32.mrf.mxu0 }
 0x289   :  { %v942_v33 = vpack.c.bf16 %v917_v29, %v916_v25  ;;  %v842_v34 = vadd.f32 %v5037_v39, %v841_v32  ;;  %v922_v36 = vmax.f32 %v850_v31, 0.0  ;;  %v4664_v25 = vld [vmem:[%s5784_s3 + $0x90] sm:$0xff]   ;;  %v5102_v29 = vld [vmem:[%s5786_s4 + $0x2] ss:$0 sm:$0xff] }
 0x28a   :  { %v4351_v35 = vpop.f32.mrf.mxu0  ;;  %4446 = vmatprep.subr.bf16.mxu1 %v4664_v25 }
 0x28b   :  { %v853_v49 = vadd.f32 %v4351_v35, %v5037_v39  ;;  %4384 = vmatprep.mubr.msk.bf16.mxu1 %vm399_vm1, %v942_v33  ;;  %v920_v38 = vmax.f32 %v842_v34, 0.0  ;;  %4447 = vmatpush3.bf16.msra.mxu1 %v4664_v25 }
 0x28c   :  { %v844_v37 = vpop.f32.mrf.mxu0  ;;  %4385 = vmatmul.mubr.msk.bf16.gmra.mxu1 %vm399_vm1, %v943_v30 }
 0x28d   :  { %v923_v40 = vmax.f32 %v853_v49, 0.0  ;;  %v845_v41 = vadd.f32 %v5037_v39, %v844_v37 }
 0x28e   :  { %v4354_v42 = vpop.f32.mrf.mxu0 }
 0x28f   :  { %v921_v43 = vmax.f32 %v845_v41, 0.0  ;;  %v945_v44 = vpack.c.bf16 %v923_v40, %v922_v36  ;;  %v866_v45 = vadd.f32 %v4354_v42, %v5037_v39 }
 0x290   :  { %v857_v60 = vpop.f32.mrf.mxu0 }
 0x291   :  { %v944_v46 = vpack.c.bf16 %v921_v43, %v920_v38  ;;  %v858_v47 = vadd.f32 %v5037_v39, %v857_v60  ;;  %v926_v51 = vmax.f32 %v866_v45, 0.0 }
 0x292   :  { %v4355_v48 = vpop.f32.mrf.mxu0 }
 0x293   :  { %v869_v50 = vadd.f32 %v4355_v48, %v5037_v39  ;;  %4388 = vmatprep.mubr.msk.bf16.mxu1 %vm399_vm1, %v944_v46  ;;  %v924_v53 = vmax.f32 %v858_v47, 0.0 }
 0x294   :  { %v860_v52 = vpop.f32.mrf.mxu0  ;;  %4389 = vmatmul.mubr.msk.bf16.gmra.mxu1 %vm399_vm1, %v945_v44 }
 0x295   :  { %v927_v54 = vmax.f32 %v869_v50, 0.0  ;;  %v861_v55 = vadd.f32 %v5037_v39, %v860_v52 }
 0x296   :  { %v4358_v56 = vpop.f32.mrf.mxu0 }
 0x297   :  { %v925_v57 = vmax.f32 %v861_v55, 0.0  ;;  %v947_v58 = vpack.c.bf16 %v927_v54, %v926_v51  ;;  %v882_v59 = vadd.f32 %v4358_v56, %v5037_v39 }
 0x298   :  { %v873_v61 = vpop.f32.mrf.mxu0 }
 0x299   :  { %v946_v62 = vpack.c.bf16 %v925_v57, %v924_v53  ;;  %v874_v63 = vadd.f32 %v5037_v39, %v873_v61  ;;  %v930_v2 = vmax.f32 %v882_v59, 0.0 }
 0x29a   :  { %v4359_v0 = vpop.f32.mrf.mxu0 }
 0x29b   :  { %v885_v1 = vadd.f32 %v4359_v0, %v5037_v39  ;;  %4392 = vmatprep.mubr.msk.bf16.mxu1 %vm399_vm1, %v946_v62  ;;  %v928_v4 = vmax.f32 %v874_v63, 0.0 }
 0x29c   :  { %v876_v3 = vpop.f32.mrf.mxu0  ;;  %4393 = vmatmul.mubr.msk.bf16.gmra.mxu1 %vm399_vm1, %v947_v58 }
 0x29d   :  { %v931_v5 = vmax.f32 %v885_v1, 0.0  ;;  %v877_v6 = vadd.f32 %v5037_v39, %v876_v3 }
 0x29e   :  { %v4362_v7 = vpop.f32.mrf.mxu0 }
 0x29f   :  { %v929_v8 = vmax.f32 %v877_v6, 0.0  ;;  %v949_v9 = vpack.c.bf16 %v931_v5, %v930_v2  ;;  %v898_v10 = vadd.f32 %v4362_v7, %v5037_v39 }
 0x2a0   :  { %v889_v11 = vpop.f32.mrf.mxu0 }
 0x2a1   :  { %v948_v12 = vpack.c.bf16 %v929_v8, %v928_v4  ;;  %v890_v13 = vadd.f32 %v5037_v39, %v889_v11  ;;  %v934_v16 = vmax.f32 %v898_v10, 0.0 }
 0x2a2   :  { %v4363_v14 = vpop.f32.mrf.mxu0 }
 0x2a3   :  { %v901_v15 = vadd.f32 %v4363_v14, %v5037_v39  ;;  %4396 = vmatprep.mubr.msk.bf16.mxu1 %vm399_vm1, %v948_v12  ;;  %v932_v18 = vmax.f32 %v890_v13, 0.0 }
 0x2a4   :  { %v892_v17 = vpop.f32.mrf.mxu0  ;;  %4397 = vmatmul.mubr.msk.bf16.gmra.mxu1 %vm399_vm1, %v949_v9 }
 0x2a5   :  { %v935_v19 = vmax.f32 %v901_v15, 0.0  ;;  %v893_v20 = vadd.f32 %v5037_v39, %v892_v17  ;;  %v4665_v39 = vld [vmem:[%s5784_s3 + $0x88] sm:$0xff]  }
 0x2a6   :  { %4448 = vmatprep.subr.bf16.mxu1 %v4665_v39 }
 0x2a7   :  { %v933_v21 = vmax.f32 %v893_v20, 0.0  ;;  %v951_v22 = vpack.c.bf16 %v935_v19, %v934_v16  ;;  %4449 = vmatpush3.bf16.msra.mxu1 %v4665_v39 }
 0x2a8   :  { %4450 = vmatprep.subr.bf16.mxu1 %v4666_v26 }
 0x2a9   :  { %v950_v23 = vpack.c.bf16 %v933_v21, %v932_v18 }
 0x2ab   :  { %4400 = vmatprep.mubr.msk.bf16.mxu1 %vm399_vm1, %v950_v23  ;;  %4451 = vmatpush3.bf16.msra.mxu1 %v4666_v26 }
 0x2ac   :  { %4401 = vmatmul.mubr.msk.bf16.gmra.mxu1 %vm399_vm1, %v951_v22 }
 0x334   :  { %v4374_v27 = vpop.f32.mrf.mxu1 }
 0x335   :  { %v1081_v33 = vadd.f32 %v4374_v27, %v5102_v29 }
 0x336   :  { %v1072_v28 = vpop.f32.mrf.mxu1 }
 0x337   :  { %v1073_v31 = vadd.f32 %v5102_v29, %v1072_v28  ;;  %v1201_v40 = vmax.f32 %v1081_v33, 0.0 }
 0x338   :  { %v4375_v30 = vpop.f32.mrf.mxu1 }
 0x339   :  { %v1084_v32 = vadd.f32 %v4375_v30, %v5102_v29  ;;  %v1199_v37 = vmax.f32 %v1073_v31, 0.0 }
 0x33a   :  { %v1075_v34 = vpop.f32.mrf.mxu1 }
 0x33b   :  { %v1076_v35 = vadd.f32 %v5102_v29, %v1075_v34  ;;  %v1202_v49 = vmax.f32 %v1084_v32, 0.0 }
 0x33c   :  { %v4378_v36 = vpop.f32.mrf.mxu1 }
 0x33d   :  { %v1200_v38 = vmax.f32 %v1076_v35, 0.0  ;;  %v1232_v43 = vpack.c.bf16 %v1202_v49, %v1201_v40  ;;  %v1097_v46 = vadd.f32 %v4378_v36, %v5102_v29 }
 0x33e   :  { %v1088_v41 = vpop.f32.mrf.mxu1 }
 0x33f   :  { %v1231_v42 = vpack.c.bf16 %v1200_v38, %v1199_v37  ;;  %v1089_v45 = vadd.f32 %v5102_v29, %v1088_v41  ;;  %v1205_v54 = vmax.f32 %v1097_v46, 0.0 }
 0x340   :  { %v4379_v44 = vpop.f32.mrf.mxu1 }
 0x341   :  { %v1100_v60 = vadd.f32 %v4379_v44, %v5102_v29  ;;  %4412 = vmatprep.mubr.msk.bf16.mxu0 %vm399_vm1, %v1231_v42  ;;  %v1203_v52 = vmax.f32 %v1089_v45, 0.0 }
 0x342   :  { %v1091_v47 = vpop.f32.mrf.mxu1  ;;  %4413 = vmatmul.mubr.msk.bf16.vlgmr.msra.gmra.mxu0 %vm399_vm1, %v1232_v43 }
 0x343   :  { %v1092_v48 = vadd.f32 %v5102_v29, %v1091_v47  ;;  %v1206_v50 = vmax.f32 %v1100_v60, 0.0 }
 0x344   :  { %v4382_v51 = vpop.f32.mrf.mxu1 }
 0x345   :  { %v1204_v53 = vmax.f32 %v1092_v48, 0.0  ;;  %v1234_v57 = vpack.c.bf16 %v1206_v50, %v1205_v54  ;;  %v1113_v62 = vadd.f32 %v4382_v51, %v5102_v29 }
 0x346   :  { %v1104_v55 = vpop.f32.mrf.mxu1 }
 0x347   :  { %v1233_v56 = vpack.c.bf16 %v1204_v53, %v1203_v52  ;;  %v1105_v59 = vadd.f32 %v5102_v29, %v1104_v55  ;;  %v1209_v5 = vmax.f32 %v1113_v62, 0.0 }
 0x348   :  { %v4383_v58 = vpop.f32.mrf.mxu1 }
 0x349   :  { %v1116_v61 = vadd.f32 %v4383_v58, %v5102_v29  ;;  %4416 = vmatprep.mubr.msk.bf16.mxu0 %vm399_vm1, %v1233_v56  ;;  %v1207_v3 = vmax.f32 %v1105_v59, 0.0 }
 0x34a   :  { %v1107_v63 = vpop.f32.mrf.mxu1  ;;  %4417 = vmatmul.mubr.msk.bf16.gmra.mxu0 %vm399_vm1, %v1234_v57 }
 0x34b   :  { %v1108_v0 = vadd.f32 %v5102_v29, %v1107_v63  ;;  %v1210_v1 = vmax.f32 %v1116_v61, 0.0 }
 0x34c   :  { %v4386_v2 = vpop.f32.mrf.mxu1 }
 0x34d   :  { %v1208_v4 = vmax.f32 %v1108_v0, 0.0  ;;  %v1236_v8 = vpack.c.bf16 %v1210_v1, %v1209_v5  ;;  %v1129_v9 = vadd.f32 %v4386_v2, %v5102_v29 }
 0x34e   :  { %v1120_v6 = vpop.f32.mrf.mxu1 }
 0x34f   :  { %v1235_v7 = vpack.c.bf16 %v1208_v4, %v1207_v3  ;;  %v1121_v11 = vadd.f32 %v5102_v29, %v1120_v6  ;;  %v1213_v15 = vmax.f32 %v1129_v9, 0.0 }
 0x350   :  { %v4387_v10 = vpop.f32.mrf.mxu1 }
 0x351   :  { %v1132_v12 = vadd.f32 %v4387_v10, %v5102_v29  ;;  %4420 = vmatprep.mubr.msk.bf16.mxu0 %vm399_vm1, %v1235_v7  ;;  %v1211_v18 = vmax.f32 %v1121_v11, 0.0 }
 0x352   :  { %v1123_v13 = vpop.f32.mrf.mxu1  ;;  %4421 = vmatmul.mubr.msk.bf16.gmra.mxu0 %vm399_vm1, %v1236_v8 }
 0x353   :  { %v1124_v14 = vadd.f32 %v5102_v29, %v1123_v13  ;;  %v1214_v16 = vmax.f32 %v1132_v12, 0.0 }
 0x354   :  { %v4390_v17 = vpop.f32.mrf.mxu1 }
 0x355   :  { %v1212_v19 = vmax.f32 %v1124_v14, 0.0  ;;  %v1145_v20 = vadd.f32 %v4390_v17, %v5102_v29  ;;  %v1238_v24 = vpack.c.bf16 %v1214_v16, %v1213_v15  ;;  %v4667_v14 = vld [vmem:[%s5784_s3 + $0xb8] sm:$0xff]   ;;  %v4668_v15 = vld [vmem:[%s5784_s3 + $0xb0] sm:$0xff]   ;;  %v4670_v16 = vld [vmem:[%s5784_s3 + $0xa0] sm:$0xff]  }
 0x356   :  { %v1136_v21 = vpop.f32.mrf.mxu1  ;;  %4484 = vmatprep.subr.bf16.mxu0 %v4667_v14 }
 0x357   :  { %v1237_v22 = vpack.c.bf16 %v1212_v19, %v1211_v18  ;;  %v1137_v23 = vadd.f32 %v5102_v29, %v1136_v21  ;;  %v1217_v26 = vmax.f32 %v1145_v20, 0.0  ;;  %4485 = vmatpush3.bf16.msra.mxu0 %v4667_v14  ;;  %v5167_v19 = vld [vmem:[%s5786_s4 + $0x3] ss:$0 sm:$0xff] }
 0x358   :  { %v4391_v25 = vpop.f32.mrf.mxu1  ;;  %4486 = vmatprep.subr.bf16.mxu0 %v4668_v15 }
 0x359   :  { %v1148_v39 = vadd.f32 %v4391_v25, %v5102_v29  ;;  %4424 = vmatprep.mubr.msk.bf16.mxu0 %vm399_vm1, %v1237_v22  ;;  %v1215_v28 = vmax.f32 %v1137_v23, 0.0 }
 0x35a   :  { %v1139_v27 = vpop.f32.mrf.mxu1  ;;  %4425 = vmatmul.mubr.msk.bf16.gmra.mxu0 %vm399_vm1, %v1238_v24 }
 0x35b   :  { %v1218_v30 = vmax.f32 %v1148_v39, 0.0  ;;  %v1140_v31 = vadd.f32 %v5102_v29, %v1139_v27  ;;  %4487 = vmatpush3.bf16.msra.mxu0 %v4668_v15 }
 0x35c   :  { %v4394_v32 = vpop.f32.mrf.mxu1 }
 0x35d   :  { %v1216_v33 = vmax.f32 %v1140_v31, 0.0  ;;  %v1240_v34 = vpack.c.bf16 %v1218_v30, %v1217_v26  ;;  %v1161_v35 = vadd.f32 %v4394_v32, %v5102_v29 }
 0x35e   :  { %v1152_v49 = vpop.f32.mrf.mxu1 }
 0x35f   :  { %v1239_v36 = vpack.c.bf16 %v1216_v33, %v1215_v28  ;;  %v1153_v37 = vadd.f32 %v5102_v29, %v1152_v49  ;;  %v1221_v41 = vmax.f32 %v1161_v35, 0.0 }
 0x360   :  { %v4395_v38 = vpop.f32.mrf.mxu1 }
 0x361   :  { %v1164_v40 = vadd.f32 %v4395_v38, %v5102_v29  ;;  %4428 = vmatprep.mubr.msk.bf16.mxu0 %vm399_vm1, %v1239_v36  ;;  %v1219_v43 = vmax.f32 %v1153_v37, 0.0 }
 0x362   :  { %v1155_v42 = vpop.f32.mrf.mxu1  ;;  %4429 = vmatmul.mubr.msk.bf16.gmra.mxu0 %vm399_vm1, %v1240_v34 }
 0x363   :  { %v1222_v44 = vmax.f32 %v1164_v40, 0.0  ;;  %v1156_v45 = vadd.f32 %v5102_v29, %v1155_v42 }
 0x364   :  { %v4398_v60 = vpop.f32.mrf.mxu1 }
 0x365   :  { %v1220_v46 = vmax.f32 %v1156_v45, 0.0  ;;  %v1242_v47 = vpack.c.bf16 %v1222_v44, %v1221_v41  ;;  %v1177_v48 = vadd.f32 %v4398_v60, %v5102_v29 }
 0x366   :  { %v1168_v50 = vpop.f32.mrf.mxu1 }
 0x367   :  { %v1241_v51 = vpack.c.bf16 %v1220_v46, %v1219_v43  ;;  %v1169_v52 = vadd.f32 %v5102_v29, %v1168_v50  ;;  %v1225_v55 = vmax.f32 %v1177_v48, 0.0 }
 0x368   :  { %v4399_v53 = vpop.f32.mrf.mxu1 }
 0x369   :  { %v1180_v54 = vadd.f32 %v4399_v53, %v5102_v29  ;;  %4432 = vmatprep.mubr.msk.bf16.mxu0 %vm399_vm1, %v1241_v51  ;;  %v1223_v57 = vmax.f32 %v1169_v52, 0.0 }
 0x36a   :  { %v1171_v56 = vpop.f32.mrf.mxu1  ;;  %4433 = vmatmul.mubr.msk.bf16.gmra.mxu0 %vm399_vm1, %v1242_v47 }
 0x36b   :  { %v1226_v58 = vmax.f32 %v1180_v54, 0.0  ;;  %v1172_v59 = vadd.f32 %v5102_v29, %v1171_v56 }
 0x36c   :  { %v4402_v61 = vpop.f32.mrf.mxu1 }
 0x36d   :  { %v1224_v62 = vmax.f32 %v1172_v59, 0.0  ;;  %v1244_v63 = vpack.c.bf16 %v1226_v58, %v1225_v55  ;;  %v1193_v0 = vadd.f32 %v4402_v61, %v5102_v29 }
 0x36e   :  { %v1184_v1 = vpop.f32.mrf.mxu1 }
 0x36f   :  { %v1243_v2 = vpack.c.bf16 %v1224_v62, %v1223_v57  ;;  %v1185_v3 = vadd.f32 %v5102_v29, %v1184_v1  ;;  %v1229_v6 = vmax.f32 %v1193_v0, 0.0 }
 0x370   :  { %v4403_v4 = vpop.f32.mrf.mxu1 }
 0x371   :  { %v1196_v5 = vadd.f32 %v4403_v4, %v5102_v29  ;;  %4436 = vmatprep.mubr.msk.bf16.mxu0 %vm399_vm1, %v1243_v2  ;;  %v1227_v8 = vmax.f32 %v1185_v3, 0.0 }
 0x372   :  { %v1187_v7 = vpop.f32.mrf.mxu1  ;;  %4437 = vmatmul.mubr.msk.bf16.gmra.mxu0 %vm399_vm1, %v1244_v63 }
 0x373   :  { %v1230_v9 = vmax.f32 %v1196_v5, 0.0  ;;  %v1188_v10 = vadd.f32 %v5102_v29, %v1187_v7  ;;  %v4669_v29 = vld [vmem:[%s5784_s3 + $0xa8] sm:$0xff]  }
 0x374   :  { %4488 = vmatprep.subr.bf16.mxu0 %v4669_v29 }
 0x375   :  { %v1228_v11 = vmax.f32 %v1188_v10, 0.0  ;;  %v1246_v12 = vpack.c.bf16 %v1230_v9, %v1229_v6  ;;  %4489 = vmatpush3.bf16.msra.mxu0 %v4669_v29 }
 0x376   :  { %4490 = vmatprep.subr.bf16.mxu0 %v4670_v16 }
 0x377   :  { %v1245_v13 = vpack.c.bf16 %v1228_v11, %v1227_v8 }
 0x379   :  { %4440 = vmatprep.mubr.msk.bf16.mxu0 %vm399_vm1, %v1245_v13  ;;  %4491 = vmatpush3.bf16.msra.mxu0 %v4670_v16 }
 0x37a   :  { %4441 = vmatmul.mubr.msk.bf16.gmra.mxu0 %vm399_vm1, %v1246_v12 }
 0x402   :  { %v4414_v17 = vpop.f32.mrf.mxu0 }
 0x403   :  { %v1376_v23 = vadd.f32 %v4414_v17, %v5167_v19 }
 0x404   :  { %v1367_v18 = vpop.f32.mrf.mxu0 }
 0x405   :  { %v1368_v21 = vadd.f32 %v5167_v19, %v1367_v18  ;;  %v1496_v30 = vmax.f32 %v1376_v23, 0.0 }
 0x406   :  { %v4415_v20 = vpop.f32.mrf.mxu0 }
 0x407   :  { %v1379_v22 = vadd.f32 %v4415_v20, %v5167_v19  ;;  %v1494_v27 = vmax.f32 %v1368_v21, 0.0 }
 0x408   :  { %v1370_v24 = vpop.f32.mrf.mxu0 }
 0x409   :  { %v1371_v25 = vadd.f32 %v5167_v19, %v1370_v24  ;;  %v1497_v39 = vmax.f32 %v1379_v22, 0.0 }
 0x40a   :  { %v4418_v26 = vpop.f32.mrf.mxu0 }
 0x40b   :  { %v1495_v28 = vmax.f32 %v1371_v25, 0.0  ;;  %v1527_v33 = vpack.c.bf16 %v1497_v39, %v1496_v30  ;;  %v1392_v36 = vadd.f32 %v4418_v26, %v5167_v19 }
 0x40c   :  { %v1383_v31 = vpop.f32.mrf.mxu0 }
 0x40d   :  { %v1526_v32 = vpack.c.bf16 %v1495_v28, %v1494_v27  ;;  %v1384_v35 = vadd.f32 %v5167_v19, %v1383_v31  ;;  %v1500_v44 = vmax.f32 %v1392_v36, 0.0 }
 0x40e   :  { %v4419_v34 = vpop.f32.mrf.mxu0 }
 0x40f   :  { %v1395_v49 = vadd.f32 %v4419_v34, %v5167_v19  ;;  %4452 = vmatprep.mubr.msk.bf16.mxu1 %vm399_vm1, %v1526_v32  ;;  %v1498_v42 = vmax.f32 %v1384_v35, 0.0 }
 0x410   :  { %v1386_v37 = vpop.f32.mrf.mxu0  ;;  %4453 = vmatmul.mubr.msk.bf16.vlgmr.msra.gmra.mxu1 %vm399_vm1, %v1527_v33 }
 0x411   :  { %v1387_v38 = vadd.f32 %v5167_v19, %v1386_v37  ;;  %v1501_v40 = vmax.f32 %v1395_v49, 0.0 }
 0x412   :  { %v4422_v41 = vpop.f32.mrf.mxu0 }
 0x413   :  { %v1499_v43 = vmax.f32 %v1387_v38, 0.0  ;;  %v1529_v46 = vpack.c.bf16 %v1501_v40, %v1500_v44  ;;  %v1408_v51 = vadd.f32 %v4422_v41, %v5167_v19 }
 0x414   :  { %v1399_v45 = vpop.f32.mrf.mxu0 }
 0x415   :  { %v1528_v60 = vpack.c.bf16 %v1499_v43, %v1498_v42  ;;  %v1400_v48 = vadd.f32 %v5167_v19, %v1399_v45  ;;  %v1504_v58 = vmax.f32 %v1408_v51, 0.0 }
 0x416   :  { %v4423_v47 = vpop.f32.mrf.mxu0 }
 0x417   :  { %v1411_v50 = vadd.f32 %v4423_v47, %v5167_v19  ;;  %4456 = vmatprep.mubr.msk.bf16.mxu1 %vm399_vm1, %v1528_v60  ;;  %v1502_v56 = vmax.f32 %v1400_v48, 0.0 }
 0x418   :  { %v1402_v52 = vpop.f32.mrf.mxu0  ;;  %4457 = vmatmul.mubr.msk.bf16.gmra.mxu1 %vm399_vm1, %v1529_v46 }
 0x419   :  { %v1403_v53 = vadd.f32 %v5167_v19, %v1402_v52  ;;  %v1505_v54 = vmax.f32 %v1411_v50, 0.0 }
 0x41a   :  { %v4426_v55 = vpop.f32.mrf.mxu0 }
 0x41b   :  { %v1503_v57 = vmax.f32 %v1403_v53, 0.0  ;;  %v1531_v62 = vpack.c.bf16 %v1505_v54, %v1504_v58  ;;  %v1424_v2 = vadd.f32 %v4426_v55, %v5167_v19 }
 0x41c   :  { %v1415_v59 = vpop.f32.mrf.mxu0 }
 0x41d   :  { %v1530_v61 = vpack.c.bf16 %v1503_v57, %v1502_v56  ;;  %v1416_v0 = vadd.f32 %v5167_v19, %v1415_v59  ;;  %v1508_v9 = vmax.f32 %v1424_v2, 0.0 }
 0x41e   :  { %v4427_v63 = vpop.f32.mrf.mxu0 }
 0x41f   :  { %v1427_v1 = vadd.f32 %v4427_v63, %v5167_v19  ;;  %4460 = vmatprep.mubr.msk.bf16.mxu1 %vm399_vm1, %v1530_v61  ;;  %v1506_v7 = vmax.f32 %v1416_v0, 0.0 }
 0x420   :  { %v1418_v3 = vpop.f32.mrf.mxu0  ;;  %4461 = vmatmul.mubr.msk.bf16.gmra.mxu1 %vm399_vm1, %v1531_v62 }
 0x421   :  { %v1419_v4 = vadd.f32 %v5167_v19, %v1418_v3  ;;  %v1509_v5 = vmax.f32 %v1427_v1, 0.0 }
 0x422   :  { %v4430_v6 = vpop.f32.mrf.mxu0 }
 0x423   :  { %v1507_v8 = vmax.f32 %v1419_v4, 0.0  ;;  %v1533_v12 = vpack.c.bf16 %v1509_v5, %v1508_v9  ;;  %v1440_v13 = vadd.f32 %v4430_v6, %v5167_v19  ;;  %v4671_v4 = vld [vmem:[%s5784_s3 + $0xd8] sm:$0xff]   ;;  %v4672_v5 = vld [vmem:[%s5784_s3 + $0xd0] sm:$0xff]   ;;  %v4674_v6 = vld [vmem:[%s5784_s3 + $0xc0] sm:$0xff]  }
 0x424   :  { %v1431_v10 = vpop.f32.mrf.mxu0  ;;  %4524 = vmatprep.subr.bf16.mxu1 %v4671_v4  ;;  %v5232_v9 = vld [vmem:[%s5786_s4 + $0x4] ss:$0 sm:$0xff] }
 0x425   :  { %v1532_v11 = vpack.c.bf16 %v1507_v8, %v1506_v7  ;;  %v1432_v15 = vadd.f32 %v5167_v19, %v1431_v10  ;;  %v1512_v18 = vmax.f32 %v1440_v13, 0.0  ;;  %4525 = vmatpush3.bf16.msra.mxu1 %v4671_v4 }
 0x426   :  { %v4431_v14 = vpop.f32.mrf.mxu0  ;;  %4526 = vmatprep.subr.bf16.mxu1 %v4672_v5 }
 0x427   :  { %v1443_v29 = vadd.f32 %v4431_v14, %v5167_v19  ;;  %4464 = vmatprep.mubr.msk.bf16.mxu1 %vm399_vm1, %v1532_v11  ;;  %v1510_v22 = vmax.f32 %v1432_v15, 0.0 }
 0x428   :  { %v1434_v16 = vpop.f32.mrf.mxu0  ;;  %4465 = vmatmul.mubr.msk.bf16.gmra.mxu1 %vm399_vm1, %v1533_v12 }
 0x429   :  { %v1435_v17 = vadd.f32 %v5167_v19, %v1434_v16  ;;  %v1513_v20 = vmax.f32 %v1443_v29, 0.0  ;;  %4527 = vmatpush3.bf16.msra.mxu1 %v4672_v5 }
 0x42a   :  { %v4434_v21 = vpop.f32.mrf.mxu0 }
 0x42b   :  { %v1511_v23 = vmax.f32 %v1435_v17, 0.0  ;;  %v1456_v24 = vadd.f32 %v4434_v21, %v5167_v19  ;;  %v1535_v27 = vpack.c.bf16 %v1513_v20, %v1512_v18 }
 0x42c   :  { %v1447_v25 = vpop.f32.mrf.mxu0 }
 0x42d   :  { %v1534_v39 = vpack.c.bf16 %v1511_v23, %v1510_v22  ;;  %v1448_v26 = vadd.f32 %v5167_v19, %v1447_v25  ;;  %v1516_v31 = vmax.f32 %v1456_v24, 0.0 }
 0x42e   :  { %v4435_v28 = vpop.f32.mrf.mxu0 }
 0x42f   :  { %v1459_v30 = vadd.f32 %v4435_v28, %v5167_v19  ;;  %4468 = vmatprep.mubr.msk.bf16.mxu1 %vm399_vm1, %v1534_v39  ;;  %v1514_v33 = vmax.f32 %v1448_v26, 0.0 }
 0x430   :  { %v1450_v32 = vpop.f32.mrf.mxu0  ;;  %4469 = vmatmul.mubr.msk.bf16.gmra.mxu1 %vm399_vm1, %v1535_v27 }
 0x431   :  { %v1517_v34 = vmax.f32 %v1459_v30, 0.0  ;;  %v1451_v35 = vadd.f32 %v5167_v19, %v1450_v32 }
 0x432   :  { %v4438_v49 = vpop.f32.mrf.mxu0 }
 0x433   :  { %v1515_v36 = vmax.f32 %v1451_v35, 0.0  ;;  %v1537_v37 = vpack.c.bf16 %v1517_v34, %v1516_v31  ;;  %v1472_v38 = vadd.f32 %v4438_v49, %v5167_v19 }
 0x434   :  { %v1463_v40 = vpop.f32.mrf.mxu0 }
 0x435   :  { %v1536_v41 = vpack.c.bf16 %v1515_v36, %v1514_v33  ;;  %v1464_v42 = vadd.f32 %v5167_v19, %v1463_v40  ;;  %v1520_v45 = vmax.f32 %v1472_v38, 0.0 }
 0x436   :  { %v4439_v43 = vpop.f32.mrf.mxu0 }
 0x437   :  { %v1475_v44 = vadd.f32 %v4439_v43, %v5167_v19  ;;  %4472 = vmatprep.mubr.msk.bf16.mxu1 %vm399_vm1, %v1536_v41  ;;  %v1518_v46 = vmax.f32 %v1464_v42, 0.0 }
 0x438   :  { %v1466_v60 = vpop.f32.mrf.mxu0  ;;  %4473 = vmatmul.mubr.msk.bf16.gmra.mxu1 %vm399_vm1, %v1537_v37 }
 0x439   :  { %v1521_v47 = vmax.f32 %v1475_v44, 0.0  ;;  %v1467_v48 = vadd.f32 %v5167_v19, %v1466_v60 }
 0x43a   :  { %v4442_v50 = vpop.f32.mrf.mxu0 }
 0x43b   :  { %v1519_v51 = vmax.f32 %v1467_v48, 0.0  ;;  %v1539_v52 = vpack.c.bf16 %v1521_v47, %v1520_v45  ;;  %v1488_v53 = vadd.f32 %v4442_v50, %v5167_v19 }
 0x43c   :  { %v1479_v54 = vpop.f32.mrf.mxu0 }
 0x43d   :  { %v1538_v55 = vpack.c.bf16 %v1519_v51, %v1518_v46  ;;  %v1480_v56 = vadd.f32 %v5167_v19, %v1479_v54  ;;  %v1524_v59 = vmax.f32 %v1488_v53, 0.0 }
 0x43e   :  { %v4443_v57 = vpop.f32.mrf.mxu0 }
 0x43f   :  { %v1491_v58 = vadd.f32 %v4443_v57, %v5167_v19  ;;  %4476 = vmatprep.mubr.msk.bf16.mxu1 %vm399_vm1, %v1538_v55  ;;  %v1522_v62 = vmax.f32 %v1480_v56, 0.0 }
 0x440   :  { %v1482_v61 = vpop.f32.mrf.mxu0  ;;  %4477 = vmatmul.mubr.msk.bf16.gmra.mxu1 %vm399_vm1, %v1539_v52 }
 0x441   :  { %v1525_v63 = vmax.f32 %v1491_v58, 0.0  ;;  %v1483_v0 = vadd.f32 %v5167_v19, %v1482_v61  ;;  %v4673_v19 = vld [vmem:[%s5784_s3 + $0xc8] sm:$0xff]  }
 0x442   :  { %4528 = vmatprep.subr.bf16.mxu1 %v4673_v19 }
 0x443   :  { %v1523_v1 = vmax.f32 %v1483_v0, 0.0  ;;  %v1541_v2 = vpack.c.bf16 %v1525_v63, %v1524_v59  ;;  %4529 = vmatpush3.bf16.msra.mxu1 %v4673_v19 }
 0x444   :  { %4530 = vmatprep.subr.bf16.mxu1 %v4674_v6 }
 0x445   :  { %v1540_v3 = vpack.c.bf16 %v1523_v1, %v1522_v62 }
 0x447   :  { %4480 = vmatprep.mubr.msk.bf16.mxu1 %vm399_vm1, %v1540_v3  ;;  %4531 = vmatpush3.bf16.msra.mxu1 %v4674_v6 }
 0x448   :  { %4481 = vmatmul.mubr.msk.bf16.gmra.mxu1 %vm399_vm1, %v1541_v2 }
 0x4d0   :  { %v4454_v7 = vpop.f32.mrf.mxu1 }
 0x4d1   :  { %v1671_v13 = vadd.f32 %v4454_v7, %v5232_v9 }
 0x4d2   :  { %v1662_v8 = vpop.f32.mrf.mxu1 }
 0x4d3   :  { %v1663_v11 = vadd.f32 %v5232_v9, %v1662_v8  ;;  %v1791_v20 = vmax.f32 %v1671_v13, 0.0 }
 0x4d4   :  { %v4455_v10 = vpop.f32.mrf.mxu1 }
 0x4d5   :  { %v1674_v12 = vadd.f32 %v4455_v10, %v5232_v9  ;;  %v1789_v17 = vmax.f32 %v1663_v11, 0.0 }
 0x4d6   :  { %v1665_v14 = vpop.f32.mrf.mxu1 }
 0x4d7   :  { %v1666_v15 = vadd.f32 %v5232_v9, %v1665_v14  ;;  %v1792_v29 = vmax.f32 %v1674_v12, 0.0 }
 0x4d8   :  { %v4458_v16 = vpop.f32.mrf.mxu1 }
 0x4d9   :  { %v1790_v18 = vmax.f32 %v1666_v15, 0.0  ;;  %v1822_v23 = vpack.c.bf16 %v1792_v29, %v1791_v20  ;;  %v1687_v26 = vadd.f32 %v4458_v16, %v5232_v9 }
 0x4da   :  { %v1678_v21 = vpop.f32.mrf.mxu1 }
 0x4db   :  { %v1821_v22 = vpack.c.bf16 %v1790_v18, %v1789_v17  ;;  %v1679_v25 = vadd.f32 %v5232_v9, %v1678_v21  ;;  %v1795_v34 = vmax.f32 %v1687_v26, 0.0 }
 0x4dc   :  { %v4459_v24 = vpop.f32.mrf.mxu1 }
 0x4dd   :  { %v1690_v39 = vadd.f32 %v4459_v24, %v5232_v9  ;;  %4492 = vmatprep.mubr.msk.bf16.mxu0 %vm399_vm1, %v1821_v22  ;;  %v1793_v32 = vmax.f32 %v1679_v25, 0.0 }
 0x4de   :  { %v1681_v27 = vpop.f32.mrf.mxu1  ;;  %4493 = vmatmul.mubr.msk.bf16.vlgmr.msra.gmra.mxu0 %vm399_vm1, %v1822_v23 }
 0x4df   :  { %v1682_v28 = vadd.f32 %v5232_v9, %v1681_v27  ;;  %v1796_v30 = vmax.f32 %v1690_v39, 0.0 }
 0x4e0   :  { %v4462_v31 = vpop.f32.mrf.mxu1 }
 0x4e1   :  { %v1794_v33 = vmax.f32 %v1682_v28, 0.0  ;;  %v1824_v36 = vpack.c.bf16 %v1796_v30, %v1795_v34  ;;  %v1703_v41 = vadd.f32 %v4462_v31, %v5232_v9 }
 0x4e2   :  { %v1694_v35 = vpop.f32.mrf.mxu1 }
 0x4e3   :  { %v1823_v49 = vpack.c.bf16 %v1794_v33, %v1793_v32  ;;  %v1695_v38 = vadd.f32 %v5232_v9, %v1694_v35  ;;  %v1799_v47 = vmax.f32 %v1703_v41, 0.0 }
 0x4e4   :  { %v4463_v37 = vpop.f32.mrf.mxu1 }
 0x4e5   :  { %v1706_v40 = vadd.f32 %v4463_v37, %v5232_v9  ;;  %4496 = vmatprep.mubr.msk.bf16.mxu0 %vm399_vm1, %v1823_v49  ;;  %v1797_v60 = vmax.f32 %v1695_v38, 0.0 }
 0x4e6   :  { %v1697_v42 = vpop.f32.mrf.mxu1  ;;  %4497 = vmatmul.mubr.msk.bf16.gmra.mxu0 %vm399_vm1, %v1824_v36 }
 0x4e7   :  { %v1698_v43 = vadd.f32 %v5232_v9, %v1697_v42  ;;  %v1800_v44 = vmax.f32 %v1706_v40, 0.0 }
 0x4e8   :  { %v4466_v45 = vpop.f32.mrf.mxu1 }
 0x4e9   :  { %v1798_v46 = vmax.f32 %v1698_v43, 0.0  ;;  %v1826_v51 = vpack.c.bf16 %v1800_v44, %v1799_v47  ;;  %v1719_v55 = vadd.f32 %v4466_v45, %v5232_v9 }
 0x4ea   :  { %v1710_v48 = vpop.f32.mrf.mxu1 }
 0x4eb   :  { %v1825_v50 = vpack.c.bf16 %v1798_v46, %v1797_v60  ;;  %v1711_v53 = vadd.f32 %v5232_v9, %v1710_v48  ;;  %v1803_v63 = vmax.f32 %v1719_v55, 0.0 }
 0x4ec   :  { %v4467_v52 = vpop.f32.mrf.mxu1 }
 0x4ed   :  { %v1722_v54 = vadd.f32 %v4467_v52, %v5232_v9  ;;  %4500 = vmatprep.mubr.msk.bf16.mxu0 %vm399_vm1, %v1825_v50  ;;  %v1801_v61 = vmax.f32 %v1711_v53, 0.0 }
 0x4ee   :  { %v1713_v56 = vpop.f32.mrf.mxu1  ;;  %4501 = vmatmul.mubr.msk.bf16.gmra.mxu0 %vm399_vm1, %v1826_v51 }
 0x4ef   :  { %v1714_v57 = vadd.f32 %v5232_v9, %v1713_v56  ;;  %v1804_v58 = vmax.f32 %v1722_v54, 0.0 }
 0x4f0   :  { %v4470_v59 = vpop.f32.mrf.mxu1 }
 0x4f1   :  { %v1802_v62 = vmax.f32 %v1714_v57, 0.0  ;;  %v1828_v2 = vpack.c.bf16 %v1804_v58, %v1803_v63  ;;  %v1735_v19 = vadd.f32 %v4470_v59, %v5232_v9  ;;  %v4675_v57 = vld [vmem:[%s5787_s5 + $0x48] ss:$12 sps:$4 sm:$0xff]   ;;  %v4677_v58 = vld [vmem:[%s5787_s5 + $0x4c] ss:$12 sps:$4 sm:$0xff]  }
 0x4f2   :  { %v1726_v0 = vpop.f32.mrf.mxu1  ;;  %v4680_v59 = vld [vmem:[%s5787_s5 + $0x34] ss:$12 sps:$4 sm:$0xff]   ;;  %2580 = vmatprep.subr.bf16.mxu0 %v4677_v58  ;;  %v4681_v63 = vld [vmem:[%s5787_s5 + $0x18] ss:$12 sps:$4 sm:$0xff]  }
 0x4f3   :  { %v1827_v1 = vpack.c.bf16 %v1802_v62, %v1801_v61  ;;  %v1727_v4 = vadd.f32 %v5232_v9, %v1726_v0  ;;  %v1807_v13 = vmax.f32 %v1735_v19, 0.0  ;;  %2581 = vmatpush1.bf16.msra.mxu0 %v4675_v57  ;;  %v4683_v61 = vld [vmem:[%s5787_s5 + $0x1c] ss:$12 sps:$4 sm:$0xff]   ;;  %v4686_v0 = vld [vmem:[%s5787_s5 + $0x4] ss:$12 sps:$4 sm:$0xff]  }
 0x4f4   :  { %v4471_v3 = vpop.f32.mrf.mxu1  ;;  %2582 = vmatprep.subr.bf16.mxu0 %v4680_v59  ;;  %v4687_v62 = vld [vmem:[%s5787_s5 + $0x50] ss:$12 sps:$4 sm:$0xff]  }
 0x4f5   :  { %v1738_v5 = vadd.f32 %v4471_v3, %v5232_v9  ;;  %4504 = vmatprep.mubr.msk.bf16.mxu0 %vm399_vm1, %v1827_v1  ;;  %v1805_v11 = vmax.f32 %v1727_v4, 0.0  ;;  %4564 = vmatprep.subr.bf16.mxu1 %v4687_v62  ;;  %v4684_v1 = vld [vmem:[%s5787_s5] ss:$12 sps:$4 sm:$0xff]   ;;  %v5312_v4 = vld [vmem:[%s5786_s4 + $0x5] ss:$0 sm:$0xff] }
 0x4f6   :  { %v1729_v6 = vpop.f32.mrf.mxu1  ;;  %4505 = vmatmul.mubr.msk.bf16.gmra.mxu0 %vm399_vm1, %v1828_v2 }
 0x4f7   :  { %v1730_v7 = vadd.f32 %v5232_v9, %v1729_v6  ;;  %v1808_v8 = vmax.f32 %v1738_v5, 0.0 }
 0x4f8   :  { %v4474_v10 = vpop.f32.mrf.mxu1 }
 0x4f9   :  { %v1806_v12 = vmax.f32 %v1730_v7, 0.0  ;;  %v1830_v16 = vpack.c.bf16 %v1808_v8, %v1807_v13  ;;  %v1751_v17 = vadd.f32 %v4474_v10, %v5232_v9 }
 0x4fa   :  { %v1742_v14 = vpop.f32.mrf.mxu1 }
 0x4fb   :  { %v1829_v15 = vpack.c.bf16 %v1806_v12, %v1805_v11  ;;  %v1743_v29 = vadd.f32 %v5232_v9, %v1742_v14  ;;  %v1811_v24 = vmax.f32 %v1751_v17, 0.0 }
 0x4fc   :  { %v4475_v18 = vpop.f32.mrf.mxu1 }
 0x4fd   :  { %v1754_v20 = vadd.f32 %v4475_v18, %v5232_v9  ;;  %4508 = vmatprep.mubr.msk.bf16.mxu0 %vm399_vm1, %v1829_v15  ;;  %v1809_v22 = vmax.f32 %v1743_v29, 0.0 }
 0x4fe   :  { %v1745_v21 = vpop.f32.mrf.mxu1  ;;  %4509 = vmatmul.mubr.msk.bf16.gmra.mxu0 %vm399_vm1, %v1830_v16 }
 0x4ff   :  { %v1746_v23 = vadd.f32 %v5232_v9, %v1745_v21  ;;  %v1812_v25 = vmax.f32 %v1754_v20, 0.0 }
 0x500   :  { %v4478_v39 = vpop.f32.mrf.mxu1 }
 0x501   :  { %v1810_v26 = vmax.f32 %v1746_v23, 0.0  ;;  %v1767_v27 = vadd.f32 %v4478_v39, %v5232_v9  ;;  %v1832_v32 = vpack.c.bf16 %v1812_v25, %v1811_v24 }
 0x502   :  { %v1758_v28 = vpop.f32.mrf.mxu1 }
 0x503   :  { %v1831_v30 = vpack.c.bf16 %v1810_v26, %v1809_v22  ;;  %v1759_v31 = vadd.f32 %v5232_v9, %v1758_v28  ;;  %v1815_v35 = vmax.f32 %v1767_v27, 0.0 }
 0x504   :  { %v4479_v33 = vpop.f32.mrf.mxu1 }
 0x505   :  { %v1770_v34 = vadd.f32 %v4479_v33, %v5232_v9  ;;  %4512 = vmatprep.mubr.msk.bf16.mxu0 %vm399_vm1, %v1831_v30  ;;  %v1813_v36 = vmax.f32 %v1759_v31, 0.0 }
 0x506   :  { %v1761_v49 = vpop.f32.mrf.mxu1  ;;  %4513 = vmatmul.mubr.msk.bf16.gmra.mxu0 %vm399_vm1, %v1832_v32 }
 0x507   :  { %v1816_v37 = vmax.f32 %v1770_v34, 0.0  ;;  %v1762_v38 = vadd.f32 %v5232_v9, %v1761_v49 }
 0x508   :  { %v4482_v40 = vpop.f32.mrf.mxu1 }
 0x509   :  { %v1814_v41 = vmax.f32 %v1762_v38, 0.0  ;;  %v1834_v42 = vpack.c.bf16 %v1816_v37, %v1815_v35  ;;  %v1783_v43 = vadd.f32 %v4482_v40, %v5232_v9 }
 0x50a   :  { %v1774_v44 = vpop.f32.mrf.mxu1 }
 0x50b   :  { %v1833_v45 = vpack.c.bf16 %v1814_v41, %v1813_v36  ;;  %v1775_v60 = vadd.f32 %v5232_v9, %v1774_v44  ;;  %v1819_v48 = vmax.f32 %v1783_v43, 0.0 }
 0x50c   :  { %v4483_v46 = vpop.f32.mrf.mxu1 }
 0x50d   :  { %v1786_v47 = vadd.f32 %v4483_v46, %v5232_v9  ;;  %4516 = vmatprep.mubr.msk.bf16.mxu0 %vm399_vm1, %v1833_v45  ;;  %v1817_v51 = vmax.f32 %v1775_v60, 0.0 }
 0x50e   :  { %v1777_v50 = vpop.f32.mrf.mxu1  ;;  %4517 = vmatmul.mubr.msk.bf16.gmra.mxu0 %vm399_vm1, %v1834_v42 }
 0x50f   :  { %v1820_v52 = vmax.f32 %v1786_v47, 0.0  ;;  %v1778_v53 = vadd.f32 %v5232_v9, %v1777_v50  ;;  %v4678_v9 = vld [vmem:[%s5787_s5 + $0x30] ss:$12 sps:$4 sm:$0xff]  }
 0x510   :  { %2583 = vmatpush1.bf16.msra.mxu0 %v4678_v9 }
 0x511   :  { %v1818_v54 = vmax.f32 %v1778_v53, 0.0  ;;  %v1836_v55 = vpack.c.bf16 %v1820_v52, %v1819_v48  ;;  %2584 = vmatprep.subr.bf16.mxu0 %v4683_v61 }
 0x513   :  { %v1835_v56 = vpack.c.bf16 %v1818_v54, %v1817_v51 }
 0x514   :  { %2585 = vmatpush1.bf16.msra.mxu0 %v4681_v63 }
 0x515   :  { %4520 = vmatprep.mubr.msk.bf16.mxu0 %vm399_vm1, %v1835_v56  ;;  %2586 = vmatprep.subr.bf16.mxu0 %v4686_v0 }
 0x516   :  { %4521 = vmatmul.mubr.msk.bf16.gmra.mxu0 %vm399_vm1, %v1836_v55 }
 0x518   :  { %2587 = vmatpush1.bf16.msra.mxu0 %v4684_v1 }
 0x59e   :  { %v4494_v2 = vpop.f32.mrf.mxu0 }
 0x59f   :  { %v1966_v7 = vadd.f32 %v4494_v2, %v5312_v4 }
 0x5a0   :  { %v1957_v3 = vpop.f32.mrf.mxu0 }
 0x5a1   :  { %v1958_v19 = vadd.f32 %v5312_v4, %v1957_v3  ;;  %v2086_v15 = vmax.f32 %v1966_v7, 0.0 }
 0x5a2   :  { %v4495_v5 = vpop.f32.mrf.mxu0 }
 0x5a3   :  { %v1969_v6 = vadd.f32 %v4495_v5, %v5312_v4  ;;  %v2084_v13 = vmax.f32 %v1958_v19, 0.0 }
 0x5a4   :  { %v1960_v8 = vpop.f32.mrf.mxu0 }
 0x5a5   :  { %v1961_v10 = vadd.f32 %v5312_v4, %v1960_v8  ;;  %v2087_v11 = vmax.f32 %v1969_v6, 0.0 }
 0x5a6   :  { %v4498_v12 = vpop.f32.mrf.mxu0 }
 0x5a7   :  { %v2085_v14 = vmax.f32 %v1961_v10, 0.0  ;;  %v2117_v17 = vpack.c.bf16 %v2087_v11, %v2086_v15  ;;  %v1982_v22 = vadd.f32 %v4498_v12, %v5312_v4 }
 0x5a8   :  { %v1973_v29 = vpop.f32.mrf.mxu0 }
 0x5a9   :  { %v2116_v16 = vpack.c.bf16 %v2085_v14, %v2084_v13  ;;  %v1974_v20 = vadd.f32 %v5312_v4, %v1973_v29  ;;  %v2090_v28 = vmax.f32 %v1982_v22, 0.0 }
 0x5aa   :  { %v4499_v18 = vpop.f32.mrf.mxu0 }
 0x5ab   :  { %v1985_v21 = vadd.f32 %v4499_v18, %v5312_v4  ;;  %4532 = vmatprep.mubr.msk.bf16.mxu1 %vm399_vm1, %v2116_v16  ;;  %v2088_v26 = vmax.f32 %v1974_v20, 0.0 }
 0x5ac   :  { %v1976_v23 = vpop.f32.mrf.mxu0  ;;  %4533 = vmatmul.mubr.msk.bf16.vlgmr.msra.gmra.mxu1 %vm399_vm1, %v2117_v17 }
 0x5ad   :  { %v1977_v24 = vadd.f32 %v5312_v4, %v1976_v23  ;;  %4565 = vmatpush3.bf16.msra.mxu1 %v4687_v62  ;;  %v2091_v25 = vmax.f32 %v1985_v21, 0.0 }
 0x5ae   :  { %v4502_v39 = vpop.f32.mrf.mxu0 }
 0x5af   :  { %v2089_v27 = vmax.f32 %v1977_v24, 0.0  ;;  %v2119_v32 = vpack.c.bf16 %v2091_v25, %v2090_v28  ;;  %v1998_v49 = vadd.f32 %v4502_v39, %v5312_v4 }
 0x5b0   :  { %v1989_v30 = vpop.f32.mrf.mxu0 }
 0x5b1   :  { %v2118_v31 = vpack.c.bf16 %v2089_v27, %v2088_v26  ;;  %v1990_v34 = vadd.f32 %v5312_v4, %v1989_v30  ;;  %v2094_v43 = vmax.f32 %v1998_v49, 0.0 }
 0x5b2   :  { %v4503_v33 = vpop.f32.mrf.mxu0 }
 0x5b3   :  { %v2001_v35 = vadd.f32 %v4503_v33, %v5312_v4  ;;  %4536 = vmatprep.mubr.msk.bf16.mxu1 %vm399_vm1, %v2118_v31  ;;  %v2092_v41 = vmax.f32 %v1990_v34, 0.0 }
 0x5b4   :  { %v1992_v36 = vpop.f32.mrf.mxu0  ;;  %4537 = vmatmul.mubr.msk.bf16.gmra.mxu1 %vm399_vm1, %v2119_v32 }
 0x5b5   :  { %v1993_v37 = vadd.f32 %v5312_v4, %v1992_v36  ;;  %v2095_v38 = vmax.f32 %v2001_v35, 0.0 }
 0x5b6   :  { %v4506_v40 = vpop.f32.mrf.mxu0 }
 0x5b7   :  { %v2093_v42 = vmax.f32 %v1993_v37, 0.0  ;;  %v2121_v60 = vpack.c.bf16 %v2095_v38, %v2094_v43  ;;  %v2014_v50 = vadd.f32 %v4506_v40, %v5312_v4 }
 0x5b8   :  { %v2005_v44 = vpop.f32.mrf.mxu0 }
 0x5b9   :  { %v2120_v45 = vpack.c.bf16 %v2093_v42, %v2092_v41  ;;  %v2006_v47 = vadd.f32 %v5312_v4, %v2005_v44  ;;  %v2098_v57 = vmax.f32 %v2014_v50, 0.0 }
 0x5ba   :  { %v4507_v46 = vpop.f32.mrf.mxu0 }
 0x5bb   :  { %v2017_v48 = vadd.f32 %v4507_v46, %v5312_v4  ;;  %4540 = vmatprep.mubr.msk.bf16.mxu1 %vm399_vm1, %v2120_v45  ;;  %v2096_v55 = vmax.f32 %v2006_v47, 0.0 }
 0x5bc   :  { %v2008_v51 = vpop.f32.mrf.mxu0  ;;  %4541 = vmatmul.mubr.msk.bf16.gmra.mxu1 %vm399_vm1, %v2121_v60 }
 0x5bd   :  { %v2009_v52 = vadd.f32 %v5312_v4, %v2008_v51  ;;  %v2099_v53 = vmax.f32 %v2017_v48, 0.0 }
 0x5be   :  { %v4510_v54 = vpop.f32.mrf.mxu0 }
 0x5bf   :  { %v2097_v56 = vmax.f32 %v2009_v52, 0.0  ;;  %v2123_v9 = vpack.c.bf16 %v2099_v53, %v2098_v57  ;;  %v2030_v0 = vadd.f32 %v4510_v54, %v5312_v4  ;;  %v4688_v52 = vld [vmem:[%s5787_s5 + $0x38] ss:$12 sps:$4 sm:$0xff]   ;;  %v4689_v53 = vld [vmem:[%s5787_s5 + $0x20] ss:$12 sps:$4 sm:$0xff]   ;;  %v4711_v54 = vmov 0  }
 0x5c0   :  { %v2021_v58 = vpop.f32.mrf.mxu0  ;;  %4566 = vmatprep.subr.bf16.mxu1 %v4688_v52  ;;  %2604 = vmatprep.mubr.bf16.mxu0 %v4711_v54  ;;  %v5375_v57 = vld [vmem:[%s5786_s4 + $0x6] ss:$0 sm:$0xff] }
 0x5c1   :  { %v2122_v59 = vpack.c.bf16 %v2097_v56, %v2096_v55  ;;  %v2022_v62 = vadd.f32 %v5312_v4, %v2021_v58  ;;  %v2102_v7 = vmax.f32 %v2030_v0, 0.0  ;;  %4567 = vmatpush3.bf16.msra.mxu1 %v4688_v52 }
 0x5c2   :  { %v4511_v61 = vpop.f32.mrf.mxu0  ;;  %4568 = vmatprep.subr.bf16.mxu1 %v4689_v53 }
 0x5c3   :  { %v2033_v63 = vadd.f32 %v4511_v61, %v5312_v4  ;;  %4544 = vmatprep.mubr.msk.bf16.mxu1 %vm399_vm1, %v2122_v59  ;;  %v2100_v19 = vmax.f32 %v2022_v62, 0.0 }
 0x5c4   :  { %v2024_v1 = vpop.f32.mrf.mxu0  ;;  %4545 = vmatmul.mubr.msk.bf16.gmra.mxu1 %vm399_vm1, %v2123_v9 }
 0x5c5   :  { %v2025_v2 = vadd.f32 %v5312_v4, %v2024_v1  ;;  %v2103_v3 = vmax.f32 %v2033_v63, 0.0  ;;  %4569 = vmatpush3.bf16.msra.mxu1 %v4689_v53  ;;  %v4691_v63 = vld [vmem:[%s5788_s7 + $0x78] sm:$0xff]  }
 0x5c6   :  { %v4514_v5 = vpop.f32.mrf.mxu0 }
 0x5c7   :  { %v2101_v6 = vmax.f32 %v2025_v2, 0.0  ;;  %v2125_v11 = vpack.c.bf16 %v2103_v3, %v2102_v7  ;;  %v2046_v15 = vadd.f32 %v4514_v5, %v5312_v4  ;;  %v4693_v3 = vld [vmem:[%s5788_s7 + $0x98] sm:$0xff]  }
 0x5c8   :  { %v2037_v8 = vpop.f32.mrf.mxu0  ;;  %4604 = vmatprep.subr.bf16.mxu0 %v4693_v3 }
 0x5c9   :  { %v2124_v10 = vpack.c.bf16 %v2101_v6, %v2100_v19  ;;  %v2038_v13 = vadd.f32 %v5312_v4, %v2037_v8  ;;  %v2106_v22 = vmax.f32 %v2046_v15, 0.0 }
 0x5ca   :  { %v4515_v12 = vpop.f32.mrf.mxu0 }
 0x5cb   :  { %v2049_v14 = vadd.f32 %v4515_v12, %v5312_v4  ;;  %4548 = vmatprep.mubr.msk.bf16.mxu1 %vm399_vm1, %v2124_v10  ;;  %v2104_v20 = vmax.f32 %v2038_v13, 0.0  ;;  %v4692_v10 = vld [vmem:[%s5788_s7 + $0x38] sm:$0xff]  }
 0x5cc   :  { %v2040_v29 = vpop.f32.mrf.mxu0  ;;  %4549 = vmatmul.mubr.msk.bf16.gmra.mxu1 %vm399_vm1, %v2125_v11 }
 0x5cd   :  { %v2041_v16 = vadd.f32 %v5312_v4, %v2040_v29  ;;  %v2107_v17 = vmax.f32 %v2049_v14, 0.0  ;;  %v4694_v14 = vld [vmem:[%s5788_s7 + $0x70] sm:$0xff]  }
 0x5ce   :  { %v4518_v18 = vpop.f32.mrf.mxu0 }
 0x5cf   :  { %v2105_v21 = vmax.f32 %v2041_v16, 0.0  ;;  %v2062_v23 = vadd.f32 %v4518_v18, %v5312_v4  ;;  %v2127_v26 = vpack.c.bf16 %v2107_v17, %v2106_v22  ;;  %v4695_v17 = vld [vmem:[%s5788_s7 + $0x30] sm:$0xff]  }
 0x5d0   :  { %v2053_v24 = vpop.f32.mrf.mxu0 }
 0x5d1   :  { %v2126_v25 = vpack.c.bf16 %v2105_v21, %v2104_v20  ;;  %v2054_v39 = vadd.f32 %v5312_v4, %v2053_v24  ;;  %v2110_v30 = vmax.f32 %v2062_v23, 0.0  ;;  %v4696_v20 = vld [vmem:[%s5788_s7 + $0x68] sm:$0xff]  }
 0x5d2   :  { %v4519_v27 = vpop.f32.mrf.mxu0 }
 0x5d3   :  { %v2065_v28 = vadd.f32 %v4519_v27, %v5312_v4  ;;  %4552 = vmatprep.mubr.msk.bf16.mxu1 %vm399_vm1, %v2126_v25  ;;  %v2108_v32 = vmax.f32 %v2054_v39, 0.0  ;;  %v4702_v25 = vld [vmem:[%s5788_s7 + $0x90] sm:$0xff]  }
 0x5d4   :  { %v2056_v31 = vpop.f32.mrf.mxu0  ;;  %4553 = vmatmul.mubr.msk.bf16.gmra.mxu1 %vm399_vm1, %v2127_v26 }
 0x5d5   :  { %v2111_v33 = vmax.f32 %v2065_v28, 0.0  ;;  %v2057_v34 = vadd.f32 %v5312_v4, %v2056_v31  ;;  %v4697_v28 = vld [vmem:[%s5788_s7 + $0x28] sm:$0xff]  }
 0x5d6   :  { %v4522_v35 = vpop.f32.mrf.mxu0 }
 0x5d7   :  { %v2109_v49 = vmax.f32 %v2057_v34, 0.0  ;;  %v2129_v36 = vpack.c.bf16 %v2111_v33, %v2110_v30  ;;  %v2078_v37 = vadd.f32 %v4522_v35, %v5312_v4 }
 0x5d8   :  { %v2069_v38 = vpop.f32.mrf.mxu0 }
 0x5d9   :  { %v2128_v40 = vpack.c.bf16 %v2109_v49, %v2108_v32  ;;  %v2070_v41 = vadd.f32 %v5312_v4, %v2069_v38  ;;  %v2114_v44 = vmax.f32 %v2078_v37, 0.0  ;;  %v4698_v32 = vld [vmem:[%s5788_s7 + $0x60] sm:$0xff]  }
 0x5da   :  { %v4523_v42 = vpop.f32.mrf.mxu0 }
 0x5db   :  { %v2081_v43 = vadd.f32 %v4523_v42, %v5312_v4  ;;  %4556 = vmatprep.mubr.msk.bf16.mxu1 %vm399_vm1, %v2128_v40  ;;  %v2112_v60 = vmax.f32 %v2070_v41, 0.0  ;;  %v4700_v40 = vld [vmem:[%s5788_s7 + $0x58] sm:$0xff]  }
 0x5dc   :  { %v2072_v45 = vpop.f32.mrf.mxu0  ;;  %4557 = vmatmul.mubr.msk.bf16.gmra.mxu1 %vm399_vm1, %v2129_v36  ;;  %v4699_v36 = vld [vmem:[%s5788_s7 + $0x20] sm:$0xff]  }
 0x5dd   :  { %v2115_v46 = vmax.f32 %v2081_v43, 0.0  ;;  %v2073_v47 = vadd.f32 %v5312_v4, %v2072_v45  ;;  %v4690_v4 = vld [vmem:[%s5787_s5 + $0x8] ss:$12 sps:$4 sm:$0xff]  }
 0x5de   :  { %4570 = vmatprep.subr.bf16.mxu1 %v4690_v4 }
 0x5df   :  { %v2113_v48 = vmax.f32 %v2073_v47, 0.0  ;;  %v2131_v50 = vpack.c.bf16 %v2115_v46, %v2114_v44  ;;  %4571 = vmatpush3.bf16.msra.mxu1 %v4690_v4  ;;  %v4701_v46 = vld [vmem:[%s5788_s7 + $0x18] sm:$0xff]  }
 0x5e0   :  { %4116 = vmatprep.subr.bf16.mxu1 %v4691_v63 }
 0x5e1   :  { %v2130_v51 = vpack.c.bf16 %v2113_v48, %v2112_v60 }
 0x5e3   :  { %4560 = vmatprep.mubr.msk.bf16.mxu1 %vm399_vm1, %v2130_v51 }
 0x5e4   :  { %4561 = vmatmul.mubr.msk.bf16.gmra.mxu1 %vm399_vm1, %v2131_v50  ;;  %v4703_v50 = vld [vmem:[%s5788_s7 + $0x50] sm:$0xff]  }
 0x66c   :  { %v4534_v55 = vpop.f32.mrf.mxu1 }
 0x66d   :  { %v2261_v61 = vadd.f32 %v4534_v55, %v5375_v57 }
 0x66e   :  { %v2252_v56 = vpop.f32.mrf.mxu1 }
 0x66f   :  { %v2253_v59 = vadd.f32 %v5375_v57, %v2252_v56  ;;  %v2381_v6 = vmax.f32 %v2261_v61, 0.0  ;;  %v4704_v56 = vld [vmem:[%s5788_s7 + $0x10] sm:$0xff]  }
 0x670   :  { %v4535_v58 = vpop.f32.mrf.mxu1 }
 0x671   :  { %v2264_v9 = vadd.f32 %v4535_v58, %v5375_v57  ;;  %v2379_v5 = vmax.f32 %v2253_v59, 0.0 }
 0x672   :  { %v2255_v62 = vpop.f32.mrf.mxu1 }
 0x673   :  { %v2256_v0 = vadd.f32 %v5375_v57, %v2255_v62  ;;  %v2382_v1 = vmax.f32 %v2264_v9, 0.0  ;;  %v4705_v9 = vld [vmem:[%s5788_s7 + $0x48] sm:$0xff]  }
 0x674   :  { %v4538_v2 = vpop.f32.mrf.mxu1 }
 0x675   :  { %v2380_v19 = vmax.f32 %v2256_v0, 0.0  ;;  %v2412_v11 = vpack.c.bf16 %v2382_v1, %v2381_v6  ;;  %v2277_v29 = vadd.f32 %v4538_v2, %v5375_v57  ;;  %v4706_v2 = vld [vmem:[%s5788_s7 + $0x8] sm:$0xff]  }
 0x676   :  { %v2268_v7 = vpop.f32.mrf.mxu1 }
 0x677   :  { %v2411_v8 = vpack.c.bf16 %v2380_v19, %v2379_v5  ;;  %v2269_v12 = vadd.f32 %v5375_v57, %v2268_v7  ;;  %v2385_v39 = vmax.f32 %v2277_v29, 0.0 }
 0x678   :  { %v4539_v13 = vpop.f32.mrf.mxu1 }
 0x679   :  { %v2280_v15 = vadd.f32 %v4539_v13, %v5375_v57  ;;  %3869 = vmatmul.mubr.msk.bf16.vlgmr.msra.gmra.mxu0 %vm399_vm1, %v2411_v8  ;;  %4572 = vmatprep.mubr.msk.bf16.mxu1 %vm399_vm1, %v2411_v8  ;;  %v2383_v21 = vmax.f32 %v2269_v12, 0.0 }
 0x67a   :  { %v2271_v16 = vpop.f32.mrf.mxu1  ;;  %4573 = vmatmul.mubr.msk.bf16.vlgmr.msra.gmra.mxu1 %vm399_vm1, %v2412_v11  ;;  %2614 = vmatprep.mubr.bf16.mxu0 %v4711_v54 }
 0x67b   :  { %v2272_v18 = vadd.f32 %v5375_v57, %v2271_v16  ;;  %4117 = vmatpush3.bf16.msra.mxu1 %v4692_v10  ;;  %4605 = vmatpush3.bf16.msra.mxu0 %v4693_v3  ;;  %v2386_v22 = vmax.f32 %v2280_v15, 0.0 }
 0x67c   :  { %v4542_v23 = vpop.f32.mrf.mxu1  ;;  %4118 = vmatprep.subr.bf16.mxu1 %v4694_v14  ;;  %4606 = vmatprep.subr.bf16.mxu0 %v4702_v25 }
 0x67d   :  { %v2384_v24 = vmax.f32 %v2272_v18, 0.0  ;;  %v2414_v30 = vpack.c.bf16 %v2386_v22, %v2385_v39  ;;  %v2293_v35 = vadd.f32 %v4542_v23, %v5375_v57 }
 0x67e   :  { %v2284_v26 = vpop.f32.mrf.mxu1 }
 0x67f   :  { %v2413_v27 = vpack.c.bf16 %v2384_v24, %v2383_v21  ;;  %4119 = vmatpush3.bf16.msra.mxu1 %v4695_v17  ;;  %4607 = vmatpush3.bf16.msra.mxu0 %v4702_v25  ;;  %v2285_v33 = vadd.f32 %v5375_v57, %v2284_v26  ;;  %v2389_v44 = vmax.f32 %v2293_v35, 0.0 }
 0x680   :  { %v4543_v31 = vpop.f32.mrf.mxu1  ;;  %4120 = vmatprep.subr.bf16.mxu1 %v4696_v20 }
 0x681   :  { %v2296_v34 = vadd.f32 %v4543_v31, %v5375_v57  ;;  %3870 = vmatmul.mubr.msk.bf16.gmra.mxu0 %vm399_vm1, %v2412_v11  ;;  %4576 = vmatprep.mubr.msk.bf16.mxu1 %vm399_vm1, %v2413_v27  ;;  %v2387_v42 = vmax.f32 %v2285_v33, 0.0 }
 0x682   :  { %v2287_v49 = vpop.f32.mrf.mxu1  ;;  %4577 = vmatmul.mubr.msk.bf16.gmra.mxu1 %vm399_vm1, %v2414_v30  ;;  %2624 = vmatprep.mubr.bf16.mxu0 %v4711_v54 }
 0x683   :  { %v2390_v37 = vmax.f32 %v2296_v34, 0.0  ;;  %v2288_v38 = vadd.f32 %v5375_v57, %v2287_v49  ;;  %4121 = vmatpush3.bf16.msra.mxu1 %v4697_v28 }
 0x684   :  { %v4546_v41 = vpop.f32.mrf.mxu1  ;;  %4122 = vmatprep.subr.bf16.mxu1 %v4698_v32 }
 0x685   :  { %v2388_v43 = vmax.f32 %v2288_v38, 0.0  ;;  %v5433_v47 = vpack.c.bf16 %v2390_v37, %v2389_v44  ;;  %v2309_v53 = vadd.f32 %v4546_v41, %v5375_v57 }
 0x686   :  { %v2300_v45 = vpop.f32.mrf.mxu1 }
 0x687   :  { %v2415_v60 = vpack.c.bf16 %v2388_v43, %v2387_v42  ;;  %4123 = vmatpush3.bf16.msra.mxu1 %v4699_v36  ;;  %v2301_v51 = vadd.f32 %v5375_v57, %v2300_v45  ;;  %v2393_v63 = vmax.f32 %v2309_v53, 0.0 }
 0x688   :  { %v4547_v48 = vpop.f32.mrf.mxu1  ;;  %4124 = vmatprep.subr.bf16.mxu1 %v4700_v40 }
 0x689   :  { %v2312_v52 = vadd.f32 %v4547_v48, %v5375_v57  ;;  %3871 = vmatmul.mubr.msk.bf16.gmra.mxu0 %vm399_vm1, %v2413_v27  ;;  %4580 = vmatprep.mubr.msk.bf16.mxu1 %vm399_vm1, %v2415_v60  ;;  %v2391_v61 = vmax.f32 %v2301_v51, 0.0 }
 0x68a   :  { %v2303_v4 = vpop.f32.mrf.mxu1  ;;  %4581 = vmatmul.mubr.msk.bf16.gmra.mxu1 %vm399_vm1, %v5433_v47  ;;  %2634 = vmatprep.mubr.bf16.mxu0 %v4711_v54 }
 0x68b   :  { %v2304_v55 = vadd.f32 %v5375_v57, %v2303_v4  ;;  %4125 = vmatpush3.bf16.msra.mxu1 %v4701_v46  ;;  %v2394_v58 = vmax.f32 %v2312_v52, 0.0 }
 0x68c   :  { %v4550_v59 = vpop.f32.mrf.mxu1  ;;  %4126 = vmatprep.subr.bf16.mxu1 %v4703_v50 }
 0x68d   :  { %v2392_v62 = vmax.f32 %v2304_v55, 0.0  ;;  %v5458_v3 = vpack.c.bf16 %v2394_v58, %v2393_v63  ;;  %v2325_v7 = vadd.f32 %v4550_v59, %v5375_v57  ;;  %v2445_v63 = vlaneseq }
 0x68e   :  { %v2316_v0 = vpop.f32.mrf.mxu1 }
 0x68f   :  { %v5453_v1 = vpack.c.bf16 %v2392_v62, %v2391_v61  ;;  %4127 = vmatpush3.bf16.msra.mxu1 %v4704_v56  ;;  %v2317_v19 = vadd.f32 %v5375_v57, %v2316_v0  ;;  %v2397_v15 = vmax.f32 %v2325_v7, 0.0  ;;  %v4708_v61 = vld [vmem:[%s5788_s7] sm:$0xff]   ;;  %v2446_v0 = vshrl.u32 %v2445_v63, 7 }
 0x690   :  { %v4551_v5 = vpop.f32.mrf.mxu1  ;;  %4128 = vmatprep.subr.bf16.mxu1 %v4705_v9  ;;  %v4707_v9 = vld [vmem:[%s5788_s7 + $0x40] sm:$0xff]  }
 0x691   :  { %v2328_v6 = vadd.f32 %v4551_v5, %v5375_v57  ;;  %3872 = vmatmul.mubr.msk.bf16.gmra.mxu0 %vm399_vm1, %v2414_v30  ;;  %4584 = vmatprep.mubr.msk.bf16.mxu1 %vm399_vm1, %v5453_v1  ;;  %v2395_v13 = vmax.f32 %v2317_v19, 0.0  ;;  %v4710_v62 = vld [vmem:[%s5788_s7 + $0x80] sm:$0xff]   ;;  %v2455_v5 = vsub.s32 2, %v2446_v0 }
 0x692   :  { %v2319_v8 = vpop.f32.mrf.mxu1  ;;  %4585 = vmatmul.mubr.msk.bf16.gmra.mxu1 %vm399_vm1, %v5458_v3  ;;  %2644 = vmatprep.mubr.bf16.mxu0 %v4711_v54 }
 0x693   :  { %v2320_v10 = vadd.f32 %v5375_v57, %v2319_v8  ;;  %4129 = vmatpush3.bf16.msra.mxu1 %v4706_v2  ;;  %v2398_v11 = vmax.f32 %v2328_v6, 0.0  ;;  %v2447_v2 = vsub.s32 0, %v2446_v0 }
 0x694   :  { %v4554_v12 = vpop.f32.mrf.mxu1  ;;  %4130 = vmatprep.subr.bf16.mxu1 %v4707_v9 }
 0x695   :  { %v2396_v14 = vmax.f32 %v2320_v10, 0.0  ;;  %v2420_v17 = vpack.c.bf16 %v2398_v11, %v2397_v15  ;;  %v2341_v22 = vadd.f32 %v4554_v12, %v5375_v57 }
 0x696   :  { %v2332_v29 = vpop.f32.mrf.mxu1 }
 0x697   :  { %v2419_v16 = vpack.c.bf16 %v2396_v14, %v2395_v13  ;;  %v2333_v20 = vadd.f32 %v5375_v57, %v2332_v29  ;;  %v2401_v28 = vmax.f32 %v2341_v22, 0.0  ;;  %4131 = vmatpush3.bf16.msra.mxu1 %v4708_v61 }
 0x698   :  { %v4555_v18 = vpop.f32.mrf.mxu1 }
 0x699   :  { %v2344_v21 = vadd.f32 %v4555_v18, %v5375_v57  ;;  %3873 = vmatmul.mubr.msk.bf16.gmra.mxu0 %vm399_vm1, %v2415_v60  ;;  %4588 = vmatprep.mubr.msk.bf16.mxu1 %vm399_vm1, %v2419_v16  ;;  %v2399_v26 = vmax.f32 %v2333_v20, 0.0 }
 0x69a   :  { %v2335_v23 = vpop.f32.mrf.mxu1  ;;  %4589 = vmatmul.mubr.msk.bf16.gmra.mxu1 %vm399_vm1, %v2420_v17  ;;  %2654 = vmatprep.mubr.bf16.mxu0 %v4711_v54 }
 0x69b   :  { %v2336_v24 = vadd.f32 %v5375_v57, %v2335_v23  ;;  %v2402_v25 = vmax.f32 %v2344_v21, 0.0 }
 0x69c   :  { %v4558_v39 = vpop.f32.mrf.mxu1 }
 0x69d   :  { %v2400_v27 = vmax.f32 %v2336_v24, 0.0  ;;  %v2422_v32 = vpack.c.bf16 %v2402_v25, %v2401_v28  ;;  %v2357_v49 = vadd.f32 %v4558_v39, %v5375_v57 }
 0x69e   :  { %v2348_v30 = vpop.f32.mrf.mxu1 }
 0x69f   :  { %v2421_v31 = vpack.c.bf16 %v2400_v27, %v2399_v26  ;;  %v2349_v34 = vadd.f32 %v5375_v57, %v2348_v30  ;;  %v2405_v43 = vmax.f32 %v2357_v49, 0.0 }
 0x6a0   :  { %v4559_v33 = vpop.f32.mrf.mxu1 }
 0x6a1   :  { %v2360_v35 = vadd.f32 %v4559_v33, %v5375_v57  ;;  %3874 = vmatmul.mubr.msk.bf16.gmra.mxu0 %vm399_vm1, %v5433_v47  ;;  %4592 = vmatprep.mubr.msk.bf16.mxu1 %vm399_vm1, %v2421_v31  ;;  %v2403_v41 = vmax.f32 %v2349_v34, 0.0 }
 0x6a2   :  { %v2351_v36 = vpop.f32.mrf.mxu1  ;;  %4593 = vmatmul.mubr.msk.bf16.gmra.mxu1 %vm399_vm1, %v2422_v32  ;;  %2664 = vmatprep.mubr.bf16.mxu0 %v4711_v54 }
 0x6a3   :  { %v2352_v37 = vadd.f32 %v5375_v57, %v2351_v36  ;;  %v2406_v38 = vmax.f32 %v2360_v35, 0.0 }
 0x6a4   :  { %v4562_v40 = vpop.f32.mrf.mxu1 }
 0x6a5   :  { %v2404_v42 = vmax.f32 %v2352_v37, 0.0  ;;  %v2373_v44 = vadd.f32 %v4562_v40, %v5375_v57  ;;  %v2424_v47 = vpack.c.bf16 %v2406_v38, %v2405_v43 }
 0x6a6   :  { %v2364_v45 = vpop.f32.mrf.mxu1 }
 0x6a7   :  { %v2423_v60 = vpack.c.bf16 %v2404_v42, %v2403_v41  ;;  %v2365_v46 = vadd.f32 %v5375_v57, %v2364_v45  ;;  %v2409_v51 = vmax.f32 %v2373_v44, 0.0 }
 0x6a8   :  { %v4563_v48 = vpop.f32.mrf.mxu1 }
 0x6a9   :  { %v2376_v50 = vadd.f32 %v4563_v48, %v5375_v57  ;;  %3875 = vmatmul.mubr.msk.bf16.gmra.mxu0 %vm399_vm1, %v5453_v1  ;;  %4596 = vmatprep.mubr.msk.bf16.mxu1 %vm399_vm1, %v2423_v60  ;;  %v2407_v53 = vmax.f32 %v2365_v46, 0.0  ;;  %v2451_v1 = vsub.s32 1, %v2446_v0 }
 0x6aa   :  { %v2367_v52 = vpop.f32.mrf.mxu1  ;;  %4597 = vmatmul.mubr.msk.bf16.gmra.mxu1 %vm399_vm1, %v2424_v47  ;;  %2674 = vmatprep.mubr.bf16.mxu0 %v4711_v54 }
 0x6ab   :  { %v2410_v4 = vmax.f32 %v2376_v50, 0.0  ;;  %v2368_v55 = vadd.f32 %v5375_v57, %v2367_v52  ;;  %v4709_v57 = vld [vmem:[%s5788_s7 + $0x88] sm:$0xff]  }
 0x6ac   :  { %4608 = vmatprep.subr.bf16.mxu0 %v4709_v57 }
 0x6ad   :  { %v2408_v56 = vmax.f32 %v2368_v55, 0.0  ;;  %v2426_v58 = vpack.c.bf16 %v2410_v4, %v2409_v51  ;;  %4609 = vmatpush3.bf16.msra.mxu0 %v4709_v57 }
 0x6ae   :  { %4610 = vmatprep.subr.bf16.mxu0 %v4710_v62 }
 0x6af   :  { %v2425_v59 = vpack.c.bf16 %v2408_v56, %v2407_v53 }
 0x6b1   :  { %3876 = vmatmul.mubr.msk.bf16.gmra.mxu0 %vm399_vm1, %v5458_v3  ;;  %4600 = vmatprep.mubr.msk.bf16.mxu1 %vm399_vm1, %v2425_v59  ;;  %v2443_v3 = vld [vmem:[%s5789_s6] sm:$0x7] }
 0x6b2   :  { %4601 = vmatmul.mubr.msk.bf16.gmra.mxu1 %vm399_vm1, %v2426_v58  ;;  %2684 = vmatprep.mubr.bf16.mxu0 %v4711_v54  ;;  %v5531_v7 = vrot.slane %v2443_v3, %v2451_v1  ;;  %v5533_v8 = vrot.slane %v2443_v3, %v2447_v2  ;;  %v5535_v11 = vrot.slane %v2443_v3, %v2455_v5 }
 0x6b3   :  { %4611 = vmatpush3.bf16.msra.mxu0 %v4710_v62 }
 0x6b9   :  { %3877 = vmatmul.mubr.msk.bf16.gmra.mxu0 %vm399_vm1, %v2419_v16 }
 0x6ba   :  { %2694 = vmatprep.mubr.bf16.mxu0 %v4711_v54 }
 0x6c1   :  { %3878 = vmatmul.mubr.msk.bf16.gmra.mxu0 %vm399_vm1, %v2420_v17 }
 0x6c2   :  { %2704 = vmatprep.mubr.bf16.mxu0 %v4711_v54 }
 0x6c9   :  { %3879 = vmatmul.mubr.msk.bf16.gmra.mxu0 %vm399_vm1, %v2421_v31 }
 0x6ca   :  { %2714 = vmatprep.mubr.bf16.mxu0 %v4711_v54 }
 0x6d1   :  { %3880 = vmatmul.mubr.msk.bf16.gmra.mxu0 %vm399_vm1, %v2422_v32 }
 0x6d2   :  { %2724 = vmatprep.mubr.bf16.mxu0 %v4711_v54 }
 0x6d9   :  { %3881 = vmatmul.mubr.msk.bf16.gmra.mxu0 %vm399_vm1, %v2423_v60 }
 0x6da   :  { %2734 = vmatprep.mubr.bf16.mxu0 %v4711_v54 }
 0x6e1   :  { %3882 = vmatmul.mubr.msk.bf16.gmra.mxu0 %vm399_vm1, %v2424_v47 }
 0x6e2   :  { %2744 = vmatprep.mubr.bf16.mxu0 %v4711_v54 }
 0x6e9   :  { %3883 = vmatmul.mubr.msk.bf16.gmra.mxu0 %vm399_vm1, %v2425_v59 }
 0x6ea   :  { %2754 = vmatprep.mubr.bf16.mxu0 %v4711_v54 }
 0x6f1   :  { %3884 = vmatmul.mubr.msk.bf16.gmra.mxu0 %vm399_vm1, %v2426_v58 }
 0x739   :  { %v2606_v19 = vpop.f32.mrf.mxu0 }
 0x73a   :  { %v4574_v6 = vpop.f32.mrf.mxu1  ;;  %v2607_v29 = vadd.f32 %v2606_v19, %v5533_v8 }
 0x73b   :  { %v2608_v10 = vpop.f32.mrf.mxu0  ;;  %v2808_v20 = vadd.f32 %v4574_v6, %v5535_v11 }
 0x73c   :  { %v2799_v54 = vpop.f32.mrf.mxu1  ;;  %v2609_v13 = vadd.f32 %v2608_v10, %v5531_v7  ;;  %v2926_v30 = vmax.f32 %v2607_v29, 0.0 }
 0x73d   :  { %v2610_v12 = vpop.f32.mrf.mxu0  ;;  %v2800_v16 = vadd.f32 %v2799_v54, %v5535_v11  ;;  %v2934_v34 = vmax.f32 %v2808_v20, 0.0 }
 0x73e   :  { %v2611_v14 = vadd.f32 %v2610_v12, %v5533_v8  ;;  %v4575_v15 = vpop.f32.mrf.mxu1  ;;  %v2927_v39 = vmax.f32 %v2609_v13, 0.0 }
 0x73f   :  { %v2811_v17 = vadd.f32 %v4575_v15, %v5535_v11  ;;  %v2612_v18 = vpop.f32.mrf.mxu0  ;;  %v2928_v31 = vmax.f32 %v2800_v16, 0.0 }
 0x740   :  { %v2613_v21 = vadd.f32 %v2612_v18, %v5531_v7  ;;  %v2802_v22 = vpop.f32.mrf.mxu1  ;;  %v2929_v23 = vmax.f32 %v2611_v14, 0.0 }
 0x741   :  { %v2803_v24 = vadd.f32 %v2802_v22, %v5535_v11  ;;  %v2616_v25 = vpop.f32.mrf.mxu0  ;;  %v2937_v26 = vmax.f32 %v2811_v17, 0.0 }
 0x742   :  { %v2930_v27 = vmax.f32 %v2613_v21, 0.0  ;;  %v4578_v28 = vpop.f32.mrf.mxu1  ;;  %v3022_v36 = vpack.c.bf16 %v2929_v23, %v2926_v30  ;;  %v2617_v44 = vadd.f32 %v2616_v25, %v5533_v8 }
 0x743   :  { %v2931_v32 = vmax.f32 %v2803_v24, 0.0  ;;  %v2618_v33 = vpop.f32.mrf.mxu0  ;;  %v3027_v40 = vpack.c.bf16 %v2937_v26, %v2934_v34  ;;  %v2824_v47 = vadd.f32 %v4578_v28, %v5535_v11 }
 0x744   :  { %v3023_v35 = vpack.c.bf16 %v2930_v27, %v2927_v39  ;;  %v2815_v49 = vpop.f32.mrf.mxu1  ;;  %v2619_v41 = vadd.f32 %v2618_v33, %v5531_v7  ;;  %v2932_v59 = vmax.f32 %v2617_v44, 0.0 }
 0x745   :  { %v3024_v37 = vpack.c.bf16 %v2931_v32, %v2928_v31  ;;  %v2620_v38 = vpop.f32.mrf.mxu0  ;;  %v2816_v45 = vadd.f32 %v2815_v49, %v5535_v11  ;;  %v2946_v62 = vmax.f32 %v2824_v47, 0.0 }
 0x746   :  { %v2621_v42 = vadd.f32 %v2620_v38, %v5533_v8  ;;  %v4579_v43 = vpop.f32.mrf.mxu1  ;;  %3317 = vmatprep.mubr.bf16.mxu1 %v3023_v35  ;;  %v2933_v4 = vmax.f32 %v2619_v41, 0.0 }
 0x747   :  { %v2827_v60 = vadd.f32 %v4579_v43, %v5535_v11  ;;  %v2622_v46 = vpop.f32.mrf.mxu0  ;;  %3318 = vmatmul.mubr.bf16.vlgmr.msra.gmra.mxu1 %v3022_v36  ;;  %4612 = vmatprep.mubr.msk.bf16.mxu0 %vm399_vm1, %v3024_v37  ;;  %v2940_v57 = vmax.f32 %v2816_v45, 0.0 }
 0x748   :  { %v2623_v48 = vadd.f32 %v2622_v46, %v5531_v7  ;;  %v2818_v50 = vpop.f32.mrf.mxu1  ;;  %4613 = vmatmul.mubr.msk.bf16.vlgmr.msra.gmra.mxu0 %vm399_vm1, %v3027_v40  ;;  %v2935_v51 = vmax.f32 %v2621_v42, 0.0 }
 0x749   :  { %v2819_v52 = vadd.f32 %v2818_v50, %v5535_v11  ;;  %v2626_v53 = vpop.f32.mrf.mxu0  ;;  %v2949_v55 = vmax.f32 %v2827_v60, 0.0 }
 0x74a   :  { %v2936_v56 = vmax.f32 %v2623_v48, 0.0  ;;  %v4582_v58 = vpop.f32.mrf.mxu1  ;;  %v3025_v1 = vpack.c.bf16 %v2935_v51, %v2932_v59  ;;  %v2627_v54 = vadd.f32 %v2626_v53, %v5533_v8 }
 0x74b   :  { %v2943_v9 = vmax.f32 %v2819_v52, 0.0  ;;  %v2628_v61 = vpop.f32.mrf.mxu0  ;;  %v3033_v5 = vpack.c.bf16 %v2949_v55, %v2946_v62  ;;  %v2840_v15 = vadd.f32 %v4582_v58, %v5535_v11 }
 0x74c   :  { %v3026_v63 = vpack.c.bf16 %v2936_v56, %v2933_v4  ;;  %v2831_v0 = vpop.f32.mrf.mxu1  ;;  %v2629_v19 = vadd.f32 %v2628_v61, %v5531_v7  ;;  %v2938_v25 = vmax.f32 %v2627_v54, 0.0 }
 0x74d   :  { %v3030_v2 = vpack.c.bf16 %v2943_v9, %v2940_v57  ;;  %v2630_v3 = vpop.f32.mrf.mxu0  ;;  %v2832_v12 = vadd.f32 %v2831_v0, %v5535_v11  ;;  %v2958_v28 = vmax.f32 %v2840_v15, 0.0 }
 0x74e   :  { %v2631_v6 = vadd.f32 %v2630_v3, %v5533_v8  ;;  %v4583_v10 = vpop.f32.mrf.mxu1  ;;  %3325 = vmatprep.mubr.bf16.mxu1 %v3026_v63  ;;  %v2939_v21 = vmax.f32 %v2629_v19, 0.0 }
 0x74f   :  { %v2843_v13 = vadd.f32 %v4583_v10, %v5535_v11  ;;  %v2632_v14 = vpop.f32.mrf.mxu0  ;;  %3326 = vmatmul.mubr.bf16.gmra.mxu1 %v3025_v1  ;;  %4616 = vmatprep.mubr.msk.bf16.mxu0 %vm399_vm1, %v3030_v2  ;;  %v2952_v39 = vmax.f32 %v2832_v12, 0.0 }
 0x750   :  { %v2633_v29 = vadd.f32 %v2632_v14, %v5531_v7  ;;  %v2834_v16 = vpop.f32.mrf.mxu1  ;;  %4617 = vmatmul.mubr.msk.bf16.gmra.mxu0 %vm399_vm1, %v3033_v5  ;;  %v2941_v17 = vmax.f32 %v2631_v6, 0.0 }
 0x751   :  { %v2835_v18 = vadd.f32 %v2834_v16, %v5535_v11  ;;  %v2636_v20 = vpop.f32.mrf.mxu0  ;;  %v2961_v22 = vmax.f32 %v2843_v13, 0.0 }
 0x752   :  { %v2942_v23 = vmax.f32 %v2633_v29, 0.0  ;;  %v4586_v24 = vpop.f32.mrf.mxu1  ;;  %v3028_v32 = vpack.c.bf16 %v2941_v17, %v2938_v25  ;;  %v2637_v38 = vadd.f32 %v2636_v20, %v5533_v8 }
 0x753   :  { %v2955_v26 = vmax.f32 %v2835_v18, 0.0  ;;  %v2638_v27 = vpop.f32.mrf.mxu0  ;;  %v3039_v35 = vpack.c.bf16 %v2961_v22, %v2958_v28  ;;  %v2856_v43 = vadd.f32 %v4586_v24, %v5535_v11 }
 0x754   :  { %v3029_v30 = vpack.c.bf16 %v2942_v23, %v2939_v21  ;;  %v2847_v31 = vpop.f32.mrf.mxu1  ;;  %v2639_v49 = vadd.f32 %v2638_v27, %v5531_v7  ;;  %v2944_v53 = vmax.f32 %v2637_v38, 0.0 }
 0x755   :  { %v3036_v33 = vpack.c.bf16 %v2955_v26, %v2952_v39  ;;  %v2640_v34 = vpop.f32.mrf.mxu0  ;;  %v2848_v40 = vadd.f32 %v2847_v31, %v5535_v11  ;;  %v2970_v58 = vmax.f32 %v2856_v43, 0.0 }
 0x756   :  { %v2641_v36 = vadd.f32 %v2640_v34, %v5533_v8  ;;  %v4587_v37 = vpop.f32.mrf.mxu1  ;;  %3333 = vmatprep.mubr.bf16.mxu1 %v3029_v30  ;;  %v2945_v48 = vmax.f32 %v2639_v49, 0.0 }
 0x757   :  { %v2859_v41 = vadd.f32 %v4587_v37, %v5535_v11  ;;  %v2642_v42 = vpop.f32.mrf.mxu0  ;;  %3334 = vmatmul.mubr.bf16.gmra.mxu1 %v3028_v32  ;;  %4620 = vmatprep.mubr.msk.bf16.mxu0 %vm399_vm1, %v3036_v33  ;;  %v2964_v4 = vmax.f32 %v2848_v40, 0.0 }
 0x758   :  { %v2643_v44 = vadd.f32 %v2642_v42, %v5531_v7  ;;  %v2850_v45 = vpop.f32.mrf.mxu1  ;;  %4621 = vmatmul.mubr.msk.bf16.gmra.mxu0 %vm399_vm1, %v3039_v35  ;;  %v2947_v60 = vmax.f32 %v2641_v36, 0.0 }
 0x759   :  { %v2851_v46 = vadd.f32 %v2850_v45, %v5535_v11  ;;  %v2646_v47 = vpop.f32.mrf.mxu0  ;;  %v2973_v50 = vmax.f32 %v2859_v41, 0.0 }
 0x75a   :  { %v2948_v51 = vmax.f32 %v2643_v44, 0.0  ;;  %v4590_v52 = vpop.f32.mrf.mxu1  ;;  %v3031_v9 = vpack.c.bf16 %v2947_v60, %v2944_v53  ;;  %v2647_v3 = vadd.f32 %v2646_v47, %v5533_v8 }
 0x75b   :  { %v2967_v55 = vmax.f32 %v2851_v46, 0.0  ;;  %v2648_v56 = vpop.f32.mrf.mxu0  ;;  %v3045_v63 = vpack.c.bf16 %v2973_v50, %v2970_v58  ;;  %v2872_v10 = vadd.f32 %v4590_v52, %v5535_v11 }
 0x75c   :  { %v3032_v59 = vpack.c.bf16 %v2948_v51, %v2945_v48  ;;  %v2863_v57 = vpop.f32.mrf.mxu1  ;;  %v2649_v0 = vadd.f32 %v2648_v56, %v5531_v7  ;;  %v2950_v20 = vmax.f32 %v2647_v3, 0.0 }
 0x75d   :  { %v3042_v61 = vpack.c.bf16 %v2967_v55, %v2964_v4  ;;  %v2650_v62 = vpop.f32.mrf.mxu0  ;;  %v2864_v5 = vadd.f32 %v2863_v57, %v5535_v11  ;;  %v2982_v24 = vmax.f32 %v2872_v10, 0.0 }
 0x75e   :  { %v2651_v1 = vadd.f32 %v2650_v62, %v5533_v8  ;;  %v4591_v2 = vpop.f32.mrf.mxu1  ;;  %3341 = vmatprep.mubr.bf16.mxu1 %v3032_v59  ;;  %v2951_v29 = vmax.f32 %v2649_v0, 0.0 }
 0x75f   :  { %v2875_v19 = vadd.f32 %v4591_v2, %v5535_v11  ;;  %v2652_v6 = vpop.f32.mrf.mxu0  ;;  %3342 = vmatmul.mubr.bf16.gmra.mxu1 %v3031_v9  ;;  %4624 = vmatprep.mubr.msk.bf16.mxu0 %vm399_vm1, %v3042_v61  ;;  %v2976_v21 = vmax.f32 %v2864_v5, 0.0 }
 0x760   :  { %v2653_v54 = vadd.f32 %v2652_v6, %v5531_v7  ;;  %v2866_v12 = vpop.f32.mrf.mxu1  ;;  %4625 = vmatmul.mubr.msk.bf16.gmra.mxu0 %vm399_vm1, %v3045_v63  ;;  %v2953_v13 = vmax.f32 %v2651_v1, 0.0 }
 0x761   :  { %v2867_v14 = vadd.f32 %v2866_v12, %v5535_v11  ;;  %v2656_v15 = vpop.f32.mrf.mxu0  ;;  %v2985_v16 = vmax.f32 %v2875_v19, 0.0 }
 0x762   :  { %v2954_v17 = vmax.f32 %v2653_v54, 0.0  ;;  %v4594_v18 = vpop.f32.mrf.mxu1  ;;  %v3034_v26 = vpack.c.bf16 %v2953_v13, %v2950_v20  ;;  %v2657_v34 = vadd.f32 %v2656_v15, %v5533_v8 }
 0x763   :  { %v2979_v22 = vmax.f32 %v2867_v14, 0.0  ;;  %v2658_v23 = vpop.f32.mrf.mxu0  ;;  %v3051_v30 = vpack.c.bf16 %v2985_v16, %v2982_v24  ;;  %v2888_v37 = vadd.f32 %v4594_v18, %v5535_v11 }
 0x764   :  { %v3035_v25 = vpack.c.bf16 %v2954_v17, %v2951_v29  ;;  %v2879_v39 = vpop.f32.mrf.mxu1  ;;  %v2659_v31 = vadd.f32 %v2658_v23, %v5531_v7  ;;  %v2956_v47 = vmax.f32 %v2657_v34, 0.0 }
 0x765   :  { %v3048_v27 = vpack.c.bf16 %v2979_v22, %v2976_v21  ;;  %v2660_v28 = vpop.f32.mrf.mxu0  ;;  %v2880_v35 = vadd.f32 %v2879_v39, %v5535_v11  ;;  %v2994_v52 = vmax.f32 %v2888_v37, 0.0 }
 0x766   :  { %v2661_v32 = vadd.f32 %v2660_v28, %v5533_v8  ;;  %v4595_v33 = vpop.f32.mrf.mxu1  ;;  %3349 = vmatprep.mubr.bf16.mxu1 %v3035_v25  ;;  %v2957_v44 = vmax.f32 %v2659_v31, 0.0 }
 0x767   :  { %v2891_v49 = vadd.f32 %v4595_v33, %v5535_v11  ;;  %v2662_v36 = vpop.f32.mrf.mxu0  ;;  %3350 = vmatmul.mubr.bf16.gmra.mxu1 %v3034_v26  ;;  %4628 = vmatprep.mubr.msk.bf16.mxu0 %vm399_vm1, %v3048_v27  ;;  %v2988_v48 = vmax.f32 %v2880_v35, 0.0 }
 0x768   :  { %v2663_v38 = vadd.f32 %v2662_v36, %v5531_v7  ;;  %v2882_v40 = vpop.f32.mrf.mxu1  ;;  %4629 = vmatmul.mubr.msk.bf16.gmra.mxu0 %vm399_vm1, %v3051_v30  ;;  %v2959_v41 = vmax.f32 %v2661_v32, 0.0 }
 0x769   :  { %v2883_v42 = vadd.f32 %v2882_v40, %v5535_v11  ;;  %v2666_v43 = vpop.f32.mrf.mxu0  ;;  %v2997_v45 = vmax.f32 %v2891_v49, 0.0 }
 0x76a   :  { %v2960_v60 = vmax.f32 %v2663_v38, 0.0  ;;  %v4598_v46 = vpop.f32.mrf.mxu1  ;;  %v3037_v55 = vpack.c.bf16 %v2959_v41, %v2956_v47  ;;  %v2667_v62 = vadd.f32 %v2666_v43, %v5533_v8 }
 0x76b   :  { %v2991_v50 = vmax.f32 %v2883_v42, 0.0  ;;  %v2668_v51 = vpop.f32.mrf.mxu0  ;;  %v3057_v59 = vpack.c.bf16 %v2997_v45, %v2994_v52  ;;  %v2904_v2 = vadd.f32 %v4598_v46, %v5535_v11 }
 0x76c   :  { %v3038_v53 = vpack.c.bf16 %v2960_v60, %v2957_v44  ;;  %v2895_v4 = vpop.f32.mrf.mxu1  ;;  %v2669_v57 = vadd.f32 %v2668_v51, %v5531_v7  ;;  %v2962_v15 = vmax.f32 %v2667_v62, 0.0 }
 0x76d   :  { %v3054_v56 = vpack.c.bf16 %v2991_v50, %v2988_v48  ;;  %v2670_v58 = vpop.f32.mrf.mxu0  ;;  %v2896_v63 = vadd.f32 %v2895_v4, %v5535_v11  ;;  %v3006_v18 = vmax.f32 %v2904_v2, 0.0 }
 0x76e   :  { %v2671_v9 = vadd.f32 %v2670_v58, %v5533_v8  ;;  %v4599_v61 = vpop.f32.mrf.mxu1  ;;  %3357 = vmatprep.mubr.bf16.mxu1 %v3038_v53  ;;  %v2963_v54 = vmax.f32 %v2669_v57, 0.0 }
 0x76f   :  { %v2907_v0 = vadd.f32 %v4599_v61, %v5535_v11  ;;  %v2672_v1 = vpop.f32.mrf.mxu0  ;;  %3358 = vmatmul.mubr.bf16.gmra.mxu1 %v3037_v55  ;;  %4632 = vmatprep.mubr.msk.bf16.mxu0 %vm399_vm1, %v3054_v56  ;;  %v3000_v29 = vmax.f32 %v2896_v63, 0.0 }
 0x770   :  { %v2673_v3 = vadd.f32 %v2672_v1, %v5531_v7  ;;  %v2898_v5 = vpop.f32.mrf.mxu1  ;;  %4633 = vmatmul.mubr.msk.bf16.gmra.mxu0 %vm399_vm1, %v3057_v59  ;;  %v2965_v19 = vmax.f32 %v2671_v9, 0.0 }
 0x771   :  { %v2899_v6 = vadd.f32 %v2898_v5, %v5535_v11  ;;  %v2676_v10 = vpop.f32.mrf.mxu0  ;;  %v3009_v12 = vmax.f32 %v2907_v0, 0.0 }
 0x772   :  { %v2966_v13 = vmax.f32 %v2673_v3, 0.0  ;;  %v4602_v14 = vpop.f32.mrf.mxu1  ;;  %v3040_v22 = vpack.c.bf16 %v2965_v19, %v2962_v15  ;;  %v2677_v28 = vadd.f32 %v2676_v10, %v5533_v8 }
 0x773   :  { %v3003_v16 = vmax.f32 %v2899_v6, 0.0  ;;  %v2678_v17 = vpop.f32.mrf.mxu0  ;;  %v3063_v25 = vpack.c.bf16 %v3009_v12, %v3006_v18  ;;  %v2920_v33 = vadd.f32 %v4602_v14, %v5535_v11 }
 0x774   :  { %v3041_v20 = vpack.c.bf16 %v2966_v13, %v2963_v54  ;;  %v2911_v21 = vpop.f32.mrf.mxu1  ;;  %v2679_v39 = vadd.f32 %v2678_v17, %v5531_v7  ;;  %v2968_v42 = vmax.f32 %v2677_v28, 0.0 }
 0x775   :  { %v3060_v23 = vpack.c.bf16 %v3003_v16, %v3000_v29  ;;  %v2680_v24 = vpop.f32.mrf.mxu0  ;;  %v2912_v30 = vadd.f32 %v2911_v21, %v5535_v11  ;;  %v3018_v60 = vmax.f32 %v2920_v33, 0.0 }
 0x776   :  { %v2681_v26 = vadd.f32 %v2680_v24, %v5533_v8  ;;  %v4603_v27 = vpop.f32.mrf.mxu1  ;;  %3365 = vmatprep.mubr.bf16.mxu1 %v3041_v20  ;;  %v2969_v38 = vmax.f32 %v2679_v39, 0.0 }
 0x777   :  { %v2923_v31 = vadd.f32 %v4603_v27, %v5535_v11  ;;  %v2682_v32 = vpop.f32.mrf.mxu0  ;;  %3366 = vmatmul.mubr.bf16.gmra.mxu1 %v3040_v22  ;;  %4636 = vmatprep.mubr.msk.bf16.mxu0 %vm399_vm1, %v3060_v23  ;;  %v3012_v43 = vmax.f32 %v2912_v30, 0.0 }
 0x778   :  { %v2683_v34 = vadd.f32 %v2682_v32, %v5531_v7  ;;  %v2914_v35 = vpop.f32.mrf.mxu1  ;;  %4637 = vmatmul.mubr.msk.bf16.gmra.mxu0 %vm399_vm1, %v3063_v25  ;;  %v2971_v49 = vmax.f32 %v2681_v26, 0.0 }
 0x779   :  { %v2915_v36 = vadd.f32 %v2914_v35, %v5535_v11  ;;  %v2686_v37 = vpop.f32.mrf.mxu0  ;;  %v3021_v40 = vmax.f32 %v2923_v31, 0.0 }
 0x77a   :  { %v2972_v41 = vmax.f32 %v2683_v34, 0.0  ;;  %v3043_v47 = vpack.c.bf16 %v2971_v49, %v2968_v42  ;;  %v2687_v11 = vadd.f32 %v2686_v37, %v5533_v8 }
 0x77b   :  { %v3015_v44 = vmax.f32 %v2915_v36, 0.0  ;;  %v2688_v45 = vpop.f32.mrf.mxu0  ;;  %v3069_v51 = vpack.c.bf16 %v3021_v40, %v3018_v60 }
 0x77c   :  { %v3044_v46 = vpack.c.bf16 %v2972_v41, %v2969_v38  ;;  %v2689_v52 = vadd.f32 %v2688_v45, %v5531_v7  ;;  %v2974_v9 = vmax.f32 %v2687_v11, 0.0 }
 0x77d   :  { %v3066_v48 = vpack.c.bf16 %v3015_v44, %v3012_v43  ;;  %v2690_v50 = vpop.f32.mrf.mxu0 }
 0x77e   :  { %v2691_v53 = vadd.f32 %v2690_v50, %v5533_v8  ;;  %3373 = vmatprep.mubr.bf16.mxu1 %v3044_v46  ;;  %v2975_v59 = vmax.f32 %v2689_v52, 0.0 }
 0x77f   :  { %v2692_v4 = vpop.f32.mrf.mxu0  ;;  %3374 = vmatmul.mubr.bf16.gmra.mxu1 %v3043_v47  ;;  %4640 = vmatprep.mubr.msk.bf16.mxu0 %vm399_vm1, %v3066_v48 }
 0x780   :  { %v2693_v55 = vadd.f32 %v2692_v4, %v5531_v7  ;;  %4641 = vmatmul.mubr.msk.bf16.gmra.mxu0 %vm399_vm1, %v3069_v51  ;;  %v2977_v56 = vmax.f32 %v2691_v53, 0.0 }
 0x781   :  { %v2696_v58 = vpop.f32.mrf.mxu0 }
 0x782   :  { %v2978_v57 = vmax.f32 %v2693_v55, 0.0  ;;  %v3046_v63 = vpack.c.bf16 %v2977_v56, %v2974_v9  ;;  %v2697_v3 = vadd.f32 %v2696_v58, %v5533_v8 }
 0x783   :  { %v2698_v61 = vpop.f32.mrf.mxu0 }
 0x784   :  { %v3047_v62 = vpack.c.bf16 %v2978_v57, %v2975_v59  ;;  %v2699_v1 = vadd.f32 %v2698_v61, %v5531_v7  ;;  %v2980_v13 = vmax.f32 %v2697_v3, 0.0 }
 0x785   :  { %v2700_v0 = vpop.f32.mrf.mxu0 }
 0x786   :  { %v2701_v2 = vadd.f32 %v2700_v0, %v5533_v8  ;;  %3381 = vmatprep.mubr.bf16.mxu1 %v3047_v62  ;;  %v2981_v54 = vmax.f32 %v2699_v1, 0.0 }
 0x787   :  { %v2702_v5 = vpop.f32.mrf.mxu0  ;;  %3382 = vmatmul.mubr.bf16.gmra.mxu1 %v3046_v63 }
 0x788   :  { %v2703_v19 = vadd.f32 %v2702_v5, %v5531_v7  ;;  %v2983_v6 = vmax.f32 %v2701_v2, 0.0 }
 0x789   :  { %v2706_v10 = vpop.f32.mrf.mxu0 }
 0x78a   :  { %v2984_v12 = vmax.f32 %v2703_v19, 0.0  ;;  %v3049_v29 = vpack.c.bf16 %v2983_v6, %v2980_v13  ;;  %v2707_v20 = vadd.f32 %v2706_v10, %v5533_v8 }
 0x78b   :  { %v2708_v14 = vpop.f32.mrf.mxu0 }
 0x78c   :  { %v3050_v15 = vpack.c.bf16 %v2984_v12, %v2981_v54  ;;  %v2709_v17 = vadd.f32 %v2708_v14, %v5531_v7  ;;  %v2986_v26 = vmax.f32 %v2707_v20, 0.0 }
 0x78d   :  { %v2710_v16 = vpop.f32.mrf.mxu0 }
 0x78e   :  { %v2711_v18 = vadd.f32 %v2710_v16, %v5533_v8  ;;  %3389 = vmatprep.mubr.bf16.mxu1 %v3050_v15  ;;  %v2987_v25 = vmax.f32 %v2709_v17, 0.0 }
 0x78f   :  { %v2712_v21 = vpop.f32.mrf.mxu0  ;;  %3390 = vmatmul.mubr.bf16.gmra.mxu1 %v3049_v29 }
 0x790   :  { %v2713_v22 = vadd.f32 %v2712_v21, %v5531_v7  ;;  %v2989_v23 = vmax.f32 %v2711_v18, 0.0 }
 0x791   :  { %v2716_v24 = vpop.f32.mrf.mxu0 }
 0x792   :  { %v2990_v39 = vmax.f32 %v2713_v22, 0.0  ;;  %v3052_v30 = vpack.c.bf16 %v2989_v23, %v2986_v26  ;;  %v2717_v34 = vadd.f32 %v2716_v24, %v5533_v8 }
 0x793   :  { %v2718_v27 = vpop.f32.mrf.mxu0 }
 0x794   :  { %v3053_v28 = vpack.c.bf16 %v2990_v39, %v2987_v25  ;;  %v2719_v32 = vadd.f32 %v2718_v27, %v5531_v7  ;;  %v2992_v41 = vmax.f32 %v2717_v34, 0.0 }
 0x795   :  { %v2720_v31 = vpop.f32.mrf.mxu0 }
 0x796   :  { %v2721_v33 = vadd.f32 %v2720_v31, %v5533_v8  ;;  %3397 = vmatprep.mubr.bf16.mxu1 %v3053_v28  ;;  %v2993_v38 = vmax.f32 %v2719_v32, 0.0 }
 0x797   :  { %v2722_v35 = vpop.f32.mrf.mxu0  ;;  %3398 = vmatmul.mubr.bf16.gmra.mxu1 %v3052_v30 }
 0x798   :  { %v2723_v49 = vadd.f32 %v2722_v35, %v5531_v7  ;;  %v2995_v36 = vmax.f32 %v2721_v33, 0.0 }
 0x799   :  { %v2726_v37 = vpop.f32.mrf.mxu0 }
 0x79a   :  { %v2996_v40 = vmax.f32 %v2723_v49, 0.0  ;;  %v3055_v44 = vpack.c.bf16 %v2995_v36, %v2992_v41  ;;  %v2727_v47 = vadd.f32 %v2726_v37, %v5533_v8 }
 0x79b   :  { %v2728_v42 = vpop.f32.mrf.mxu0 }
 0x79c   :  { %v3056_v43 = vpack.c.bf16 %v2996_v40, %v2993_v38  ;;  %v2729_v60 = vadd.f32 %v2728_v42, %v5531_v7  ;;  %v2998_v4 = vmax.f32 %v2727_v47, 0.0  ;;  %v5652_v40 = vld [vmem:[%s5790_s8] ss:$0 sm:$0xff] }
 0x79d   :  { %v2730_v45 = vpop.f32.mrf.mxu0 }
 0x79e   :  { %v2731_v46 = vadd.f32 %v2730_v45, %v5533_v8  ;;  %3405 = vmatprep.mubr.bf16.mxu1 %v3056_v43  ;;  %v2999_v53 = vmax.f32 %v2729_v60, 0.0 }
 0x79f   :  { %v2732_v48 = vpop.f32.mrf.mxu0  ;;  %3406 = vmatmul.mubr.bf16.gmra.mxu1 %v3055_v44 }
 0x7a0   :  { %v2733_v50 = vadd.f32 %v2732_v48, %v5531_v7  ;;  %v3001_v51 = vmax.f32 %v2731_v46, 0.0 }
 0x7a1   :  { %v2736_v52 = vpop.f32.mrf.mxu0 }
 0x7a2   :  { %v3002_v11 = vmax.f32 %v2733_v50, 0.0  ;;  %v3058_v58 = vpack.c.bf16 %v3001_v51, %v2998_v4  ;;  %v2737_v61 = vadd.f32 %v2736_v52, %v5533_v8 }
 0x7a3   :  { %v2738_v55 = vpop.f32.mrf.mxu0 }
 0x7a4   :  { %v3059_v56 = vpack.c.bf16 %v3002_v11, %v2999_v53  ;;  %v2739_v57 = vadd.f32 %v2738_v55, %v5531_v7  ;;  %v3004_v5 = vmax.f32 %v2737_v61, 0.0 }
 0x7a5   :  { %v2740_v59 = vpop.f32.mrf.mxu0 }
 0x7a6   :  { %v2741_v9 = vadd.f32 %v2740_v59, %v5533_v8  ;;  %3413 = vmatprep.mubr.bf16.mxu1 %v3059_v56  ;;  %v3005_v2 = vmax.f32 %v2739_v57, 0.0 }
 0x7a7   :  { %v2742_v62 = vpop.f32.mrf.mxu0  ;;  %3414 = vmatmul.mubr.bf16.gmra.mxu1 %v3058_v58 }
 0x7a8   :  { %v2743_v63 = vadd.f32 %v2742_v62, %v5531_v7  ;;  %v3007_v0 = vmax.f32 %v2741_v9, 0.0 }
 0x7a9   :  { %v2746_v1 = vpop.f32.mrf.mxu0 }
 0x7aa   :  { %v3008_v3 = vmax.f32 %v2743_v63, 0.0  ;;  %v3061_v10 = vpack.c.bf16 %v3007_v0, %v3004_v5  ;;  %v2747_v14 = vadd.f32 %v2746_v1, %v5533_v8 }
 0x7ab   :  { %v2748_v19 = vpop.f32.mrf.mxu0 }
 0x7ac   :  { %v3062_v6 = vpack.c.bf16 %v3008_v3, %v3005_v2  ;;  %v2749_v12 = vadd.f32 %v2748_v19, %v5531_v7  ;;  %v3010_v21 = vmax.f32 %v2747_v14, 0.0 }
 0x7ad   :  { %v2750_v54 = vpop.f32.mrf.mxu0 }
 0x7ae   :  { %v2751_v13 = vadd.f32 %v2750_v54, %v5533_v8  ;;  %3421 = vmatprep.mubr.bf16.mxu1 %v3062_v6  ;;  %v3011_v18 = vmax.f32 %v2749_v12, 0.0 }
 0x7af   :  { %v2752_v15 = vpop.f32.mrf.mxu0  ;;  %3422 = vmatmul.mubr.bf16.gmra.mxu1 %v3061_v10 }
 0x7b0   :  { %v2753_v29 = vadd.f32 %v2752_v15, %v5531_v7  ;;  %v3013_v16 = vmax.f32 %v2751_v13, 0.0 }
 0x7b1   :  { %v2756_v17 = vpop.f32.mrf.mxu0 }
 0x7b2   :  { %v3014_v20 = vmax.f32 %v2753_v29, 0.0  ;;  %v3064_v24 = vpack.c.bf16 %v3013_v16, %v3010_v21  ;;  %v2757_v27 = vadd.f32 %v2756_v17, %v5533_v8 }
 0x7b3   :  { %v2758_v22 = vpop.f32.mrf.mxu0 }
 0x7b4   :  { %v3065_v23 = vpack.c.bf16 %v3014_v20, %v3011_v18  ;;  %v2759_v39 = vadd.f32 %v2758_v22, %v5531_v7  ;;  %v3016_v34 = vmax.f32 %v2757_v27, 0.0 }
 0x7b5   :  { %v2760_v25 = vpop.f32.mrf.mxu0 }
 0x7b6   :  { %v2761_v26 = vadd.f32 %v2760_v25, %v5533_v8  ;;  %3429 = vmatprep.mubr.bf16.mxu1 %v3065_v23  ;;  %v3017_v32 = vmax.f32 %v2759_v39, 0.0 }
 0x7b7   :  { %v2762_v28 = vpop.f32.mrf.mxu0  ;;  %3430 = vmatmul.mubr.bf16.gmra.mxu1 %v3064_v24 }
 0x7b8   :  { %v2763_v30 = vadd.f32 %v2762_v28, %v5531_v7  ;;  %v3019_v31 = vmax.f32 %v2761_v26, 0.0 }
 0x7ba   :  { %v3020_v33 = vmax.f32 %v2763_v30, 0.0  ;;  %v3067_v49 = vpack.c.bf16 %v3019_v31, %v3016_v34 }
 0x7bc   :  { %v3068_v35 = vpack.c.bf16 %v3020_v33, %v3017_v32 }
 0x7be   :  { %3437 = vmatprep.mubr.bf16.mxu1 %v3068_v35 }
 0x7bf   :  { %3438 = vmatmul.mubr.bf16.gmra.mxu1 %v3067_v49 }
 0x807   :  { %v4132_v36 = vpop.f32.mrf.mxu1 }
 0x808   :  { %v4614_v37 = vpop.f32.mrf.mxu0 }
 0x809   :  { %v4133_v38 = vpop.f32.mrf.mxu1 }
 0x80a   :  { %v4134_v8 = vadd.f32 %v4133_v38, %v4132_v36  ;;  %v3480_v41 = vpop.f32.mrf.mxu0 }
 0x80b   :  { %v4135_v42 = vpop.f32.mrf.mxu1 }
 0x80c   :  { %v3320_v7 = vadd.f32 %v4134_v8, %v5652_v40  ;;  %v4615_v43 = vpop.f32.mrf.mxu0 }
 0x80d   :  { %v4136_v44 = vpop.f32.mrf.mxu1 }
 0x80e   :  { %v3481_v45 = vadd.f32 %v3480_v41, %v3320_v7  ;;  %v4137_v60 = vadd.f32 %v4136_v44, %v4135_v42  ;;  %v3483_v48 = vpop.f32.mrf.mxu0 }
 0x80f   :  { %v4138_v46 = vpop.f32.mrf.mxu1 }
 0x810   :  { %3607 = vst [vmem:[%s5791_s9] sm:$0xff] %v3481_v45  ;;  %v3323_v47 = vadd.f32 %v4137_v60, %v5652_v40  ;;  %v4618_v4 = vpop.f32.mrf.mxu0 }
 0x811   :  { %v4139_v50 = vpop.f32.mrf.mxu1 }
 0x812   :  { %v3484_v51 = vadd.f32 %v3483_v48, %v3323_v47  ;;  %v4140_v52 = vadd.f32 %v4139_v50, %v4138_v46  ;;  %v3496_v9 = vpop.f32.mrf.mxu0 }
 0x813   :  { %v4141_v53 = vpop.f32.mrf.mxu1 }
 0x814   :  { %3608 = vst [vmem:[%s5791_s9 + $0x8] sm:$0xff] %v3484_v51  ;;  %v3328_v11 = vadd.f32 %v4140_v52, %v5652_v40  ;;  %v4619_v2 = vpop.f32.mrf.mxu0 }
 0x815   :  { %v4142_v55 = vpop.f32.mrf.mxu1 }
 0x816   :  { %v3489_v56 = vadd.f32 %v4614_v37, %v3328_v11  ;;  %v4143_v58 = vadd.f32 %v4142_v55, %v4141_v53  ;;  %v3499_v54 = vpop.f32.mrf.mxu0 }
 0x817   :  { %v4144_v59 = vpop.f32.mrf.mxu1 }
 0x818   :  { %3609 = vst [vmem:[%s5791_s9 + $0x10] sm:$0xff] %v3489_v56  ;;  %v3331_v57 = vadd.f32 %v4143_v58, %v5652_v40  ;;  %v4622_v16 = vpop.f32.mrf.mxu0 }
 0x819   :  { %v4145_v61 = vpop.f32.mrf.mxu1 }
 0x81a   :  { %v3492_v62 = vadd.f32 %v4615_v43, %v3331_v57  ;;  %v4146_v63 = vadd.f32 %v4145_v61, %v4144_v59  ;;  %v3512_v23 = vpop.f32.mrf.mxu0 }
 0x81b   :  { %v4147_v0 = vpop.f32.mrf.mxu1 }
 0x81c   :  { %3610 = vst [vmem:[%s5791_s9 + $0x18] sm:$0xff] %v3492_v62  ;;  %v3336_v1 = vadd.f32 %v4146_v63, %v5652_v40  ;;  %v4623_v28 = vpop.f32.mrf.mxu0 }
 0x81d   :  { %v4148_v3 = vpop.f32.mrf.mxu1 }
 0x81e   :  { %v3497_v5 = vadd.f32 %v3496_v9, %v3336_v1  ;;  %v4149_v19 = vadd.f32 %v4148_v3, %v4147_v0  ;;  %v3515_v35 = vpop.f32.mrf.mxu0 }
 0x81f   :  { %v4150_v6 = vpop.f32.mrf.mxu1 }
 0x820   :  { %3611 = vst [vmem:[%s5791_s9 + $0x20] sm:$0xff] %v3497_v5  ;;  %v3339_v10 = vadd.f32 %v4149_v19, %v5652_v40  ;;  %v4626_v41 = vpop.f32.mrf.mxu0 }
 0x821   :  { %v4151_v12 = vpop.f32.mrf.mxu1 }
 0x822   :  { %v3500_v13 = vadd.f32 %v3499_v54, %v3339_v10  ;;  %v4152_v14 = vadd.f32 %v4151_v12, %v4150_v6  ;;  %v3528_v60 = vpop.f32.mrf.mxu0 }
 0x823   :  { %v4153_v15 = vpop.f32.mrf.mxu1 }
 0x824   :  { %3612 = vst [vmem:[%s5791_s9 + $0x28] sm:$0xff] %v3500_v13  ;;  %v3344_v29 = vadd.f32 %v4152_v14, %v5652_v40  ;;  %v4627_v52 = vpop.f32.mrf.mxu0 }
 0x825   :  { %v4154_v17 = vpop.f32.mrf.mxu1 }
 0x826   :  { %v3505_v18 = vadd.f32 %v4618_v4, %v3344_v29  ;;  %v4155_v20 = vadd.f32 %v4154_v17, %v4153_v15  ;;  %v3531_v58 = vpop.f32.mrf.mxu0 }
 0x827   :  { %v4156_v21 = vpop.f32.mrf.mxu1 }
 0x828   :  { %3613 = vst [vmem:[%s5791_s9 + $0x30] sm:$0xff] %v3505_v18  ;;  %v3347_v22 = vadd.f32 %v4155_v20, %v5652_v40  ;;  %v4630_v63 = vpop.f32.mrf.mxu0 }
 0x829   :  { %v4157_v24 = vpop.f32.mrf.mxu1 }
 0x82a   :  { %v3508_v25 = vadd.f32 %v4619_v2, %v3347_v22  ;;  %v4158_v39 = vadd.f32 %v4157_v24, %v4156_v21  ;;  %v3544_v19 = vpop.f32.mrf.mxu0 }
 0x82b   :  { %v4159_v26 = vpop.f32.mrf.mxu1 }
 0x82c   :  { %3614 = vst [vmem:[%s5791_s9 + $0x38] sm:$0xff] %v3508_v25  ;;  %v3352_v27 = vadd.f32 %v4158_v39, %v5652_v40  ;;  %v4631_v14 = vpop.f32.mrf.mxu0 }
 0x82d   :  { %v4160_v30 = vpop.f32.mrf.mxu1 }
 0x82e   :  { %v3513_v31 = vadd.f32 %v3512_v23, %v3352_v27  ;;  %v4161_v32 = vadd.f32 %v4160_v30, %v4159_v26  ;;  %v3547_v20 = vpop.f32.mrf.mxu0 }
 0x82f   :  { %v4162_v33 = vpop.f32.mrf.mxu1 }
 0x830   :  { %3615 = vst [vmem:[%s5791_s9 + $0x40] sm:$0xff] %v3513_v31  ;;  %v3355_v34 = vadd.f32 %v4161_v32, %v5652_v40  ;;  %v4634_v39 = vpop.f32.mrf.mxu0 }
 0x831   :  { %v4163_v49 = vpop.f32.mrf.mxu1 }
 0x832   :  { %v3516_v36 = vadd.f32 %v3515_v35, %v3355_v34  ;;  %v4164_v37 = vadd.f32 %v4163_v49, %v4162_v33  ;;  %v3560_v32 = vpop.f32.mrf.mxu0 }
 0x833   :  { %v4165_v38 = vpop.f32.mrf.mxu1 }
 0x834   :  { %3616 = vst [vmem:[%s5791_s9 + $0x48] sm:$0xff] %v3516_v36  ;;  %v3360_v8 = vadd.f32 %v4164_v37, %v5652_v40  ;;  %v4635_v37 = vpop.f32.mrf.mxu0 }
 0x835   :  { %v4166_v42 = vpop.f32.mrf.mxu1 }
 0x836   :  { %v3521_v7 = vadd.f32 %v4622_v16, %v3360_v8  ;;  %v4167_v43 = vadd.f32 %v4166_v42, %v4165_v38 }
 0x837   :  { %v4168_v44 = vpop.f32.mrf.mxu1 }
 0x838   :  { %3617 = vst [vmem:[%s5791_s9 + $0x50] sm:$0xff] %v3521_v7  ;;  %v3363_v45 = vadd.f32 %v4167_v43, %v5652_v40  ;;  %v3563_v43 = vpop.f32.mrf.mxu0 }
 0x839   :  { %v4169_v46 = vpop.f32.mrf.mxu1 }
 0x83a   :  { %v3524_v47 = vadd.f32 %v4623_v28, %v3363_v45  ;;  %v4170_v48 = vadd.f32 %v4169_v46, %v4168_v44 }
 0x83b   :  { %v4171_v50 = vpop.f32.mrf.mxu1 }
 0x83c   :  { %3618 = vst [vmem:[%s5791_s9 + $0x58] sm:$0xff] %v3524_v47  ;;  %v3368_v51 = vadd.f32 %v4170_v48, %v5652_v40  ;;  %v4638_v48 = vpop.f32.mrf.mxu0 }
 0x83d   :  { %v4172_v53 = vpop.f32.mrf.mxu1 }
 0x83e   :  { %v3529_v11 = vadd.f32 %v3528_v60, %v3368_v51  ;;  %v4173_v4 = vadd.f32 %v4172_v53, %v4171_v50 }
 0x83f   :  { %v4174_v55 = vpop.f32.mrf.mxu1 }
 0x840   :  { %3619 = vst [vmem:[%s5791_s9 + $0x60] sm:$0xff] %v3529_v11  ;;  %v3371_v56 = vadd.f32 %v4173_v4, %v5652_v40  ;;  %v3576_v4 = vpop.f32.mrf.mxu0 }
 0x841   :  { %v4175_v59 = vpop.f32.mrf.mxu1 }
 0x842   :  { %v3532_v57 = vadd.f32 %v3531_v58, %v3371_v56  ;;  %v4176_v9 = vadd.f32 %v4175_v59, %v4174_v55 }
 0x843   :  { %v4177_v61 = vpop.f32.mrf.mxu1 }
 0x844   :  { %3620 = vst [vmem:[%s5791_s9 + $0x68] sm:$0xff] %v3532_v57  ;;  %v3376_v62 = vadd.f32 %v4176_v9, %v5652_v40  ;;  %v4639_v9 = vpop.f32.mrf.mxu0 }
 0x845   :  { %v4178_v0 = vpop.f32.mrf.mxu1 }
 0x846   :  { %v3537_v1 = vadd.f32 %v4626_v41, %v3376_v62  ;;  %v4179_v2 = vadd.f32 %v4178_v0, %v4177_v61 }
 0x847   :  { %v4180_v3 = vpop.f32.mrf.mxu1 }
 0x848   :  { %3621 = vst [vmem:[%s5791_s9 + $0x70] sm:$0xff] %v3537_v1  ;;  %v3379_v5 = vadd.f32 %v4179_v2, %v5652_v40  ;;  %v3579_v2 = vpop.f32.mrf.mxu0 }
 0x849   :  { %v4181_v6 = vpop.f32.mrf.mxu1 }
 0x84a   :  { %v3540_v10 = vadd.f32 %v4627_v52, %v3379_v5  ;;  %v4182_v54 = vadd.f32 %v4181_v6, %v4180_v3 }
 0x84b   :  { %v4183_v12 = vpop.f32.mrf.mxu1 }
 0x84c   :  { %3622 = vst [vmem:[%s5791_s9 + $0x78] sm:$0xff] %v3540_v10  ;;  %v3384_v13 = vadd.f32 %v4182_v54, %v5652_v40  ;;  %v4642_v54 = vpop.f32.mrf.mxu0 }
 0x84d   :  { %v4184_v15 = vpop.f32.mrf.mxu1 }
 0x84e   :  { %v3545_v29 = vadd.f32 %v3544_v19, %v3384_v13  ;;  %v4185_v16 = vadd.f32 %v4184_v15, %v4183_v12 }
 0x84f   :  { %v4186_v17 = vpop.f32.mrf.mxu1 }
 0x850   :  { %3623 = vst [vmem:[%s5791_s9 + $0x80] sm:$0xff] %v3545_v29  ;;  %v3387_v18 = vadd.f32 %v4185_v16, %v5652_v40  ;;  %v3592_v16 = vpop.f32.mrf.mxu0 }
 0x851   :  { %v4187_v21 = vpop.f32.mrf.mxu1 }
 0x852   :  { %v3548_v22 = vadd.f32 %v3547_v20, %v3387_v18  ;;  %v4188_v23 = vadd.f32 %v4187_v21, %v4186_v17 }
 0x853   :  { %v4189_v24 = vpop.f32.mrf.mxu1 }
 0x854   :  { %3624 = vst [vmem:[%s5791_s9 + $0x88] sm:$0xff] %v3548_v22  ;;  %v3392_v25 = vadd.f32 %v4188_v23, %v5652_v40  ;;  %v4643_v23 = vpop.f32.mrf.mxu0 }
 0x855   :  { %v4190_v26 = vpop.f32.mrf.mxu1 }
 0x856   :  { %v3553_v27 = vadd.f32 %v4630_v63, %v3392_v25  ;;  %v4191_v28 = vadd.f32 %v4190_v26, %v4189_v24 }
 0x857   :  { %v4192_v30 = vpop.f32.mrf.mxu1 }
 0x858   :  { %3625 = vst [vmem:[%s5791_s9 + $0x90] sm:$0xff] %v3553_v27  ;;  %v3395_v31 = vadd.f32 %v4191_v28, %v5652_v40  ;;  %v3595_v28 = vpop.f32.mrf.mxu0 }
 0x859   :  { %v4193_v33 = vpop.f32.mrf.mxu1 }
 0x85a   :  { %v3556_v34 = vadd.f32 %v4631_v14, %v3395_v31  ;;  %v4194_v35 = vadd.f32 %v4193_v33, %v4192_v30 }
 0x85b   :  { %v4195_v49 = vpop.f32.mrf.mxu1 }
 0x85c   :  { %3626 = vst [vmem:[%s5791_s9 + $0x98] sm:$0xff] %v3556_v34  ;;  %v3400_v36 = vadd.f32 %v4194_v35, %v5652_v40 }
 0x85d   :  { %v4196_v38 = vpop.f32.mrf.mxu1 }
 0x85e   :  { %v3561_v8 = vadd.f32 %v3560_v32, %v3400_v36  ;;  %v4197_v41 = vadd.f32 %v4196_v38, %v4195_v49 }
 0x85f   :  { %v4198_v42 = vpop.f32.mrf.mxu1 }
 0x860   :  { %3627 = vst [vmem:[%s5791_s9 + $0xa0] sm:$0xff] %v3561_v8  ;;  %v3403_v7 = vadd.f32 %v4197_v41, %v5652_v40 }
 0x861   :  { %v4199_v44 = vpop.f32.mrf.mxu1 }
 0x862   :  { %v3564_v45 = vadd.f32 %v3563_v43, %v3403_v7  ;;  %v4200_v60 = vadd.f32 %v4199_v44, %v4198_v42 }
 0x863   :  { %v4201_v46 = vpop.f32.mrf.mxu1 }
 0x864   :  { %3628 = vst [vmem:[%s5791_s9 + $0xa8] sm:$0xff] %v3564_v45  ;;  %v3408_v47 = vadd.f32 %v4200_v60, %v5652_v40 }
 0x865   :  { %v4202_v50 = vpop.f32.mrf.mxu1 }
 0x866   :  { %v3569_v51 = vadd.f32 %v4634_v39, %v3408_v47  ;;  %v4203_v52 = vadd.f32 %v4202_v50, %v4201_v46 }
 0x867   :  { %v4204_v53 = vpop.f32.mrf.mxu1 }
 0x868   :  { %3629 = vst [vmem:[%s5791_s9 + $0xb0] sm:$0xff] %v3569_v51  ;;  %v3411_v11 = vadd.f32 %v4203_v52, %v5652_v40 }
 0x869   :  { %v4205_v55 = vpop.f32.mrf.mxu1 }
 0x86a   :  { %v3572_v56 = vadd.f32 %v4635_v37, %v3411_v11  ;;  %v4206_v58 = vadd.f32 %v4205_v55, %v4204_v53 }
 0x86b   :  { %v4207_v59 = vpop.f32.mrf.mxu1 }
 0x86c   :  { %3630 = vst [vmem:[%s5791_s9 + $0xb8] sm:$0xff] %v3572_v56  ;;  %v3416_v57 = vadd.f32 %v4206_v58, %v5652_v40 }
 0x86d   :  { %v4208_v61 = vpop.f32.mrf.mxu1 }
 0x86e   :  { %v3577_v62 = vadd.f32 %v3576_v4, %v3416_v57  ;;  %v4209_v63 = vadd.f32 %v4208_v61, %v4207_v59 }
 0x86f   :  { %v4210_v0 = vpop.f32.mrf.mxu1 }
 0x870   :  { %3631 = vst [vmem:[%s5791_s9 + $0xc0] sm:$0xff] %v3577_v62  ;;  %v3419_v1 = vadd.f32 %v4209_v63, %v5652_v40 }
 0x871   :  { %v4211_v3 = vpop.f32.mrf.mxu1 }
 0x872   :  { %v3580_v5 = vadd.f32 %v3579_v2, %v3419_v1  ;;  %v4212_v19 = vadd.f32 %v4211_v3, %v4210_v0 }
 0x873   :  { %v4213_v6 = vpop.f32.mrf.mxu1 }
 0x874   :  { %3632 = vst [vmem:[%s5791_s9 + $0xc8] sm:$0xff] %v3580_v5  ;;  %v3424_v10 = vadd.f32 %v4212_v19, %v5652_v40 }
 0x875   :  { %v4214_v12 = vpop.f32.mrf.mxu1 }
 0x876   :  { %v3585_v13 = vadd.f32 %v4638_v48, %v3424_v10  ;;  %v4215_v14 = vadd.f32 %v4214_v12, %v4213_v6 }
 0x877   :  { %v4216_v15 = vpop.f32.mrf.mxu1 }
 0x878   :  { %3633 = vst [vmem:[%s5791_s9 + $0xd0] sm:$0xff] %v3585_v13  ;;  %v3427_v29 = vadd.f32 %v4215_v14, %v5652_v40 }
 0x879   :  { %v4217_v17 = vpop.f32.mrf.mxu1 }
 0x87a   :  { %v3588_v18 = vadd.f32 %v4639_v9, %v3427_v29  ;;  %v4218_v20 = vadd.f32 %v4217_v17, %v4216_v15 }
 0x87b   :  { %v4219_v21 = vpop.f32.mrf.mxu1 }
 0x87c   :  { %3634 = vst [vmem:[%s5791_s9 + $0xd8] sm:$0xff] %v3588_v18  ;;  %v3432_v22 = vadd.f32 %v4218_v20, %v5652_v40 }
 0x87d   :  { %v4220_v24 = vpop.f32.mrf.mxu1 }
 0x87e   :  { %v3593_v25 = vadd.f32 %v3592_v16, %v3432_v22  ;;  %v4221_v39 = vadd.f32 %v4220_v24, %v4219_v21 }
 0x87f   :  { %v4222_v26 = vpop.f32.mrf.mxu1 }
 0x880   :  { %3635 = vst [vmem:[%s5791_s9 + $0xe0] sm:$0xff] %v3593_v25  ;;  %v3435_v27 = vadd.f32 %v4221_v39, %v5652_v40 }
 0x881   :  { %v4223_v30 = vpop.f32.mrf.mxu1 }
 0x882   :  { %v3596_v31 = vadd.f32 %v3595_v28, %v3435_v27  ;;  %v4224_v32 = vadd.f32 %v4223_v30, %v4222_v26 }
 0x883   :  { %v4225_v33 = vpop.f32.mrf.mxu1 }
 0x884   :  { %3636 = vst [vmem:[%s5791_s9 + $0xe8] sm:$0xff] %v3596_v31  ;;  %v3440_v34 = vadd.f32 %v4224_v32, %v5652_v40 }
 0x885   :  { %v4226_v35 = vpop.f32.mrf.mxu1 }
 0x886   :  { %v3601_v49 = vadd.f32 %v4642_v54, %v3440_v34  ;;  %v4227_v36 = vadd.f32 %v4226_v35, %v4225_v33 }
 0x888   :  { %3637 = vst [vmem:[%s5791_s9 + $0xf0] sm:$0xff] %v3601_v49  ;;  %v3443_v37 = vadd.f32 %v4227_v36, %v5652_v40 }
 0x88a   :  { %v3604_v38 = vadd.f32 %v4643_v23, %v3443_v37 }
 0x88c   :  { %3638 = vst [vmem:[%s5791_s9 + $0xf8] sm:$0xff] %v3604_v38 }

</bundles_post_ra>
